<compile_context>
chip_gen: v7x
topology: tpu7x:2x2x1
jax: 0.10.0
libtpu: 0.0.40
codegen_flags: <defaults>
</compile_context>

<pallas_src>
import jax
import jax.numpy as jnp
from jax.experimental import pallas as pl
from jax.experimental.pallas import tpu as pltpu


# Padded channel/feature sizes (zero-padded -> numerically identical).
C1P = 32    # conv1 out channels 20 -> 32
C2P = 64    # conv2 out channels 50 -> 64
F1P = 512   # fc1 out features  500 -> 512

# Set to jnp.bfloat16 on v6e/v7x to halve matmul-operand DMA and roughly
# double MXU throughput (accumulation stays f32 via preferred_element_type).
# Kept f32 here so the numerical cross-check against the f32 reference is tight.
COMPUTE_DTYPE = jnp.float32


# ---------------------------------------------------------------------------
# Pallas kernels
# ---------------------------------------------------------------------------
def _matmul_bias_relu_kernel(x_ref, w_ref, b_ref, o_ref):
    acc = jnp.dot(x_ref[...], w_ref[...], preferred_element_type=jnp.float32)
    acc = acc + b_ref[...]                      # b is (1, N), broadcasts over M
    o_ref[...] = jnp.maximum(acc, 0.0).astype(o_ref.dtype)


def _fc_head_kernel(x_ref, w1_ref, b1_ref, w2_ref, b2_ref, o_ref):
    """relu(x @ w1 + b1) @ w2 + b2 -> log_softmax, all in VMEM.

    NOTE: only correct while the fc2 output dim (10) is never tiled, so the
    row-wise softmax sees the full row inside one block.
    """
    h = jnp.dot(x_ref[...], w1_ref[...], preferred_element_type=jnp.float32)
    h = jnp.maximum(h + b1_ref[...], 0.0)
    z = jnp.dot(h.astype(w2_ref.dtype), w2_ref[...],
                preferred_element_type=jnp.float32)
    z = z + b2_ref[...]
    m = jnp.max(z, axis=-1, keepdims=True)
    s = z - m
    lse = jnp.log(jnp.sum(jnp.exp(s), axis=-1, keepdims=True))
    o_ref[...] = (s - lse).astype(o_ref.dtype)  # == log_softmax(z, axis=-1)


def _max4_kernel(a_ref, b_ref, c_ref, d_ref, o_ref):
    o_ref[...] = jnp.maximum(jnp.maximum(a_ref[...], b_ref[...]),
                             jnp.maximum(c_ref[...], d_ref[...]))


# ---------------------------------------------------------------------------
# Wrappers around pallas_call (row-tiled, parallel grid axis)
# ---------------------------------------------------------------------------
def _row_tiling(M, tm):
    """Return (tile_rows, padded_rows). Single full block when M <= tm."""
    if M <= tm:
        return M, M
    return tm, pl.cdiv(M, tm) * tm


def _pad_rows(x, Mp):
    M = x.shape[0]
    return jnp.pad(x, ((0, Mp - M), (0, 0))) if Mp != M else x


def _pallas_matmul_relu(x, w, b, *, tm=512):
    """y = relu(x @ w + b);  x:(M,K)  w:(K,N)  b:(N,).  Tiles only M."""
    M, K = x.shape
    K2, N = w.shape
    assert K == K2
    x = x.astype(COMPUTE_DTYPE)
    w = w.astype(COMPUTE_DTYPE)
    b2 = b.reshape(1, N).astype(jnp.float32)

    tm_eff, Mp = _row_tiling(M, tm)
    x = _pad_rows(x, Mp)

    out = pl.pallas_call(
        _matmul_bias_relu_kernel,
        out_shape=jax.ShapeDtypeStruct((Mp, N), jnp.float32),
        grid=(Mp // tm_eff,),
        in_specs=[
            pl.BlockSpec((tm_eff, K), lambda i: (i, 0)),   # row tile of x
            pl.BlockSpec((K, N), lambda i: (0, 0)),        # full weight
            pl.BlockSpec((1, N), lambda i: (0, 0)),        # full bias
        ],
        out_specs=pl.BlockSpec((tm_eff, N), lambda i: (i, 0)),
        compiler_params=pltpu.CompilerParams(
            dimension_semantics=("parallel",)),
    )(x, w, b2)
    return out[:M] if Mp != M else out


def _pallas_fc_head(x, w1, b1, w2, b2, *, tm=256):
    """log_softmax(relu(x @ w1 + b1) @ w2 + b2, axis=-1). Tiles only rows."""
    M, K = x.shape
    K1, N1 = w1.shape
    K2, N2 = w2.shape
    assert K == K1 and N1 == K2
    x = x.astype(COMPUTE_DTYPE)
    w1 = w1.astype(COMPUTE_DTYPE)
    w2 = w2.astype(COMPUTE_DTYPE)
    b1r = b1.reshape(1, N1).astype(jnp.float32)
    b2r = b2.reshape(1, N2).astype(jnp.float32)

    tm_eff, Mp = _row_tiling(M, tm)
    x = _pad_rows(x, Mp)

    out = pl.pallas_call(
        _fc_head_kernel,
        out_shape=jax.ShapeDtypeStruct((Mp, N2), jnp.float32),
        grid=(Mp // tm_eff,),
        in_specs=[
            pl.BlockSpec((tm_eff, K), lambda i: (i, 0)),   # row tile of x
            pl.BlockSpec((K1, N1), lambda i: (0, 0)),      # fc1 weight (full)
            pl.BlockSpec((1, N1), lambda i: (0, 0)),       # fc1 bias
            pl.BlockSpec((K2, N2), lambda i: (0, 0)),      # fc2 weight (full)
            pl.BlockSpec((1, N2), lambda i: (0, 0)),       # fc2 bias
        ],
        out_specs=pl.BlockSpec((tm_eff, N2), lambda i: (i, 0)),
        compiler_params=pltpu.CompilerParams(
            dimension_semantics=("parallel",)),
    )(x, w1, b1r, w2, b2r)
    return out[:M] if Mp != M else out


def max_pool_2x2_nhwc(x, *, tm=512):
    """F.max_pool2d(x, 2, 2) on NHWC input, lane-dense (B*OH, OW*C) slabs."""
    B, H, W, C = x.shape
    OH, OW = H // 2, W // 2
    M, N = B * OH, OW * C
    subs = [x[:, i::2, j::2, :].reshape(M, N) for i in (0, 1) for j in (0, 1)]

    tm_eff, Mp = _row_tiling(M, tm)
    if Mp != M:
        subs = [_pad_rows(s, Mp) for s in subs]

    out = pl.pallas_call(
        _max4_kernel,
        out_shape=jax.ShapeDtypeStruct((Mp, N), x.dtype),
        grid=(Mp // tm_eff,),
        in_specs=[pl.BlockSpec((tm_eff, N), lambda i: (i, 0))] * 4,
        out_specs=pl.BlockSpec((tm_eff, N), lambda i: (i, 0)),
        compiler_params=pltpu.CompilerParams(
            dimension_semantics=("parallel",)),
    )(*subs)
    if Mp != M:
        out = out[:M]
    return out.reshape(B, OH, OW, C)


def im2col_nhwc(x, kh, kw):
    """Valid, stride-1 kh x kw patches of NHWC x -> (B*OH*OW, kh*kw*C).
    Patch flattening order is (kh, kw, C) to match the pre-permuted weights."""
    B, H, W, C = x.shape
    OH, OW = H - kh + 1, W - kw + 1
    cols = [x[:, i:i + OH, j:j + OW, :] for i in range(kh) for j in range(kw)]
    patches = jnp.concatenate(cols, axis=-1)          # (B, OH, OW, kh*kw*C)
    return patches.reshape(B * OH * OW, kh * kw * C)


# ---------------------------------------------------------------------------
# Parameters (torch-style raw init) + one-time layout/padding prep
# ---------------------------------------------------------------------------
def init_params(key):
    ks = jax.random.split(key, 8)

    def u(k, shape, fan_in):
        bound = 1.0 / (float(fan_in) ** 0.5)
        return jax.random.uniform(k, shape, jnp.float32, -bound, bound)

    return {
        "conv1_w": u(ks[0], (20, 1, 5, 5), 1 * 5 * 5),
        "conv1_b": u(ks[1], (20,), 1 * 5 * 5),
        "conv2_w": u(ks[2], (50, 20, 5, 5), 20 * 5 * 5),
        "conv2_b": u(ks[3], (50,), 20 * 5 * 5),
        "fc1_w":   u(ks[4], (500, 4 * 4 * 50), 4 * 4 * 50),  # torch (out, in)
        "fc1_b":   u(ks[5], (500,), 4 * 4 * 50),
        "fc2_w":   u(ks[6], (10, 500), 500),
        "fc2_b":   u(ks[7], (10,), 500),
    }


def prepare_params(raw):
    """Pre-permute to NHWC matmul layout and zero-pad channel dims. Run once."""
    # conv1: (20,1,5,5) -> (kh*kw*Cin, C1P) with patch order (kh, kw, Cin)
    w1 = raw["conv1_w"].transpose(2, 3, 1, 0).reshape(25, 20)
    w1 = jnp.pad(w1, ((0, 0), (0, C1P - 20)))
    b1 = jnp.pad(raw["conv1_b"], (0, C1P - 20))

    # conv2: (50,20,5,5) -> pad channels -> (5*5*C1P, C2P)
    w2 = jnp.pad(raw["conv2_w"],
                 ((0, C2P - 50), (0, C1P - 20), (0, 0), (0, 0)))
    w2 = w2.transpose(2, 3, 1, 0).reshape(5 * 5 * C1P, C2P)
    b2 = jnp.pad(raw["conv2_b"], (0, C2P - 50))

    # fc1: torch (500, 800) with input order (C=50,H=4,W=4) -> NHWC (H,W,Cpad)
    wf1 = raw["fc1_w"].reshape(500, 50, 4, 4)
    wf1 = jnp.pad(wf1, ((0, F1P - 500), (0, C2P - 50), (0, 0), (0, 0)))
    wf1 = wf1.transpose(2, 3, 1, 0).reshape(4 * 4 * C2P, F1P)
    bf1 = jnp.pad(raw["fc1_b"], (0, F1P - 500))

    # fc2: torch (10, 500) -> pad contraction dim -> (F1P, 10)
    wf2 = jnp.pad(raw["fc2_w"], ((0, 0), (0, F1P - 500))).T
    bf2 = raw["fc2_b"]

    return {"w1": w1, "b1": b1, "w2": w2, "b2": b2,
            "wf1": wf1, "bf1": bf1, "wf2": wf2, "bf2": bf2}


# ---------------------------------------------------------------------------
# Forward pass (matches Net.forward)
# ---------------------------------------------------------------------------
@jax.jit
def net_forward(x_nchw, p):
    B = x_nchw.shape[0]
    x = x_nchw.transpose(0, 2, 3, 1)                 # NCHW -> NHWC (free, C=1)

    # conv1 (1->20, 5x5) + ReLU, padded to 32 channels
    cols = im2col_nhwc(x, 5, 5)                      # (B*576, 25)
    y = _pallas_matmul_relu(cols, p["w1"], p["b1"])
    y = y.reshape(B, 24, 24, C1P)

    y = max_pool_2x2_nhwc(y)                         # (B, 12, 12, 32)

    # conv2 (20->50, 5x5) + ReLU, padded to 64 channels
    cols = im2col_nhwc(y, 5, 5)                      # (B*64, 800)
    y = _pallas_matmul_relu(cols, p["w2"], p["b2"])
    y = y.reshape(B, 8, 8, C2P)

    y = max_pool_2x2_nhwc(y)                         # (B, 4, 4, 64)

    # flatten (NHWC order; fc1 weights were permuted to match torch's view)
    y = y.reshape(B, 4 * 4 * C2P)                    # (B, 1024)

    # fc1 + ReLU + fc2 + log_softmax(dim=1), fused in a single kernel
    y = _pallas_fc_head(y, p["wf1"], p["bf1"], p["wf2"], p["bf2"])
    return y


# ---------------------------------------------------------------------------
# Pure-JAX reference (f32, HIGHEST precision) for correctness checking
# ---------------------------------------------------------------------------
def _ref_pool_nchw(y):
    return jnp.maximum(jnp.maximum(y[:, :, 0::2, 0::2], y[:, :, 0::2, 1::2]),
                       jnp.maximum(y[:, :, 1::2, 0::2], y[:, :, 1::2, 1::2]))


def reference_forward(x_nchw, raw):
    P = jax.lax.Precision.HIGHEST
    y = jax.lax.conv_general_dilated(
        x_nchw, raw["conv1_w"], (1, 1), "VALID",
        dimension_numbers=("NCHW", "OIHW", "NCHW"), precision=P)
    y = jax.nn.relu(y + raw["conv1_b"][None, :, None, None])
    y = _ref_pool_nchw(y)
    y = jax.lax.conv_general_dilated(
        y, raw["conv2_w"], (1, 1), "VALID",
        dimension_numbers=("NCHW", "OIHW", "NCHW"), precision=P)
    y = jax.nn.relu(y + raw["conv2_b"][None, :, None, None])
    y = _ref_pool_nchw(y)
    y = y.reshape(y.shape[0], -1)                    # NCHW flatten == torch view
    y = jax.nn.relu(jnp.dot(y, raw["fc1_w"].T, precision=P) + raw["fc1_b"])
    y = jnp.dot(y, raw["fc2_w"].T, precision=P) + raw["fc2_b"]
    return jax.nn.log_softmax(y, axis=1)


if __name__ == "__main__":
    key = jax.random.PRNGKey(0)
    raw = init_params(key)
    params = prepare_params(raw)          # one-time layout/padding prep
    x = jax.random.normal(jax.random.fold_in(key, 123), (2, 1, 28, 28),
                          dtype=jnp.float32)

    out = net_forward(x, params)
    out = jax.block_until_ready(out)
    assert out.shape == (2, 10)
    # log_softmax rows must exp-sum to ~1
    assert bool(jnp.allclose(jnp.sum(jnp.exp(out), axis=1), 1.0, atol=1e-4))
    # cross-check against an independent pure-JAX f32 reference
    ref = reference_forward(x, raw)
    max_err = float(jnp.max(jnp.abs(out - ref)))
    assert max_err < 1e-2, f"mismatch vs reference: {max_err}"
    print("KERNEL_OK")
</pallas_src>

<mosaic_0001>
module attributes {stable_mosaic.version = 11 : i64} {
  func.func @_matmul_bias_relu_kernel(%arg0: i32, %arg1: memref<512x25xf32, #tpu.memory_space<vmem>>, %arg2: memref<25x32xf32, #tpu.memory_space<vmem>>, %arg3: memref<1x32xf32, #tpu.memory_space<vmem>>, %arg4: memref<512x32xf32, #tpu.memory_space<vmem>>) attributes {dimension_semantics = [#tpu.dimension_semantics<parallel>], iteration_bounds = array<i64: 3>, scalar_prefetch = 0 : i64, scratch_operands = 0 : i64, tpu.core_type = #tpu.core_type<tc>, window_params = [{transform_indices = @transform_0, window_bounds = array<i64: 512, 25>}, {pipeline_mode = #tpu.pipeline_mode<synchronous>, transform_indices = @transform_1, window_bounds = array<i64: 25, 32>}, {pipeline_mode = #tpu.pipeline_mode<synchronous>, transform_indices = @transform_2, window_bounds = array<i64: 1, 32>}, {transform_indices = @transform_3, window_bounds = array<i64: 512, 32>}]} {
    %c0 = arith.constant 0 : index
    %c0_0 = arith.constant 0 : index
    %0 = vector.load %arg1[%c0, %c0_0] : memref<512x25xf32, #tpu.memory_space<vmem>>, vector<512x25xf32>
    %c0_1 = arith.constant 0 : index
    %c0_2 = arith.constant 0 : index
    %1 = vector.load %arg2[%c0_1, %c0_2] : memref<25x32xf32, #tpu.memory_space<vmem>>, vector<25x32xf32>
    %cst = arith.constant dense<0.000000e+00> : vector<512x32xf32>
    %2 = tpu.matmul %0, %1, %cst {dimension_numbers = #tpu.dot_dimension_numbers<[1], [0], [0], [1], [0, 0, 1, 1], [], []>} : vector<512x25xf32>, vector<25x32xf32>, vector<512x32xf32> -> vector<512x32xf32>
    %c0_3 = arith.constant 0 : index
    %c0_4 = arith.constant 0 : index
    %3 = vector.load %arg3[%c0_3, %c0_4] : memref<1x32xf32, #tpu.memory_space<vmem>>, vector<1x32xf32>
    %4 = vector.broadcast %3 : vector<1x32xf32> to vector<512x32xf32>
    %5 = arith.addf %2, %4 : vector<512x32xf32>
    %cst_5 = arith.constant 0.000000e+00 : f32
    %6 = vector.broadcast %cst_5 : f32 to vector<512x32xf32>
    %7 = arith.maximumf %5, %6 : vector<512x32xf32>
    %c0_6 = arith.constant 0 : index
    %c0_7 = arith.constant 0 : index
    %8 = vector.load %arg4[%c0_6, %c0_7] : memref<512x32xf32, #tpu.memory_space<vmem>>, vector<512x32xf32>
    tpu.vector_store %arg4[%c0_6, %c0_7], %7 {strides = array<i32>} : memref<512x32xf32, #tpu.memory_space<vmem>>, vector<512x32xf32>,
    return
  }
  func.func @transform_0(%arg0: i32) -> (i32, i32) {
    %c0_i32 = arith.constant 0 : i32
    %c0_i32_0 = arith.constant 0 : i32
    return %arg0, %c0_i32 : i32, i32
  }
  func.func @transform_1(%arg0: i32) -> (i32, i32) {
    %c0_i32 = arith.constant 0 : i32
    %c0_i32_0 = arith.constant 0 : i32
    %c0_i32_1 = arith.constant 0 : i32
    return %c0_i32, %c0_i32_0 : i32, i32
  }
  func.func @transform_2(%arg0: i32) -> (i32, i32) {
    %c0_i32 = arith.constant 0 : i32
    %c0_i32_0 = arith.constant 0 : i32
    %c0_i32_1 = arith.constant 0 : i32
    return %c0_i32, %c0_i32_0 : i32, i32
  }
  func.func @transform_3(%arg0: i32) -> (i32, i32) {
    %c0_i32 = arith.constant 0 : i32
    %c0_i32_0 = arith.constant 0 : i32
    return %arg0, %c0_i32 : i32, i32
  }
}

module attributes {stable_mosaic.version = 11 : i64} {
  func.func @_max4_kernel(%arg0: i32, %arg1: memref<24x384xf32, #tpu.memory_space<vmem>>, %arg2: memref<24x384xf32, #tpu.memory_space<vmem>>, %arg3: memref<24x384xf32, #tpu.memory_space<vmem>>, %arg4: memref<24x384xf32, #tpu.memory_space<vmem>>, %arg5: memref<24x384xf32, #tpu.memory_space<vmem>>) attributes {dimension_semantics = [#tpu.dimension_semantics<parallel>], iteration_bounds = array<i64: 1>, scalar_prefetch = 0 : i64, scratch_operands = 0 : i64, tpu.core_type = #tpu.core_type<tc>, window_params = [{transform_indices = @transform_0, window_bounds = array<i64: 24, 384>}, {transform_indices = @transform_1, window_bounds = array<i64: 24, 384>}, {transform_indices = @transform_2, window_bounds = array<i64: 24, 384>}, {transform_indices = @transform_3, window_bounds = array<i64: 24, 384>}, {transform_indices = @transform_4, window_bounds = array<i64: 24, 384>}]} {
    %c0 = arith.constant 0 : index
    %c0_0 = arith.constant 0 : index
    %0 = vector.load %arg1[%c0, %c0_0] : memref<24x384xf32, #tpu.memory_space<vmem>>, vector<24x384xf32>
    %c0_1 = arith.constant 0 : index
    %c0_2 = arith.constant 0 : index
    %1 = vector.load %arg2[%c0_1, %c0_2] : memref<24x384xf32, #tpu.memory_space<vmem>>, vector<24x384xf32>
    %2 = arith.maximumf %0, %1 : vector<24x384xf32>
    %c0_3 = arith.constant 0 : index
    %c0_4 = arith.constant 0 : index
    %3 = vector.load %arg3[%c0_3, %c0_4] : memref<24x384xf32, #tpu.memory_space<vmem>>, vector<24x384xf32>
    %c0_5 = arith.constant 0 : index
    %c0_6 = arith.constant 0 : index
    %4 = vector.load %arg4[%c0_5, %c0_6] : memref<24x384xf32, #tpu.memory_space<vmem>>, vector<24x384xf32>
    %5 = arith.maximumf %3, %4 : vector<24x384xf32>
    %6 = arith.maximumf %2, %5 : vector<24x384xf32>
    %c0_7 = arith.constant 0 : index
    %c0_8 = arith.constant 0 : index
    %7 = vector.load %arg5[%c0_7, %c0_8] : memref<24x384xf32, #tpu.memory_space<vmem>>, vector<24x384xf32>
    tpu.vector_store %arg5[%c0_7, %c0_8], %6 {strides = array<i32>} : memref<24x384xf32, #tpu.memory_space<vmem>>, vector<24x384xf32>,
    return
  }
  func.func @transform_0(%arg0: i32) -> (i32, i32) {
    %c0_i32 = arith.constant 0 : i32
    %c0_i32_0 = arith.constant 0 : i32
    return %arg0, %c0_i32 : i32, i32
  }
  func.func @transform_1(%arg0: i32) -> (i32, i32) {
    %c0_i32 = arith.constant 0 : i32
    %c0_i32_0 = arith.constant 0 : i32
    return %arg0, %c0_i32 : i32, i32
  }
  func.func @transform_2(%arg0: i32) -> (i32, i32) {
    %c0_i32 = arith.constant 0 : i32
    %c0_i32_0 = arith.constant 0 : i32
    return %arg0, %c0_i32 : i32, i32
  }
  func.func @transform_3(%arg0: i32) -> (i32, i32) {
    %c0_i32 = arith.constant 0 : i32
    %c0_i32_0 = arith.constant 0 : i32
    return %arg0, %c0_i32 : i32, i32
  }
  func.func @transform_4(%arg0: i32) -> (i32, i32) {
    %c0_i32 = arith.constant 0 : i32
    %c0_i32_0 = arith.constant 0 : i32
    return %arg0, %c0_i32 : i32, i32
  }
}

module attributes {stable_mosaic.version = 11 : i64} {
  func.func @_matmul_bias_relu_kernel(%arg0: i32, %arg1: memref<128x800xf32, #tpu.memory_space<vmem>>, %arg2: memref<800x64xf32, #tpu.memory_space<vmem>>, %arg3: memref<1x64xf32, #tpu.memory_space<vmem>>, %arg4: memref<128x64xf32, #tpu.memory_space<vmem>>) attributes {dimension_semantics = [#tpu.dimension_semantics<parallel>], iteration_bounds = array<i64: 1>, scalar_prefetch = 0 : i64, scratch_operands = 0 : i64, tpu.core_type = #tpu.core_type<tc>, window_params = [{transform_indices = @transform_0, window_bounds = array<i64: 128, 800>}, {pipeline_mode = #tpu.pipeline_mode<synchronous>, transform_indices = @transform_1, window_bounds = array<i64: 800, 64>}, {pipeline_mode = #tpu.pipeline_mode<synchronous>, transform_indices = @transform_2, window_bounds = array<i64: 1, 64>}, {transform_indices = @transform_3, window_bounds = array<i64: 128, 64>}]} {
    %c0 = arith.constant 0 : index
    %c0_0 = arith.constant 0 : index
    %0 = vector.load %arg1[%c0, %c0_0] : memref<128x800xf32, #tpu.memory_space<vmem>>, vector<128x800xf32>
    %c0_1 = arith.constant 0 : index
    %c0_2 = arith.constant 0 : index
    %1 = vector.load %arg2[%c0_1, %c0_2] : memref<800x64xf32, #tpu.memory_space<vmem>>, vector<800x64xf32>
    %cst = arith.constant dense<0.000000e+00> : vector<128x64xf32>
    %2 = tpu.matmul %0, %1, %cst {dimension_numbers = #tpu.dot_dimension_numbers<[1], [0], [0], [1], [0, 0, 1, 1], [], []>} : vector<128x800xf32>, vector<800x64xf32>, vector<128x64xf32> -> vector<128x64xf32>
    %c0_3 = arith.constant 0 : index
    %c0_4 = arith.constant 0 : index
    %3 = vector.load %arg3[%c0_3, %c0_4] : memref<1x64xf32, #tpu.memory_space<vmem>>, vector<1x64xf32>
    %4 = vector.broadcast %3 : vector<1x64xf32> to vector<128x64xf32>
    %5 = arith.addf %2, %4 : vector<128x64xf32>
    %cst_5 = arith.constant 0.000000e+00 : f32
    %6 = vector.broadcast %cst_5 : f32 to vector<128x64xf32>
    %7 = arith.maximumf %5, %6 : vector<128x64xf32>
    %c0_6 = arith.constant 0 : index
    %c0_7 = arith.constant 0 : index
    %8 = vector.load %arg4[%c0_6, %c0_7] : memref<128x64xf32, #tpu.memory_space<vmem>>, vector<128x64xf32>
    tpu.vector_store %arg4[%c0_6, %c0_7], %7 {strides = array<i32>} : memref<128x64xf32, #tpu.memory_space<vmem>>, vector<128x64xf32>,
    return
  }
  func.func @transform_0(%arg0: i32) -> (i32, i32) {
    %c0_i32 = arith.constant 0 : i32
    %c0_i32_0 = arith.constant 0 : i32
    return %arg0, %c0_i32 : i32, i32
  }
  func.func @transform_1(%arg0: i32) -> (i32, i32) {
    %c0_i32 = arith.constant 0 : i32
    %c0_i32_0 = arith.constant 0 : i32
    %c0_i32_1 = arith.constant 0 : i32
    return %c0_i32, %c0_i32_0 : i32, i32
  }
  func.func @transform_2(%arg0: i32) -> (i32, i32) {
    %c0_i32 = arith.constant 0 : i32
    %c0_i32_0 = arith.constant 0 : i32
    %c0_i32_1 = arith.constant 0 : i32
    return %c0_i32, %c0_i32_0 : i32, i32
  }
  func.func @transform_3(%arg0: i32) -> (i32, i32) {
    %c0_i32 = arith.constant 0 : i32
    %c0_i32_0 = arith.constant 0 : i32
    return %arg0, %c0_i32 : i32, i32
  }
}

module attributes {stable_mosaic.version = 11 : i64} {
  func.func @_max4_kernel(%arg0: i32, %arg1: memref<8x256xf32, #tpu.memory_space<vmem>>, %arg2: memref<8x256xf32, #tpu.memory_space<vmem>>, %arg3: memref<8x256xf32, #tpu.memory_space<vmem>>, %arg4: memref<8x256xf32, #tpu.memory_space<vmem>>, %arg5: memref<8x256xf32, #tpu.memory_space<vmem>>) attributes {dimension_semantics = [#tpu.dimension_semantics<parallel>], iteration_bounds = array<i64: 1>, scalar_prefetch = 0 : i64, scratch_operands = 0 : i64, tpu.core_type = #tpu.core_type<tc>, window_params = [{transform_indices = @transform_0, window_bounds = array<i64: 8, 256>}, {transform_indices = @transform_1, window_bounds = array<i64: 8, 256>}, {transform_indices = @transform_2, window_bounds = array<i64: 8, 256>}, {transform_indices = @transform_3, window_bounds = array<i64: 8, 256>}, {transform_indices = @transform_4, window_bounds = array<i64: 8, 256>}]} {
    %c0 = arith.constant 0 : index
    %c0_0 = arith.constant 0 : index
    %0 = vector.load %arg1[%c0, %c0_0] : memref<8x256xf32, #tpu.memory_space<vmem>>, vector<8x256xf32>
    %c0_1 = arith.constant 0 : index
    %c0_2 = arith.constant 0 : index
    %1 = vector.load %arg2[%c0_1, %c0_2] : memref<8x256xf32, #tpu.memory_space<vmem>>, vector<8x256xf32>
    %2 = arith.maximumf %0, %1 : vector<8x256xf32>
    %c0_3 = arith.constant 0 : index
    %c0_4 = arith.constant 0 : index
    %3 = vector.load %arg3[%c0_3, %c0_4] : memref<8x256xf32, #tpu.memory_space<vmem>>, vector<8x256xf32>
    %c0_5 = arith.constant 0 : index
    %c0_6 = arith.constant 0 : index
    %4 = vector.load %arg4[%c0_5, %c0_6] : memref<8x256xf32, #tpu.memory_space<vmem>>, vector<8x256xf32>
    %5 = arith.maximumf %3, %4 : vector<8x256xf32>
    %6 = arith.maximumf %2, %5 : vector<8x256xf32>
    %c0_7 = arith.constant 0 : index
    %c0_8 = arith.constant 0 : index
    %7 = vector.load %arg5[%c0_7, %c0_8] : memref<8x256xf32, #tpu.memory_space<vmem>>, vector<8x256xf32>
    tpu.vector_store %arg5[%c0_7, %c0_8], %6 {strides = array<i32>} : memref<8x256xf32, #tpu.memory_space<vmem>>, vector<8x256xf32>,
    return
  }
  func.func @transform_0(%arg0: i32) -> (i32, i32) {
    %c0_i32 = arith.constant 0 : i32
    %c0_i32_0 = arith.constant 0 : i32
    return %arg0, %c0_i32 : i32, i32
  }
  func.func @transform_1(%arg0: i32) -> (i32, i32) {
    %c0_i32 = arith.constant 0 : i32
    %c0_i32_0 = arith.constant 0 : i32
    return %arg0, %c0_i32 : i32, i32
  }
  func.func @transform_2(%arg0: i32) -> (i32, i32) {
    %c0_i32 = arith.constant 0 : i32
    %c0_i32_0 = arith.constant 0 : i32
    return %arg0, %c0_i32 : i32, i32
  }
  func.func @transform_3(%arg0: i32) -> (i32, i32) {
    %c0_i32 = arith.constant 0 : i32
    %c0_i32_0 = arith.constant 0 : i32
    return %arg0, %c0_i32 : i32, i32
  }
  func.func @transform_4(%arg0: i32) -> (i32, i32) {
    %c0_i32 = arith.constant 0 : i32
    %c0_i32_0 = arith.constant 0 : i32
    return %arg0, %c0_i32 : i32, i32
  }
}

module attributes {stable_mosaic.version = 11 : i64} {
  func.func @_fc_head_kernel(%arg0: i32, %arg1: memref<2x1024xf32, #tpu.memory_space<vmem>>, %arg2: memref<1024x512xf32, #tpu.memory_space<vmem>>, %arg3: memref<1x512xf32, #tpu.memory_space<vmem>>, %arg4: memref<512x10xf32, #tpu.memory_space<vmem>>, %arg5: memref<1x10xf32, #tpu.memory_space<vmem>>, %arg6: memref<2x10xf32, #tpu.memory_space<vmem>>) attributes {dimension_semantics = [#tpu.dimension_semantics<parallel>], iteration_bounds = array<i64: 1>, scalar_prefetch = 0 : i64, scratch_operands = 0 : i64, tpu.core_type = #tpu.core_type<tc>, window_params = [{transform_indices = @transform_0, window_bounds = array<i64: 2, 1024>}, {pipeline_mode = #tpu.pipeline_mode<synchronous>, transform_indices = @transform_1, window_bounds = array<i64: 1024, 512>}, {pipeline_mode = #tpu.pipeline_mode<synchronous>, transform_indices = @transform_2, window_bounds = array<i64: 1, 512>}, {pipeline_mode = #tpu.pipeline_mode<synchronous>, transform_indices = @transform_3, window_bounds = array<i64: 512, 10>}, {pipeline_mode = #tpu.pipeline_mode<synchronous>, transform_indices = @transform_4, window_bounds = array<i64: 1, 10>}, {transform_indices = @transform_5, window_bounds = array<i64: 2, 10>}]} {
    %c0 = arith.constant 0 : index
    %c0_0 = arith.constant 0 : index
    %0 = vector.load %arg1[%c0, %c0_0] : memref<2x1024xf32, #tpu.memory_space<vmem>>, vector<2x1024xf32>
    %c0_1 = arith.constant 0 : index
    %c0_2 = arith.constant 0 : index
    %1 = vector.load %arg2[%c0_1, %c0_2] : memref<1024x512xf32, #tpu.memory_space<vmem>>, vector<1024x512xf32>
    %cst = arith.constant dense<0.000000e+00> : vector<2x512xf32>
    %2 = tpu.matmul %0, %1, %cst {dimension_numbers = #tpu.dot_dimension_numbers<[1], [0], [0], [1], [0, 0, 1, 1], [], []>} : vector<2x1024xf32>, vector<1024x512xf32>, vector<2x512xf32> -> vector<2x512xf32>
    %c0_3 = arith.constant 0 : index
    %c0_4 = arith.constant 0 : index
    %3 = vector.load %arg3[%c0_3, %c0_4] : memref<1x512xf32, #tpu.memory_space<vmem>>, vector<1x512xf32>
    %4 = vector.broadcast %3 : vector<1x512xf32> to vector<2x512xf32>
    %5 = arith.addf %2, %4 : vector<2x512xf32>
    %cst_5 = arith.constant 0.000000e+00 : f32
    %6 = vector.broadcast %cst_5 : f32 to vector<2x512xf32>
    %7 = arith.maximumf %5, %6 : vector<2x512xf32>
    %c0_6 = arith.constant 0 : index
    %c0_7 = arith.constant 0 : index
    %8 = vector.load %arg4[%c0_6, %c0_7] : memref<512x10xf32, #tpu.memory_space<vmem>>, vector<512x10xf32>
    %cst_8 = arith.constant dense<0.000000e+00> : vector<2x10xf32>
    %9 = tpu.matmul %7, %8, %cst_8 {dimension_numbers = #tpu.dot_dimension_numbers<[1], [0], [0], [1], [0, 0, 1, 1], [], []>} : vector<2x512xf32>, vector<512x10xf32>, vector<2x10xf32> -> vector<2x10xf32>
    %c0_9 = arith.constant 0 : index
    %c0_10 = arith.constant 0 : index
    %10 = vector.load %arg5[%c0_9, %c0_10] : memref<1x10xf32, #tpu.memory_space<vmem>>, vector<1x10xf32>
    %11 = vector.broadcast %10 : vector<1x10xf32> to vector<2x10xf32>
    %12 = arith.addf %9, %11 : vector<2x10xf32>
    %cst_11 = arith.constant dense<0xFF800000> : vector<2xf32>
    %13 = vector.multi_reduction <maximumf>, %12, %cst_11 [1] : vector<2x10xf32> to vector<2xf32>
    %14 = vector.shape_cast %13 : vector<2xf32> to vector<2x1xf32>
    %15 = vector.broadcast %14 : vector<2x1xf32> to vector<2x10xf32>
    %16 = arith.subf %12, %15 : vector<2x10xf32>
    %17 = math.exp %16 : vector<2x10xf32>
    %cst_12 = arith.constant dense<0.000000e+00> : vector<2xf32>
    %18 = vector.multi_reduction <add>, %17, %cst_12 [1] : vector<2x10xf32> to vector<2xf32>
    %19 = vector.shape_cast %18 : vector<2xf32> to vector<2x1xf32>
    %20 = math.log %19 : vector<2x1xf32>
    %21 = vector.broadcast %20 : vector<2x1xf32> to vector<2x10xf32>
    %22 = arith.subf %16, %21 : vector<2x10xf32>
    %c0_13 = arith.constant 0 : index
    %c0_14 = arith.constant 0 : index
    %23 = vector.load %arg6[%c0_13, %c0_14] : memref<2x10xf32, #tpu.memory_space<vmem>>, vector<2x10xf32>
    tpu.vector_store %arg6[%c0_13, %c0_14], %22 {strides = array<i32>} : memref<2x10xf32, #tpu.memory_space<vmem>>, vector<2x10xf32>,
    return
  }
  func.func @transform_0(%arg0: i32) -> (i32, i32) {
    %c0_i32 = arith.constant 0 : i32
    %c0_i32_0 = arith.constant 0 : i32
    return %arg0, %c0_i32 : i32, i32
  }
  func.func @transform_1(%arg0: i32) -> (i32, i32) {
    %c0_i32 = arith.constant 0 : i32
    %c0_i32_0 = arith.constant 0 : i32
    %c0_i32_1 = arith.constant 0 : i32
    return %c0_i32, %c0_i32_0 : i32, i32
  }
  func.func @transform_2(%arg0: i32) -> (i32, i32) {
    %c0_i32 = arith.constant 0 : i32
    %c0_i32_0 = arith.constant 0 : i32
    %c0_i32_1 = arith.constant 0 : i32
    return %c0_i32, %c0_i32_0 : i32, i32
  }
  func.func @transform_3(%arg0: i32) -> (i32, i32) {
    %c0_i32 = arith.constant 0 : i32
    %c0_i32_0 = arith.constant 0 : i32
    %c0_i32_1 = arith.constant 0 : i32
    return %c0_i32, %c0_i32_0 : i32, i32
  }
  func.func @transform_4(%arg0: i32) -> (i32, i32) {
    %c0_i32 = arith.constant 0 : i32
    %c0_i32_0 = arith.constant 0 : i32
    %c0_i32_1 = arith.constant 0 : i32
    return %c0_i32, %c0_i32_0 : i32, i32
  }
  func.func @transform_5(%arg0: i32) -> (i32, i32) {
    %c0_i32 = arith.constant 0 : i32
    %c0_i32_0 = arith.constant 0 : i32
    return %arg0, %c0_i32 : i32, i32
  }
}

</mosaic_0001>

<bundles_post_ra>
// kernel: net_forward.5
= control target key start
LH: loop header
LB: loop body
LE: loop exit
PB: predicated region body
PF: predicated region fallthrough
CT: control target
= control target key end

     0   :  { %s1317_s12 = smov 0   ;;  %s1682_s0 = inlined_call_operand.vmem [shape: f32[1536,25], index: 0, kind: input, shape index: {}]   ;;  %s1683_s1 = inlined_call_operand.vmem [shape: f32[25,32], index: 1, kind: input, shape index: {}]   ;;  %s1684_s2 = inlined_call_operand.vmem [shape: f32[1,32], index: 2, kind: input, shape index: {}]   ;;  %s1685_s3 = inlined_call_operand.vmem [shape: f32[1536,32], index: 3, kind: output, shape index: {}]  }
   0x1 LB: > { %s1016_s13 = sadd.s32 4294967295, %s1294_s12   ;;  %p1020_p0 = scmp.ge.s32.totalorder %s1294_s12, 1  ;;  %s1294_s12 = sphi %s1317_s12, %s13_s12  }
   0x2   : > { %p138_p1 = scmp.lt.s32.totalorder %s1294_s12, 4 }
   0x4   : > { %p139_p2 = pnand %p1020_p0, %p138_p1 }
   0x5   : > { %v238_v0 = vld [vmem:[%s1683_s1] sm:$0xff] (!%p139_p2)  ;;  %v239_v1 = vld [vmem:[%s1683_s1 + $0x8] sm:$0xff] (!%p139_p2)  ;;  %v240_v2 = vld [vmem:[%s1683_s1 + $0x10] sm:$0xff] (!%p139_p2)  ;;  %vm442_vm0 = vcmask (!%p139_p2), 1040384   ;;  %s1021_s20 = sshll.u32 (!%p139_p2), %s1016_s13, 6  ;;  %vm1296_vm1 = vmmov (!%p139_p2), 1  }
   0x6   : > { %142 = sbr.rel (%p139_p2) target bundleno = 297 (0x129), region = 32  ;;  %v1265_v3 = vpack.c.bf16 (!%p139_p2), %v239_v1, %v238_v0  ;;  %v241_v4 = vld [vmem:[%s1683_s1 + $0x18] sm:$0x1] (!%p139_p2)  ;;  %p163_p3 = scmp.lt.s32.totalorder (!%p139_p2), %s1021_s20, 191  ;;  %vm1270_vm2 = vmpackc.low (!%p139_p2), %vm442_vm0, %vm1296_vm1  ;;  %vm249_vm3 = vcmask (!%p139_p2), 203776   ;;  %vm895_vm4 = vcmask (!%p139_p2), 261120  }
   0x7   : > { %v1269_v5 = vpack.c.bf16 (!%p139_p2), %v241_v4, %v240_v2 }
   0x8   : > { %1266 = vmatprep.subr.bf16.mxu0 (!%p139_p2), %v1265_v3  ;;  %1275 = vmatprep.subr.bf16.mxu1 (!%p139_p2), %v1265_v3 }
   0x9   : > { %1268 = vmatpush3.bf16.msra.mxu0 (!%p139_p2), %v1265_v3  ;;  %1277 = vmatpush3.bf16.msra.mxu1 (!%p139_p2), %v1265_v3 }
   0xa   : > { %1271 = vmatprep.subr.msk.bf16.mxu0 (!%p139_p2), %vm1270_vm2, %v1269_v5  ;;  %1276 = vmatprep.subr.msk.bf16.mxu1 (!%p139_p2), %vm1270_vm2, %v1269_v5 }
   0xd   : > { %s1687_s20 = smov (!%p163_p3, %s1021_s20), 191  ;;  %1274 = vmatpush3.bf16.msk.msra.mxu0 %vm1270_vm2, %v1269_v5  ;;  %1278 = vmatpush3.bf16.msk.msra.mxu1 %vm1270_vm2, %v1269_v5 }
   0xe   : > { %s1022_s23 = sshll.u32 %s1687_s20, 3 }
   0xf   : > { %s1345_s26 = scalar_lea.vmem %s1682_s0, %s1022_s23  ;;  %s1487_s4 = scalar_lea.vmem %s1685_s3, %s1022_s23 }
  0x10   : > { %v174_v6 = vld [vmem:[%s1345_s26] sm:$0xff]  ;;  %v175_v8 = vld [vmem:[%s1345_s26 + $0x8] sm:$0xff]  ;;  %v176_v10 = vld [vmem:[%s1345_s26 + $0x10] sm:$0xff] }
  0x11   : > { %v206_v7 = vld [vmem:[%s1345_s26 + $0x100] sm:$0xff]  ;;  %v207_v9 = vld [vmem:[%s1345_s26 + $0x108] sm:$0xff]  ;;  %1169 = vmatprep.mubr.msk.f32.mxu0 %vm249_vm3, %v174_v6  ;;  %v208_v11 = vld [vmem:[%s1345_s26 + $0x110] sm:$0xff] }
  0x12   : > { %1217 = vmatprep.mubr.msk.f32.mxu1 %vm249_vm3, %v206_v7  ;;  %1170 = vmatmul.mubr.msk.f32.vlgmr.msra.gmra.mrb[0].mxu0 %vm249_vm3, %v175_v8  ;;  %v177_v12 = vld [vmem:[%s1345_s26 + $0x18] sm:$0xff]  ;;  %v178_v14 = vld [vmem:[%s1345_s26 + $0x20] sm:$0xff]  ;;  %v179_v16 = vld [vmem:[%s1345_s26 + $0x28] sm:$0xff] }
  0x13   : > { %1218 = vmatmul.mubr.msk.f32.vlgmr.msra.gmra.mrb[0].mxu1 %vm249_vm3, %v207_v9  ;;  %1172 = vmatprep.mubr.msk.f32.mxu0 %vm249_vm3, %v176_v10  ;;  %v209_v13 = vld [vmem:[%s1345_s26 + $0x118] sm:$0xff]  ;;  %v210_v15 = vld [vmem:[%s1345_s26 + $0x120] sm:$0xff]  ;;  %v211_v17 = vld [vmem:[%s1345_s26 + $0x128] sm:$0xff] }
  0x14   : > { %1220 = vmatprep.mubr.msk.f32.mxu1 %vm249_vm3, %v208_v11  ;;  %v180_v18 = vld [vmem:[%s1345_s26 + $0x30] sm:$0xff]  ;;  %v181_v20 = vld [vmem:[%s1345_s26 + $0x38] sm:$0xff]  ;;  %v182_v22 = vld [vmem:[%s1345_s26 + $0x40] sm:$0xff] }
  0x15   : > { %v212_v19 = vld [vmem:[%s1345_s26 + $0x130] sm:$0xff]  ;;  %v213_v21 = vld [vmem:[%s1345_s26 + $0x138] sm:$0xff]  ;;  %v214_v23 = vld [vmem:[%s1345_s26 + $0x140] sm:$0xff] }
  0x16   : > { %1173 = vmatmul.mubr.msk.f32.gmra.mrb[2].mxu0 %vm249_vm3, %v177_v12  ;;  %v183_v24 = vld [vmem:[%s1345_s26 + $0x48] sm:$0xff]  ;;  %v184_v26 = vld [vmem:[%s1345_s26 + $0x50] sm:$0xff]  ;;  %v185_v28 = vld [vmem:[%s1345_s26 + $0x58] sm:$0xff] }
  0x17   : > { %1221 = vmatmul.mubr.msk.f32.gmra.mrb[2].mxu1 %vm249_vm3, %v209_v13  ;;  %1175 = vmatprep.mubr.msk.f32.mxu0 %vm249_vm3, %v178_v14  ;;  %v215_v25 = vld [vmem:[%s1345_s26 + $0x148] sm:$0xff]  ;;  %v216_v27 = vld [vmem:[%s1345_s26 + $0x150] sm:$0xff]  ;;  %v217_v29 = vld [vmem:[%s1345_s26 + $0x158] sm:$0xff] }
  0x18   : > { %1223 = vmatprep.mubr.msk.f32.mxu1 %vm249_vm3, %v210_v15  ;;  %v186_v30 = vld [vmem:[%s1345_s26 + $0x60] sm:$0xff]  ;;  %v187_v32 = vld [vmem:[%s1345_s26 + $0x68] sm:$0xff]  ;;  %v188_v34 = vld [vmem:[%s1345_s26 + $0x70] sm:$0xff] }
  0x19   : > { %v218_v31 = vld [vmem:[%s1345_s26 + $0x160] sm:$0xff]  ;;  %v219_v33 = vld [vmem:[%s1345_s26 + $0x168] sm:$0xff]  ;;  %v220_v35 = vld [vmem:[%s1345_s26 + $0x170] sm:$0xff] }
  0x1a   : > { %1176 = vmatmul.mubr.msk.f32.gmra.mrb[4].mxu0 %vm249_vm3, %v179_v16  ;;  %v189_v36 = vld [vmem:[%s1345_s26 + $0x78] sm:$0xff]  ;;  %v190_v38 = vld [vmem:[%s1345_s26 + $0x80] sm:$0xff]  ;;  %v191_v40 = vld [vmem:[%s1345_s26 + $0x88] sm:$0xff] }
  0x1b   : > { %1224 = vmatmul.mubr.msk.f32.gmra.mrb[4].mxu1 %vm249_vm3, %v211_v17  ;;  %1178 = vmatprep.mubr.msk.f32.mxu0 %vm249_vm3, %v180_v18  ;;  %v221_v37 = vld [vmem:[%s1345_s26 + $0x178] sm:$0xff]  ;;  %v222_v39 = vld [vmem:[%s1345_s26 + $0x180] sm:$0xff]  ;;  %v223_v41 = vld [vmem:[%s1345_s26 + $0x188] sm:$0xff] }
  0x1c   : > { %1226 = vmatprep.mubr.msk.f32.mxu1 %vm249_vm3, %v212_v19  ;;  %v192_v42 = vld [vmem:[%s1345_s26 + $0x90] sm:$0xff]  ;;  %v193_v44 = vld [vmem:[%s1345_s26 + $0x98] sm:$0xff]  ;;  %v194_v46 = vld [vmem:[%s1345_s26 + $0xa0] sm:$0xff] }
  0x1d   : > { %v224_v43 = vld [vmem:[%s1345_s26 + $0x190] sm:$0xff]  ;;  %v225_v45 = vld [vmem:[%s1345_s26 + $0x198] sm:$0xff]  ;;  %v226_v47 = vld [vmem:[%s1345_s26 + $0x1a0] sm:$0xff] }
  0x1e   : > { %1179 = vmatmul.mubr.msk.f32.gmra.mrb[6].mxu0 %vm249_vm3, %v181_v20  ;;  %v195_v48 = vld [vmem:[%s1345_s26 + $0xa8] sm:$0xff]  ;;  %v196_v50 = vld [vmem:[%s1345_s26 + $0xb0] sm:$0xff]  ;;  %v197_v52 = vld [vmem:[%s1345_s26 + $0xb8] sm:$0xff] }
  0x1f   : > { %1227 = vmatmul.mubr.msk.f32.gmra.mrb[6].mxu1 %vm249_vm3, %v213_v21  ;;  %1181 = vmatprep.mubr.msk.f32.mxu0 %vm249_vm3, %v182_v22  ;;  %v227_v49 = vld [vmem:[%s1345_s26 + $0x1a8] sm:$0xff]  ;;  %v228_v51 = vld [vmem:[%s1345_s26 + $0x1b0] sm:$0xff]  ;;  %v229_v53 = vld [vmem:[%s1345_s26 + $0x1b8] sm:$0xff] }
  0x20   : > { %1229 = vmatprep.mubr.msk.f32.mxu1 %vm249_vm3, %v214_v23  ;;  %v198_v54 = vld [vmem:[%s1345_s26 + $0xc0] sm:$0xff]  ;;  %v199_v56 = vld [vmem:[%s1345_s26 + $0xc8] sm:$0xff]  ;;  %v200_v58 = vld [vmem:[%s1345_s26 + $0xd0] sm:$0xff] }
  0x21   : > { %v230_v55 = vld [vmem:[%s1345_s26 + $0x1c0] sm:$0xff]  ;;  %v231_v57 = vld [vmem:[%s1345_s26 + $0x1c8] sm:$0xff]  ;;  %v232_v59 = vld [vmem:[%s1345_s26 + $0x1d0] sm:$0xff] }
  0x22   : > { %1182 = vmatmul.mubr.msk.f32.gmra.mrb[8].mxu0 %vm249_vm3, %v183_v24  ;;  %v201_v60 = vld [vmem:[%s1345_s26 + $0xd8] sm:$0xff]  ;;  %v202_v62 = vld [vmem:[%s1345_s26 + $0xe0] sm:$0xff]  ;;  %v203_v0 = vld [vmem:[%s1345_s26 + $0xe8] sm:$0xff] }
  0x23   : > { %1230 = vmatmul.mubr.msk.f32.gmra.mrb[8].mxu1 %vm249_vm3, %v215_v25  ;;  %1184 = vmatprep.mubr.msk.f32.mxu0 %vm249_vm3, %v184_v26  ;;  %v233_v61 = vld [vmem:[%s1345_s26 + $0x1d8] sm:$0xff]  ;;  %v234_v63 = vld [vmem:[%s1345_s26 + $0x1e0] sm:$0xff]  ;;  %v235_v1 = vld [vmem:[%s1345_s26 + $0x1e8] sm:$0xff] }
  0x24   : > { %1232 = vmatprep.mubr.msk.f32.mxu1 %vm249_vm3, %v216_v27  ;;  %v204_v2 = vld [vmem:[%s1345_s26 + $0xf0] sm:$0xff]  ;;  %v205_v4 = vld [vmem:[%s1345_s26 + $0xf8] sm:$0xff]  ;;  %v1478_v6 = vld [vmem:[%s1684_s2] ss:$0 sm:$0xff] }
  0x25   : > { %v236_v3 = vld [vmem:[%s1345_s26 + $0x1f0] sm:$0xff]  ;;  %v237_v5 = vld [vmem:[%s1345_s26 + $0x1f8] sm:$0xff] }
  0x26   : > { %1185 = vmatmul.mubr.msk.f32.gmra.mrb[10].mxu0 %vm249_vm3, %v185_v28 }
  0x27   : > { %1233 = vmatmul.mubr.msk.f32.gmra.mrb[10].mxu1 %vm249_vm3, %v217_v29  ;;  %1187 = vmatprep.mubr.msk.f32.mxu0 %vm249_vm3, %v186_v30 }
  0x28   : > { %1235 = vmatprep.mubr.msk.f32.mxu1 %vm249_vm3, %v218_v31 }
  0x2a   : > { %1188 = vmatmul.mubr.msk.f32.gmra.mrb[12].mxu0 %vm249_vm3, %v187_v32 }
  0x2b   : > { %1236 = vmatmul.mubr.msk.f32.gmra.mrb[12].mxu1 %vm249_vm3, %v219_v33  ;;  %1190 = vmatprep.mubr.msk.f32.mxu0 %vm249_vm3, %v188_v34 }
  0x2c   : > { %1238 = vmatprep.mubr.msk.f32.mxu1 %vm249_vm3, %v220_v35 }
  0x2e   : > { %1191 = vmatmul.mubr.msk.f32.gmra.mrb[14].mxu0 %vm249_vm3, %v189_v36 }
  0x2f   : > { %1239 = vmatmul.mubr.msk.f32.gmra.mrb[14].mxu1 %vm249_vm3, %v221_v37  ;;  %1193 = vmatprep.mubr.msk.f32.mxu0 %vm249_vm3, %v190_v38 }
  0x30   : > { %1241 = vmatprep.mubr.msk.f32.mxu1 %vm249_vm3, %v222_v39 }
  0x32   : > { %1194 = vmatmul.mubr.msk.f32.gmra.mrb[16].mxu0 %vm249_vm3, %v191_v40 }
  0x33   : > { %1242 = vmatmul.mubr.msk.f32.gmra.mrb[16].mxu1 %vm249_vm3, %v223_v41  ;;  %1196 = vmatprep.mubr.msk.f32.mxu0 %vm249_vm3, %v192_v42 }
  0x34   : > { %1244 = vmatprep.mubr.msk.f32.mxu1 %vm249_vm3, %v224_v43 }
  0x36   : > { %1197 = vmatmul.mubr.msk.f32.gmra.mrb[18].mxu0 %vm249_vm3, %v193_v44 }
  0x37   : > { %1245 = vmatmul.mubr.msk.f32.gmra.mrb[18].mxu1 %vm249_vm3, %v225_v45  ;;  %1199 = vmatprep.mubr.msk.f32.mxu0 %vm249_vm3, %v194_v46 }
  0x38   : > { %1247 = vmatprep.mubr.msk.f32.mxu1 %vm249_vm3, %v226_v47 }
  0x3a   : > { %1200 = vmatmul.mubr.msk.f32.gmra.mrb[20].mxu0 %vm249_vm3, %v195_v48 }
  0x3b   : > { %1248 = vmatmul.mubr.msk.f32.gmra.mrb[20].mxu1 %vm249_vm3, %v227_v49  ;;  %1202 = vmatprep.mubr.msk.f32.mxu0 %vm249_vm3, %v196_v50 }
  0x3c   : > { %1250 = vmatprep.mubr.msk.f32.mxu1 %vm249_vm3, %v228_v51 }
  0x3e   : > { %1203 = vmatmul.mubr.msk.f32.gmra.mrb[22].mxu0 %vm249_vm3, %v197_v52 }
  0x3f   : > { %1251 = vmatmul.mubr.msk.f32.gmra.mrb[22].mxu1 %vm249_vm3, %v229_v53  ;;  %1205 = vmatprep.mubr.msk.f32.mxu0 %vm249_vm3, %v198_v54 }
  0x40   : > { %1253 = vmatprep.mubr.msk.f32.mxu1 %vm249_vm3, %v230_v55 }
  0x42   : > { %1206 = vmatmul.mubr.msk.f32.gmra.mrb[24].mxu0 %vm249_vm3, %v199_v56 }
  0x43   : > { %1254 = vmatmul.mubr.msk.f32.gmra.mrb[24].mxu1 %vm249_vm3, %v231_v57  ;;  %1208 = vmatprep.mubr.msk.f32.mxu0 %vm249_vm3, %v200_v58 }
  0x44   : > { %1256 = vmatprep.mubr.msk.f32.mxu1 %vm249_vm3, %v232_v59 }
  0x46   : > { %1209 = vmatmul.mubr.msk.f32.gmra.mrb[26].mxu0 %vm249_vm3, %v201_v60 }
  0x47   : > { %1257 = vmatmul.mubr.msk.f32.gmra.mrb[26].mxu1 %vm249_vm3, %v233_v61  ;;  %1211 = vmatprep.mubr.msk.f32.mxu0 %vm249_vm3, %v202_v62 }
  0x48   : > { %1259 = vmatprep.mubr.msk.f32.mxu1 %vm249_vm3, %v234_v63 }
  0x4a   : > { %1212 = vmatmul.mubr.msk.f32.gmra.mrb[28].mxu0 %vm249_vm3, %v203_v0 }
  0x4b   : > { %1260 = vmatmul.mubr.msk.f32.gmra.mrb[28].mxu1 %vm249_vm3, %v235_v1  ;;  %1214 = vmatprep.mubr.msk.f32.mxu0 %vm249_vm3, %v204_v2 }
  0x4c   : > { %1262 = vmatprep.mubr.msk.f32.mxu1 %vm249_vm3, %v236_v3 }
  0x4e   : > { %1215 = vmatmul.mubr.msk.f32.gmra.mrb[30].mxu0 %vm249_vm3, %v205_v4 }
  0x4f   : > { %1263 = vmatmul.mubr.msk.f32.gmra.mrb[30].mxu1 %vm249_vm3, %v237_v5 }
  0xe5   : > { %v1171_v7 = vpop.f32.mrb[0].mxu0 }
  0xe6   : > { %v1219_v8 = vpop.f32.mrb[0].mxu1  ;;  %v518_v9 = vadd.f32 %v1171_v7, %v1478_v6  ;;  %v512_v11 = vpop.f32.mrb[1].mxu0 }
  0xe7   : > { %v678_v10 = vadd.f32 %v1219_v8, %v1478_v6  ;;  %v672_v12 = vpop.f32.mrb[1].mxu1  ;;  %v513_v13 = vadd.f32 %v1478_v6, %v512_v11 }
  0xe8   : > { %v673_v14 = vadd.f32 %v1478_v6, %v672_v12  ;;  %v832_v15 = vmax.f32 %v518_v9, 0.0 }
  0xe9   : > { %v864_v16 = vmax.f32 %v678_v10, 0.0  ;;  %v831_v17 = vmax.f32 %v513_v13, 0.0  ;;  %v1174_v19 = vpop.f32.mrb[2].mxu0 }
  0xea   : > { %v863_v18 = vmax.f32 %v673_v14, 0.0  ;;  %v1222_v20 = vpop.f32.mrb[2].mxu1  ;;  %897 = vst.msk [vmem:[%s1487_s4 + $0x8] sm:$0xff] %vm895_vm4, %v832_v15  ;;  %v528_v21 = vadd.f32 %v1174_v19, %v1478_v6  ;;  %v522_v23 = vpop.f32.mrb[3].mxu0 }
  0xeb   : > { %929 = vst.msk [vmem:[%s1487_s4 + $0x108] sm:$0xff] %vm895_vm4, %v864_v16  ;;  %v688_v22 = vadd.f32 %v1222_v20, %v1478_v6  ;;  %v682_v24 = vpop.f32.mrb[3].mxu1  ;;  %896 = vst.msk [vmem:[%s1487_s4] sm:$0xff] %vm895_vm4, %v831_v17  ;;  %v523_v25 = vadd.f32 %v1478_v6, %v522_v23 }
  0xec   : > { %928 = vst.msk [vmem:[%s1487_s4 + $0x100] sm:$0xff] %vm895_vm4, %v863_v18  ;;  %v683_v26 = vadd.f32 %v1478_v6, %v682_v24  ;;  %v834_v27 = vmax.f32 %v528_v21, 0.0 }
  0xed   : > { %v866_v28 = vmax.f32 %v688_v22, 0.0  ;;  %v833_v29 = vmax.f32 %v523_v25, 0.0  ;;  %v1177_v31 = vpop.f32.mrb[4].mxu0 }
  0xee   : > { %v865_v30 = vmax.f32 %v683_v26, 0.0  ;;  %v1225_v32 = vpop.f32.mrb[4].mxu1  ;;  %899 = vst.msk [vmem:[%s1487_s4 + $0x18] sm:$0xff] %vm895_vm4, %v834_v27  ;;  %v538_v33 = vadd.f32 %v1177_v31, %v1478_v6  ;;  %v532_v35 = vpop.f32.mrb[5].mxu0 }
  0xef   : > { %931 = vst.msk [vmem:[%s1487_s4 + $0x118] sm:$0xff] %vm895_vm4, %v866_v28  ;;  %v698_v34 = vadd.f32 %v1225_v32, %v1478_v6  ;;  %v692_v36 = vpop.f32.mrb[5].mxu1  ;;  %898 = vst.msk [vmem:[%s1487_s4 + $0x10] sm:$0xff] %vm895_vm4, %v833_v29  ;;  %v533_v37 = vadd.f32 %v1478_v6, %v532_v35 }
  0xf0   : > { %930 = vst.msk [vmem:[%s1487_s4 + $0x110] sm:$0xff] %vm895_vm4, %v865_v30  ;;  %v693_v38 = vadd.f32 %v1478_v6, %v692_v36  ;;  %v836_v39 = vmax.f32 %v538_v33, 0.0 }
  0xf1   : > { %v868_v40 = vmax.f32 %v698_v34, 0.0  ;;  %v835_v41 = vmax.f32 %v533_v37, 0.0  ;;  %v1180_v43 = vpop.f32.mrb[6].mxu0 }
  0xf2   : > { %v867_v42 = vmax.f32 %v693_v38, 0.0  ;;  %v1228_v44 = vpop.f32.mrb[6].mxu1  ;;  %901 = vst.msk [vmem:[%s1487_s4 + $0x28] sm:$0xff] %vm895_vm4, %v836_v39  ;;  %v548_v45 = vadd.f32 %v1180_v43, %v1478_v6  ;;  %v542_v47 = vpop.f32.mrb[7].mxu0 }
  0xf3   : > { %933 = vst.msk [vmem:[%s1487_s4 + $0x128] sm:$0xff] %vm895_vm4, %v868_v40  ;;  %v708_v46 = vadd.f32 %v1228_v44, %v1478_v6  ;;  %v702_v48 = vpop.f32.mrb[7].mxu1  ;;  %900 = vst.msk [vmem:[%s1487_s4 + $0x20] sm:$0xff] %vm895_vm4, %v835_v41  ;;  %v543_v49 = vadd.f32 %v1478_v6, %v542_v47 }
  0xf4   : > { %932 = vst.msk [vmem:[%s1487_s4 + $0x120] sm:$0xff] %vm895_vm4, %v867_v42  ;;  %v703_v50 = vadd.f32 %v1478_v6, %v702_v48  ;;  %v838_v51 = vmax.f32 %v548_v45, 0.0 }
  0xf5   : > { %v870_v52 = vmax.f32 %v708_v46, 0.0  ;;  %v837_v53 = vmax.f32 %v543_v49, 0.0  ;;  %v1183_v55 = vpop.f32.mrb[8].mxu0 }
  0xf6   : > { %v869_v54 = vmax.f32 %v703_v50, 0.0  ;;  %v1231_v56 = vpop.f32.mrb[8].mxu1  ;;  %903 = vst.msk [vmem:[%s1487_s4 + $0x38] sm:$0xff] %vm895_vm4, %v838_v51  ;;  %v558_v57 = vadd.f32 %v1183_v55, %v1478_v6  ;;  %v552_v59 = vpop.f32.mrb[9].mxu0 }
  0xf7   : > { %935 = vst.msk [vmem:[%s1487_s4 + $0x138] sm:$0xff] %vm895_vm4, %v870_v52  ;;  %v718_v58 = vadd.f32 %v1231_v56, %v1478_v6  ;;  %v712_v60 = vpop.f32.mrb[9].mxu1  ;;  %902 = vst.msk [vmem:[%s1487_s4 + $0x30] sm:$0xff] %vm895_vm4, %v837_v53  ;;  %v553_v61 = vadd.f32 %v1478_v6, %v552_v59 }
  0xf8   : > { %934 = vst.msk [vmem:[%s1487_s4 + $0x130] sm:$0xff] %vm895_vm4, %v869_v54  ;;  %v713_v62 = vadd.f32 %v1478_v6, %v712_v60  ;;  %v840_v63 = vmax.f32 %v558_v57, 0.0 }
  0xf9   : > { %v872_v0 = vmax.f32 %v718_v58, 0.0  ;;  %v839_v1 = vmax.f32 %v553_v61, 0.0  ;;  %v1186_v3 = vpop.f32.mrb[10].mxu0 }
  0xfa   : > { %v871_v2 = vmax.f32 %v713_v62, 0.0  ;;  %v1234_v4 = vpop.f32.mrb[10].mxu1  ;;  %905 = vst.msk [vmem:[%s1487_s4 + $0x48] sm:$0xff] %vm895_vm4, %v840_v63  ;;  %v568_v5 = vadd.f32 %v1186_v3, %v1478_v6  ;;  %v562_v8 = vpop.f32.mrb[11].mxu0 }
  0xfb   : > { %937 = vst.msk [vmem:[%s1487_s4 + $0x148] sm:$0xff] %vm895_vm4, %v872_v0  ;;  %v728_v7 = vadd.f32 %v1234_v4, %v1478_v6  ;;  %v722_v9 = vpop.f32.mrb[11].mxu1  ;;  %904 = vst.msk [vmem:[%s1487_s4 + $0x40] sm:$0xff] %vm895_vm4, %v839_v1  ;;  %v563_v10 = vadd.f32 %v1478_v6, %v562_v8 }
  0xfc   : > { %936 = vst.msk [vmem:[%s1487_s4 + $0x140] sm:$0xff] %vm895_vm4, %v871_v2  ;;  %v723_v11 = vadd.f32 %v1478_v6, %v722_v9  ;;  %v842_v12 = vmax.f32 %v568_v5, 0.0 }
  0xfd   : > { %v874_v13 = vmax.f32 %v728_v7, 0.0  ;;  %v841_v14 = vmax.f32 %v563_v10, 0.0  ;;  %v1189_v16 = vpop.f32.mrb[12].mxu0 }
  0xfe   : > { %v873_v15 = vmax.f32 %v723_v11, 0.0  ;;  %v1237_v17 = vpop.f32.mrb[12].mxu1  ;;  %907 = vst.msk [vmem:[%s1487_s4 + $0x58] sm:$0xff] %vm895_vm4, %v842_v12  ;;  %v578_v18 = vadd.f32 %v1189_v16, %v1478_v6  ;;  %v572_v20 = vpop.f32.mrb[13].mxu0 }
  0xff   : > { %939 = vst.msk [vmem:[%s1487_s4 + $0x158] sm:$0xff] %vm895_vm4, %v874_v13  ;;  %v738_v19 = vadd.f32 %v1237_v17, %v1478_v6  ;;  %v732_v21 = vpop.f32.mrb[13].mxu1  ;;  %906 = vst.msk [vmem:[%s1487_s4 + $0x50] sm:$0xff] %vm895_vm4, %v841_v14  ;;  %v573_v22 = vadd.f32 %v1478_v6, %v572_v20 }
 0x100   : > { %938 = vst.msk [vmem:[%s1487_s4 + $0x150] sm:$0xff] %vm895_vm4, %v873_v15  ;;  %v733_v23 = vadd.f32 %v1478_v6, %v732_v21  ;;  %v844_v24 = vmax.f32 %v578_v18, 0.0 }
 0x101   : > { %v876_v25 = vmax.f32 %v738_v19, 0.0  ;;  %v843_v26 = vmax.f32 %v573_v22, 0.0  ;;  %v1192_v28 = vpop.f32.mrb[14].mxu0 }
 0x102   : > { %v875_v27 = vmax.f32 %v733_v23, 0.0  ;;  %v1240_v29 = vpop.f32.mrb[14].mxu1  ;;  %909 = vst.msk [vmem:[%s1487_s4 + $0x68] sm:$0xff] %vm895_vm4, %v844_v24  ;;  %v588_v30 = vadd.f32 %v1192_v28, %v1478_v6  ;;  %v582_v32 = vpop.f32.mrb[15].mxu0 }
 0x103   : > { %941 = vst.msk [vmem:[%s1487_s4 + $0x168] sm:$0xff] %vm895_vm4, %v876_v25  ;;  %v748_v31 = vadd.f32 %v1240_v29, %v1478_v6  ;;  %v742_v33 = vpop.f32.mrb[15].mxu1  ;;  %908 = vst.msk [vmem:[%s1487_s4 + $0x60] sm:$0xff] %vm895_vm4, %v843_v26  ;;  %v583_v34 = vadd.f32 %v1478_v6, %v582_v32 }
 0x104   : > { %940 = vst.msk [vmem:[%s1487_s4 + $0x160] sm:$0xff] %vm895_vm4, %v875_v27  ;;  %v743_v35 = vadd.f32 %v1478_v6, %v742_v33  ;;  %v846_v36 = vmax.f32 %v588_v30, 0.0 }
 0x105   : > { %v878_v37 = vmax.f32 %v748_v31, 0.0  ;;  %v845_v38 = vmax.f32 %v583_v34, 0.0  ;;  %v1195_v40 = vpop.f32.mrb[16].mxu0 }
 0x106   : > { %v877_v39 = vmax.f32 %v743_v35, 0.0  ;;  %v1243_v41 = vpop.f32.mrb[16].mxu1  ;;  %911 = vst.msk [vmem:[%s1487_s4 + $0x78] sm:$0xff] %vm895_vm4, %v846_v36  ;;  %v598_v42 = vadd.f32 %v1195_v40, %v1478_v6  ;;  %v592_v44 = vpop.f32.mrb[17].mxu0 }
 0x107   : > { %943 = vst.msk [vmem:[%s1487_s4 + $0x178] sm:$0xff] %vm895_vm4, %v878_v37  ;;  %v758_v43 = vadd.f32 %v1243_v41, %v1478_v6  ;;  %v752_v45 = vpop.f32.mrb[17].mxu1  ;;  %910 = vst.msk [vmem:[%s1487_s4 + $0x70] sm:$0xff] %vm895_vm4, %v845_v38  ;;  %v593_v46 = vadd.f32 %v1478_v6, %v592_v44 }
 0x108   : > { %942 = vst.msk [vmem:[%s1487_s4 + $0x170] sm:$0xff] %vm895_vm4, %v877_v39  ;;  %v753_v47 = vadd.f32 %v1478_v6, %v752_v45  ;;  %v848_v48 = vmax.f32 %v598_v42, 0.0 }
 0x109   : > { %v880_v49 = vmax.f32 %v758_v43, 0.0  ;;  %v847_v50 = vmax.f32 %v593_v46, 0.0  ;;  %v1198_v52 = vpop.f32.mrb[18].mxu0 }
 0x10a   : > { %v879_v51 = vmax.f32 %v753_v47, 0.0  ;;  %v1246_v53 = vpop.f32.mrb[18].mxu1  ;;  %913 = vst.msk [vmem:[%s1487_s4 + $0x88] sm:$0xff] %vm895_vm4, %v848_v48  ;;  %v608_v54 = vadd.f32 %v1198_v52, %v1478_v6  ;;  %v602_v56 = vpop.f32.mrb[19].mxu0 }
 0x10b   : > { %945 = vst.msk [vmem:[%s1487_s4 + $0x188] sm:$0xff] %vm895_vm4, %v880_v49  ;;  %v768_v55 = vadd.f32 %v1246_v53, %v1478_v6  ;;  %v762_v57 = vpop.f32.mrb[19].mxu1  ;;  %912 = vst.msk [vmem:[%s1487_s4 + $0x80] sm:$0xff] %vm895_vm4, %v847_v50  ;;  %v603_v58 = vadd.f32 %v1478_v6, %v602_v56 }
 0x10c   : > { %944 = vst.msk [vmem:[%s1487_s4 + $0x180] sm:$0xff] %vm895_vm4, %v879_v51  ;;  %v763_v59 = vadd.f32 %v1478_v6, %v762_v57  ;;  %v850_v60 = vmax.f32 %v608_v54, 0.0 }
 0x10d   : > { %v882_v61 = vmax.f32 %v768_v55, 0.0  ;;  %v849_v62 = vmax.f32 %v603_v58, 0.0  ;;  %v1201_v0 = vpop.f32.mrb[20].mxu0 }
 0x10e   : > { %v881_v63 = vmax.f32 %v763_v59, 0.0  ;;  %v1249_v1 = vpop.f32.mrb[20].mxu1  ;;  %915 = vst.msk [vmem:[%s1487_s4 + $0x98] sm:$0xff] %vm895_vm4, %v850_v60  ;;  %v618_v2 = vadd.f32 %v1201_v0, %v1478_v6  ;;  %v612_v4 = vpop.f32.mrb[21].mxu0 }
 0x10f   : > { %947 = vst.msk [vmem:[%s1487_s4 + $0x198] sm:$0xff] %vm895_vm4, %v882_v61  ;;  %v778_v3 = vadd.f32 %v1249_v1, %v1478_v6  ;;  %v772_v5 = vpop.f32.mrb[21].mxu1  ;;  %914 = vst.msk [vmem:[%s1487_s4 + $0x90] sm:$0xff] %vm895_vm4, %v849_v62  ;;  %v613_v7 = vadd.f32 %v1478_v6, %v612_v4 }
 0x110   : > { %946 = vst.msk [vmem:[%s1487_s4 + $0x190] sm:$0xff] %vm895_vm4, %v881_v63  ;;  %v773_v8 = vadd.f32 %v1478_v6, %v772_v5  ;;  %v852_v9 = vmax.f32 %v618_v2, 0.0 }
 0x111   : > { %v884_v10 = vmax.f32 %v778_v3, 0.0  ;;  %v851_v11 = vmax.f32 %v613_v7, 0.0  ;;  %v1204_v13 = vpop.f32.mrb[22].mxu0 }
 0x112   : > { %v883_v12 = vmax.f32 %v773_v8, 0.0  ;;  %v1252_v14 = vpop.f32.mrb[22].mxu1  ;;  %917 = vst.msk [vmem:[%s1487_s4 + $0xa8] sm:$0xff] %vm895_vm4, %v852_v9  ;;  %v628_v15 = vadd.f32 %v1204_v13, %v1478_v6  ;;  %v622_v17 = vpop.f32.mrb[23].mxu0 }
 0x113   : > { %949 = vst.msk [vmem:[%s1487_s4 + $0x1a8] sm:$0xff] %vm895_vm4, %v884_v10  ;;  %v788_v16 = vadd.f32 %v1252_v14, %v1478_v6  ;;  %v782_v18 = vpop.f32.mrb[23].mxu1  ;;  %916 = vst.msk [vmem:[%s1487_s4 + $0xa0] sm:$0xff] %vm895_vm4, %v851_v11  ;;  %v623_v19 = vadd.f32 %v1478_v6, %v622_v17 }
 0x114   : > { %948 = vst.msk [vmem:[%s1487_s4 + $0x1a0] sm:$0xff] %vm895_vm4, %v883_v12  ;;  %v783_v20 = vadd.f32 %v1478_v6, %v782_v18  ;;  %v854_v21 = vmax.f32 %v628_v15, 0.0 }
 0x115   : > { %v886_v22 = vmax.f32 %v788_v16, 0.0  ;;  %v853_v23 = vmax.f32 %v623_v19, 0.0  ;;  %v1207_v25 = vpop.f32.mrb[24].mxu0 }
 0x116   : > { %v885_v24 = vmax.f32 %v783_v20, 0.0  ;;  %v1255_v26 = vpop.f32.mrb[24].mxu1  ;;  %919 = vst.msk [vmem:[%s1487_s4 + $0xb8] sm:$0xff] %vm895_vm4, %v854_v21  ;;  %v638_v27 = vadd.f32 %v1207_v25, %v1478_v6  ;;  %v632_v29 = vpop.f32.mrb[25].mxu0 }
 0x117   : > { %951 = vst.msk [vmem:[%s1487_s4 + $0x1b8] sm:$0xff] %vm895_vm4, %v886_v22  ;;  %v798_v28 = vadd.f32 %v1255_v26, %v1478_v6  ;;  %v792_v30 = vpop.f32.mrb[25].mxu1  ;;  %918 = vst.msk [vmem:[%s1487_s4 + $0xb0] sm:$0xff] %vm895_vm4, %v853_v23  ;;  %v633_v31 = vadd.f32 %v1478_v6, %v632_v29 }
 0x118   : > { %950 = vst.msk [vmem:[%s1487_s4 + $0x1b0] sm:$0xff] %vm895_vm4, %v885_v24  ;;  %v793_v32 = vadd.f32 %v1478_v6, %v792_v30  ;;  %v856_v33 = vmax.f32 %v638_v27, 0.0 }
 0x119   : > { %v888_v34 = vmax.f32 %v798_v28, 0.0  ;;  %v855_v35 = vmax.f32 %v633_v31, 0.0  ;;  %v1210_v37 = vpop.f32.mrb[26].mxu0 }
 0x11a   : > { %v887_v36 = vmax.f32 %v793_v32, 0.0  ;;  %v1258_v38 = vpop.f32.mrb[26].mxu1  ;;  %921 = vst.msk [vmem:[%s1487_s4 + $0xc8] sm:$0xff] %vm895_vm4, %v856_v33  ;;  %v648_v39 = vadd.f32 %v1210_v37, %v1478_v6  ;;  %v642_v41 = vpop.f32.mrb[27].mxu0 }
 0x11b   : > { %953 = vst.msk [vmem:[%s1487_s4 + $0x1c8] sm:$0xff] %vm895_vm4, %v888_v34  ;;  %v808_v40 = vadd.f32 %v1258_v38, %v1478_v6  ;;  %v802_v42 = vpop.f32.mrb[27].mxu1  ;;  %920 = vst.msk [vmem:[%s1487_s4 + $0xc0] sm:$0xff] %vm895_vm4, %v855_v35  ;;  %v643_v43 = vadd.f32 %v1478_v6, %v642_v41 }
 0x11c   : > { %952 = vst.msk [vmem:[%s1487_s4 + $0x1c0] sm:$0xff] %vm895_vm4, %v887_v36  ;;  %v803_v44 = vadd.f32 %v1478_v6, %v802_v42  ;;  %v858_v45 = vmax.f32 %v648_v39, 0.0 }
 0x11d   : > { %v890_v46 = vmax.f32 %v808_v40, 0.0  ;;  %v857_v47 = vmax.f32 %v643_v43, 0.0  ;;  %v1213_v49 = vpop.f32.mrb[28].mxu0 }
 0x11e   : > { %v889_v48 = vmax.f32 %v803_v44, 0.0  ;;  %v1261_v50 = vpop.f32.mrb[28].mxu1  ;;  %923 = vst.msk [vmem:[%s1487_s4 + $0xd8] sm:$0xff] %vm895_vm4, %v858_v45  ;;  %v658_v51 = vadd.f32 %v1213_v49, %v1478_v6  ;;  %v652_v53 = vpop.f32.mrb[29].mxu0 }
 0x11f   : > { %955 = vst.msk [vmem:[%s1487_s4 + $0x1d8] sm:$0xff] %vm895_vm4, %v890_v46  ;;  %v818_v52 = vadd.f32 %v1261_v50, %v1478_v6  ;;  %v812_v54 = vpop.f32.mrb[29].mxu1  ;;  %922 = vst.msk [vmem:[%s1487_s4 + $0xd0] sm:$0xff] %vm895_vm4, %v857_v47  ;;  %v653_v55 = vadd.f32 %v1478_v6, %v652_v53 }
 0x120   : > { %954 = vst.msk [vmem:[%s1487_s4 + $0x1d0] sm:$0xff] %vm895_vm4, %v889_v48  ;;  %v813_v56 = vadd.f32 %v1478_v6, %v812_v54  ;;  %v860_v57 = vmax.f32 %v658_v51, 0.0 }
 0x121   : > { %v892_v58 = vmax.f32 %v818_v52, 0.0  ;;  %v859_v59 = vmax.f32 %v653_v55, 0.0  ;;  %v1216_v61 = vpop.f32.mrb[30].mxu0 }
 0x122   : > { %v891_v60 = vmax.f32 %v813_v56, 0.0  ;;  %v1264_v62 = vpop.f32.mrb[30].mxu1  ;;  %925 = vst.msk [vmem:[%s1487_s4 + $0xe8] sm:$0xff] %vm895_vm4, %v860_v57  ;;  %v668_v63 = vadd.f32 %v1216_v61, %v1478_v6  ;;  %v662_v1 = vpop.f32.mrb[31].mxu0 }
 0x123   : > { %957 = vst.msk [vmem:[%s1487_s4 + $0x1e8] sm:$0xff] %vm895_vm4, %v892_v58  ;;  %v828_v0 = vadd.f32 %v1264_v62, %v1478_v6  ;;  %v822_v2 = vpop.f32.mrb[31].mxu1  ;;  %924 = vst.msk [vmem:[%s1487_s4 + $0xe0] sm:$0xff] %vm895_vm4, %v859_v59  ;;  %v663_v3 = vadd.f32 %v1478_v6, %v662_v1 }
 0x124   : > { %956 = vst.msk [vmem:[%s1487_s4 + $0x1e0] sm:$0xff] %vm895_vm4, %v891_v60  ;;  %v823_v4 = vadd.f32 %v1478_v6, %v822_v2  ;;  %v862_v5 = vmax.f32 %v668_v63, 0.0 }
 0x125   : > { %v894_v7 = vmax.f32 %v828_v0, 0.0  ;;  %v861_v8 = vmax.f32 %v663_v3, 0.0 }
 0x126   : > { %v893_v9 = vmax.f32 %v823_v4, 0.0  ;;  %927 = vst.msk [vmem:[%s1487_s4 + $0xf8] sm:$0xff] %vm895_vm4, %v862_v5 }
 0x127   : > { %959 = vst.msk [vmem:[%s1487_s4 + $0x1f8] sm:$0xff] %vm895_vm4, %v894_v7  ;;  %926 = vst.msk [vmem:[%s1487_s4 + $0xf0] sm:$0xff] %vm895_vm4, %v861_v8 }
 0x128   : > { %958 = vst.msk [vmem:[%s1487_s4 + $0x1f0] sm:$0xff] %vm895_vm4, %v893_v9 }
 0x129 PF: > { %s13_s12 = sadd.s32 1, %s1294_s12  }
 0x12a   : > { %p10_p4 = scmp.ge.s32.totalorder %s13_s12, 5  }
 0x12c   :  { %12 = sbr.rel (!%p10_p4) target bundleno = 1 (0x1), region = 62 }

// kernel: net_forward.6
= control target key start
LH: loop header
LB: loop body
LE: loop exit
PB: predicated region body
PF: predicated region fallthrough
CT: control target
= control target key end

     0   :  { %s253_s0 = inlined_call_operand.vmem [shape: f32[24,384], index: 0, kind: input, shape index: {}]   ;;  %s254_s1 = inlined_call_operand.vmem [shape: f32[24,384], index: 1, kind: input, shape index: {}]   ;;  %s255_s2 = inlined_call_operand.vmem [shape: f32[24,384], index: 2, kind: input, shape index: {}]   ;;  %s256_s3 = inlined_call_operand.vmem [shape: f32[24,384], index: 3, kind: input, shape index: {}]   ;;  %s257_s4 = inlined_call_operand.vmem [shape: f32[24,384], index: 4, kind: output, shape index: {}]  }
   0x1   :  { %v17_v0 = vld [vmem:[%s253_s0] sm:$0xff]  ;;  %v18_v5 = vld [vmem:[%s253_s0 + $0x8] sm:$0xff]  ;;  %v19_v11 = vld [vmem:[%s253_s0 + $0x10] sm:$0xff] }
   0x2   :  { %v26_v1 = vld [vmem:[%s254_s1] sm:$0xff]  ;;  %v27_v6 = vld [vmem:[%s254_s1 + $0x8] sm:$0xff]  ;;  %v28_v13 = vld [vmem:[%s254_s1 + $0x10] sm:$0xff] }
   0x3   :  { %v44_v2 = vld [vmem:[%s255_s2] sm:$0xff]  ;;  %v35_v3 = vmax.f32 %v17_v0, %v26_v1  ;;  %v36_v8 = vmax.f32 %v18_v5, %v27_v6  ;;  %v45_v9 = vld [vmem:[%s255_s2 + $0x8] sm:$0xff]  ;;  %v46_v14 = vld [vmem:[%s255_s2 + $0x10] sm:$0xff]  ;;  %v37_v17 = vmax.f32 %v19_v11, %v28_v13 }
   0x4   :  { %v53_v4 = vld [vmem:[%s256_s3] sm:$0xff]  ;;  %v54_v10 = vld [vmem:[%s256_s3 + $0x8] sm:$0xff]  ;;  %v55_v15 = vld [vmem:[%s256_s3 + $0x10] sm:$0xff] }
   0x5   :  { %v62_v7 = vmax.f32 %v44_v2, %v53_v4  ;;  %v63_v12 = vmax.f32 %v45_v9, %v54_v10  ;;  %v64_v18 = vmax.f32 %v46_v14, %v55_v15  ;;  %v20_v19 = vld [vmem:[%s253_s0 + $0x18] sm:$0xff]  ;;  %v21_v25 = vld [vmem:[%s253_s0 + $0x20] sm:$0xff]  ;;  %v22_v32 = vld [vmem:[%s253_s0 + $0x28] sm:$0xff] }
   0x6   :  { %v29_v20 = vld [vmem:[%s254_s1 + $0x18] sm:$0xff]  ;;  %v30_v26 = vld [vmem:[%s254_s1 + $0x20] sm:$0xff]  ;;  %v31_v34 = vld [vmem:[%s254_s1 + $0x28] sm:$0xff] }
   0x7   :  { %v71_v16 = vmax.f32 %v35_v3, %v62_v7  ;;  %v47_v21 = vld [vmem:[%s255_s2 + $0x18] sm:$0xff]  ;;  %v72_v22 = vmax.f32 %v36_v8, %v63_v12  ;;  %v38_v23 = vmax.f32 %v20_v19, %v29_v20  ;;  %v73_v27 = vmax.f32 %v37_v17, %v64_v18  ;;  %v48_v30 = vld [vmem:[%s255_s2 + $0x20] sm:$0xff]  ;;  %v49_v35 = vld [vmem:[%s255_s2 + $0x28] sm:$0xff] }
   0x8   :  { %v56_v24 = vld [vmem:[%s256_s3 + $0x18] sm:$0xff]  ;;  %v39_v29 = vmax.f32 %v21_v25, %v30_v26  ;;  %v57_v31 = vld [vmem:[%s256_s3 + $0x20] sm:$0xff]  ;;  %v58_v36 = vld [vmem:[%s256_s3 + $0x28] sm:$0xff]  ;;  %v40_v38 = vmax.f32 %v22_v32, %v31_v34 }
   0x9   :  { %80 = vst [vmem:[%s257_s4] sm:$0xff] %v71_v16  ;;  %v65_v28 = vmax.f32 %v47_v21, %v56_v24  ;;  %81 = vst [vmem:[%s257_s4 + $0x8] sm:$0xff] %v72_v22  ;;  %v66_v33 = vmax.f32 %v48_v30, %v57_v31  ;;  %v67_v39 = vmax.f32 %v49_v35, %v58_v36  ;;  %v23_v40 = vld [vmem:[%s253_s0 + $0x30] sm:$0xff]  ;;  %v24_v46 = vld [vmem:[%s253_s0 + $0x38] sm:$0xff] }
   0xa   :  { %82 = vst [vmem:[%s257_s4 + $0x10] sm:$0xff] %v73_v27  ;;  %v32_v41 = vld [vmem:[%s254_s1 + $0x30] sm:$0xff]  ;;  %v33_v47 = vld [vmem:[%s254_s1 + $0x38] sm:$0xff]  ;;  %v25_v53 = vld [vmem:[%s253_s0 + $0x40] sm:$0xff] }
   0xb   :  { %v74_v37 = vmax.f32 %v38_v23, %v65_v28  ;;  %v50_v42 = vld [vmem:[%s255_s2 + $0x30] sm:$0xff]  ;;  %v75_v43 = vmax.f32 %v39_v29, %v66_v33  ;;  %v41_v44 = vmax.f32 %v23_v40, %v32_v41  ;;  %v76_v48 = vmax.f32 %v40_v38, %v67_v39  ;;  %v51_v51 = vld [vmem:[%s255_s2 + $0x38] sm:$0xff]  ;;  %v34_v55 = vld [vmem:[%s254_s1 + $0x40] sm:$0xff] }
   0xc   :  { %v59_v45 = vld [vmem:[%s256_s3 + $0x30] sm:$0xff]  ;;  %v42_v50 = vmax.f32 %v24_v46, %v33_v47  ;;  %v60_v52 = vld [vmem:[%s256_s3 + $0x38] sm:$0xff]  ;;  %v52_v56 = vld [vmem:[%s255_s2 + $0x40] sm:$0xff]  ;;  %v43_v59 = vmax.f32 %v25_v53, %v34_v55 }
   0xd   :  { %83 = vst [vmem:[%s257_s4 + $0x18] sm:$0xff] %v74_v37  ;;  %v68_v49 = vmax.f32 %v50_v42, %v59_v45  ;;  %84 = vst [vmem:[%s257_s4 + $0x20] sm:$0xff] %v75_v43  ;;  %v69_v54 = vmax.f32 %v51_v51, %v60_v52  ;;  %v61_v57 = vld [vmem:[%s256_s3 + $0x40] sm:$0xff] }
   0xe   :  { %85 = vst [vmem:[%s257_s4 + $0x28] sm:$0xff] %v76_v48  ;;  %v70_v60 = vmax.f32 %v52_v56, %v61_v57 }
   0xf   :  { %v77_v58 = vmax.f32 %v41_v44, %v68_v49  ;;  %v78_v61 = vmax.f32 %v42_v50, %v69_v54 }
  0x10   :  { %v79_v62 = vmax.f32 %v43_v59, %v70_v60 }
  0x11   :  { %86 = vst [vmem:[%s257_s4 + $0x30] sm:$0xff] %v77_v58  ;;  %87 = vst [vmem:[%s257_s4 + $0x38] sm:$0xff] %v78_v61 }
  0x12   :  { %88 = vst [vmem:[%s257_s4 + $0x40] sm:$0xff] %v79_v62 }

// kernel: net_forward.8
= control target key start
LH: loop header
LB: loop body
LE: loop exit
PB: predicated region body
PF: predicated region fallthrough
CT: control target
= control target key end

     0   :  { %s92_s0 = inlined_call_operand.vmem [shape: f32[8,256], index: 0, kind: input, shape index: {}]   ;;  %s93_s1 = inlined_call_operand.vmem [shape: f32[8,256], index: 1, kind: input, shape index: {}]   ;;  %s94_s2 = inlined_call_operand.vmem [shape: f32[8,256], index: 2, kind: input, shape index: {}]   ;;  %s95_s3 = inlined_call_operand.vmem [shape: f32[8,256], index: 3, kind: input, shape index: {}]   ;;  %s96_s4 = inlined_call_operand.vmem [shape: f32[8,256], index: 4, kind: output, shape index: {}]  }
   0x1   :  { %v17_v0 = vld [vmem:[%s92_s0] sm:$0xff]  ;;  %v18_v5 = vld [vmem:[%s92_s0 + $0x8] sm:$0xff] }
   0x2   :  { %v19_v1 = vld [vmem:[%s93_s1] sm:$0xff]  ;;  %v20_v6 = vld [vmem:[%s93_s1 + $0x8] sm:$0xff] }
   0x3   :  { %v23_v2 = vld [vmem:[%s94_s2] sm:$0xff]  ;;  %v21_v3 = vmax.f32 %v17_v0, %v19_v1  ;;  %v22_v8 = vmax.f32 %v18_v5, %v20_v6  ;;  %v24_v9 = vld [vmem:[%s94_s2 + $0x8] sm:$0xff] }
   0x4   :  { %v25_v4 = vld [vmem:[%s95_s3] sm:$0xff]  ;;  %v26_v10 = vld [vmem:[%s95_s3 + $0x8] sm:$0xff] }
   0x5   :  { %v27_v7 = vmax.f32 %v23_v2, %v25_v4  ;;  %v28_v11 = vmax.f32 %v24_v9, %v26_v10 }
   0x7   :  { %v29_v12 = vmax.f32 %v21_v3, %v27_v7  ;;  %v30_v13 = vmax.f32 %v22_v8, %v28_v11 }
   0x9   :  { %31 = vst [vmem:[%s96_s4] sm:$0xff] %v29_v12  ;;  %32 = vst [vmem:[%s96_s4 + $0x8] sm:$0xff] %v30_v13 }

// kernel: net_forward.7
= control target key start
LH: loop header
LB: loop body
LE: loop exit
PB: predicated region body
PF: predicated region fallthrough
CT: control target
= control target key end

     0   :  { %vm233_vm0 = vcmask 261120   ;;  %vm878_vm1 = vcmask 523264   ;;  %s2137_s1 = inlined_call_operand.vmem [shape: f32[800,64], index: 1, kind: input, shape index: {}]   ;;  %s2138_s0 = inlined_call_operand.vmem [shape: f32[128,800], index: 0, kind: input, shape index: {}]   ;;  %s2139_s2 = inlined_call_operand.vmem [shape: f32[1,64], index: 2, kind: input, shape index: {}]   ;;  %s2140_s3 = inlined_call_operand.vmem [shape: f32[128,64], index: 3, kind: output, shape index: {}]  }
   0x1   :  { %v142_v0 = vld [vmem:[%s2137_s1 + $0x80] sm:$0xff]  ;;  %v143_v1 = vld [vmem:[%s2137_s1 + $0x88] sm:$0xff]  ;;  %v144_v11 = vld [vmem:[%s2137_s1 + $0x90] sm:$0xff] }
   0x2   :  { %v174_v2 = vld [vmem:[%s2137_s1 + $0x180] sm:$0xff]  ;;  %v1208_v3 = vpack.c.bf16 %v143_v1, %v142_v0  ;;  %v175_v4 = vld [vmem:[%s2137_s1 + $0x188] sm:$0xff]  ;;  %v145_v13 = vld [vmem:[%s2137_s1 + $0x98] sm:$0xff] }
   0x3   :  { %v126_v5 = vld [vmem:[%s2137_s1] sm:$0xff]  ;;  %v127_v6 = vld [vmem:[%s2137_s1 + $0x8] sm:$0xff]  ;;  %v1240_v7 = vpack.c.bf16 %v175_v4, %v174_v2  ;;  %v176_v14 = vld [vmem:[%s2137_s1 + $0x190] sm:$0xff]  ;;  %v1212_v16 = vpack.c.bf16 %v145_v13, %v144_v11 }
   0x4   :  { %v1210_v8 = vpack.c.bf16 %v127_v6, %v126_v5  ;;  %v158_v9 = vld [vmem:[%s2137_s1 + $0x100] sm:$0xff]  ;;  %v159_v10 = vld [vmem:[%s2137_s1 + $0x108] sm:$0xff]  ;;  %1209 = vmatprep.subr.bf16.mxu0 %v1208_v3  ;;  %v177_v15 = vld [vmem:[%s2137_s1 + $0x198] sm:$0xff] }
   0x5   :  { %v1242_v12 = vpack.c.bf16 %v159_v10, %v158_v9  ;;  %1241 = vmatprep.subr.bf16.mxu1 %v1240_v7  ;;  %v1244_v17 = vpack.c.bf16 %v177_v15, %v176_v14  ;;  %v128_v18 = vld [vmem:[%s2137_s1 + $0x10] sm:$0xff]  ;;  %v129_v19 = vld [vmem:[%s2137_s1 + $0x18] sm:$0xff]  ;;  %v146_v23 = vld [vmem:[%s2137_s1 + $0xa0] sm:$0xff] }
   0x6   :  { %1211 = vmatpush3.bf16.msra.mxu0 %v1210_v8  ;;  %v160_v20 = vld [vmem:[%s2137_s1 + $0x110] sm:$0xff]  ;;  %v1214_v21 = vpack.c.bf16 %v129_v19, %v128_v18  ;;  %v161_v22 = vld [vmem:[%s2137_s1 + $0x118] sm:$0xff]  ;;  %v147_v24 = vld [vmem:[%s2137_s1 + $0xa8] sm:$0xff] }
   0x7   :  { %1243 = vmatpush3.bf16.msra.mxu1 %v1242_v12  ;;  %1213 = vmatprep.subr.bf16.mxu0 %v1212_v16  ;;  %v1246_v25 = vpack.c.bf16 %v161_v22, %v160_v20  ;;  %v1216_v26 = vpack.c.bf16 %v147_v24, %v146_v23  ;;  %v178_v27 = vld [vmem:[%s2137_s1 + $0x1a0] sm:$0xff]  ;;  %v179_v28 = vld [vmem:[%s2137_s1 + $0x1a8] sm:$0xff]  ;;  %v148_v35 = vld [vmem:[%s2137_s1 + $0xb0] sm:$0xff] }
   0x8   :  { %1245 = vmatprep.subr.bf16.mxu1 %v1244_v17  ;;  %v130_v29 = vld [vmem:[%s2137_s1 + $0x20] sm:$0xff]  ;;  %v1248_v30 = vpack.c.bf16 %v179_v28, %v178_v27  ;;  %v131_v31 = vld [vmem:[%s2137_s1 + $0x28] sm:$0xff]  ;;  %v149_v36 = vld [vmem:[%s2137_s1 + $0xb8] sm:$0xff] }
   0x9   :  { %v162_v32 = vld [vmem:[%s2137_s1 + $0x120] sm:$0xff]  ;;  %v163_v33 = vld [vmem:[%s2137_s1 + $0x128] sm:$0xff]  ;;  %v1218_v34 = vpack.c.bf16 %v131_v31, %v130_v29  ;;  %v180_v37 = vld [vmem:[%s2137_s1 + $0x1b0] sm:$0xff]  ;;  %v1220_v39 = vpack.c.bf16 %v149_v36, %v148_v35 }
   0xa   :  { %1215 = vmatpush3.bf16.msra.mxu0 %v1214_v21  ;;  %v1250_v38 = vpack.c.bf16 %v163_v33, %v162_v32  ;;  %v181_v40 = vld [vmem:[%s2137_s1 + $0x1b8] sm:$0xff]  ;;  %v132_v41 = vld [vmem:[%s2137_s1 + $0x30] sm:$0xff]  ;;  %v150_v46 = vld [vmem:[%s2137_s1 + $0xc0] sm:$0xff] }
   0xb   :  { %1247 = vmatpush3.bf16.msra.mxu1 %v1246_v25  ;;  %1217 = vmatprep.subr.bf16.mxu0 %v1216_v26  ;;  %v133_v42 = vld [vmem:[%s2137_s1 + $0x38] sm:$0xff]  ;;  %v1252_v43 = vpack.c.bf16 %v181_v40, %v180_v37  ;;  %v164_v44 = vld [vmem:[%s2137_s1 + $0x130] sm:$0xff]  ;;  %v151_v47 = vld [vmem:[%s2137_s1 + $0xc8] sm:$0xff] }
   0xc   :  { %1249 = vmatprep.subr.bf16.mxu1 %v1248_v30  ;;  %v165_v45 = vld [vmem:[%s2137_s1 + $0x138] sm:$0xff]  ;;  %v182_v48 = vld [vmem:[%s2137_s1 + $0x1c0] sm:$0xff]  ;;  %v183_v49 = vld [vmem:[%s2137_s1 + $0x1c8] sm:$0xff]  ;;  %v1222_v50 = vpack.c.bf16 %v133_v42, %v132_v41  ;;  %v1224_v52 = vpack.c.bf16 %v151_v47, %v150_v46 }
   0xd   :  { %v1254_v51 = vpack.c.bf16 %v165_v45, %v164_v44  ;;  %v134_v53 = vld [vmem:[%s2137_s1 + $0x40] sm:$0xff]  ;;  %v135_v54 = vld [vmem:[%s2137_s1 + $0x48] sm:$0xff]  ;;  %v1256_v56 = vpack.c.bf16 %v183_v49, %v182_v48  ;;  %v152_v58 = vld [vmem:[%s2137_s1 + $0xd0] sm:$0xff] }
   0xe   :  { %1219 = vmatpush3.bf16.msra.mxu0 %v1218_v34  ;;  %v166_v55 = vld [vmem:[%s2137_s1 + $0x140] sm:$0xff]  ;;  %v167_v57 = vld [vmem:[%s2137_s1 + $0x148] sm:$0xff]  ;;  %v153_v59 = vld [vmem:[%s2137_s1 + $0xd8] sm:$0xff]  ;;  %v1226_v62 = vpack.c.bf16 %v135_v54, %v134_v53 }
   0xf   :  { %1251 = vmatpush3.bf16.msra.mxu1 %v1250_v38  ;;  %1221 = vmatprep.subr.bf16.mxu0 %v1220_v39  ;;  %v184_v60 = vld [vmem:[%s2137_s1 + $0x1d0] sm:$0xff]  ;;  %v185_v61 = vld [vmem:[%s2137_s1 + $0x1d8] sm:$0xff]  ;;  %v1258_v63 = vpack.c.bf16 %v167_v57, %v166_v55  ;;  %v1228_v0 = vpack.c.bf16 %v153_v59, %v152_v58  ;;  %v154_v6 = vld [vmem:[%s2137_s1 + $0xe0] sm:$0xff] }
  0x10   :  { %1253 = vmatprep.subr.bf16.mxu1 %v1252_v43  ;;  %v136_v1 = vld [vmem:[%s2137_s1 + $0x50] sm:$0xff]  ;;  %v137_v2 = vld [vmem:[%s2137_s1 + $0x58] sm:$0xff]  ;;  %v1260_v4 = vpack.c.bf16 %v185_v61, %v184_v60  ;;  %v155_v7 = vld [vmem:[%s2137_s1 + $0xe8] sm:$0xff] }
  0x11   :  { %v168_v3 = vld [vmem:[%s2137_s1 + $0x150] sm:$0xff]  ;;  %v169_v5 = vld [vmem:[%s2137_s1 + $0x158] sm:$0xff]  ;;  %v186_v8 = vld [vmem:[%s2137_s1 + $0x1e0] sm:$0xff]  ;;  %v1230_v10 = vpack.c.bf16 %v137_v2, %v136_v1  ;;  %v1232_v14 = vpack.c.bf16 %v155_v7, %v154_v6 }
  0x12   :  { %1223 = vmatpush3.bf16.msra.mxu0 %v1222_v50  ;;  %v187_v9 = vld [vmem:[%s2137_s1 + $0x1e8] sm:$0xff]  ;;  %v138_v11 = vld [vmem:[%s2137_s1 + $0x60] sm:$0xff]  ;;  %v1262_v13 = vpack.c.bf16 %v169_v5, %v168_v3  ;;  %v17_v17 = vld [vmem:[%s2138_s0 + $0x18] sm:$0xff] }
  0x13   :  { %1255 = vmatpush3.bf16.msra.mxu1 %v1254_v51  ;;  %1225 = vmatprep.subr.bf16.mxu0 %v1224_v52  ;;  %v139_v12 = vld [vmem:[%s2137_s1 + $0x68] sm:$0xff]  ;;  %v170_v15 = vld [vmem:[%s2137_s1 + $0x160] sm:$0xff]  ;;  %v1264_v18 = vpack.c.bf16 %v187_v9, %v186_v8  ;;  %v156_v20 = vld [vmem:[%s2137_s1 + $0xf0] sm:$0xff] }
  0x14   :  { %1257 = vmatprep.subr.bf16.mxu1 %v1256_v56  ;;  %v15_v16 = vld [vmem:[%s2138_s0 + $0x8] sm:$0xff]  ;;  %v157_v21 = vld [vmem:[%s2137_s1 + $0xf8] sm:$0xff]  ;;  %v188_v22 = vld [vmem:[%s2137_s1 + $0x1f0] sm:$0xff]  ;;  %491 = vmatprep.mubr.f32.mxu1 %v17_v17  ;;  %v1234_v24 = vpack.c.bf16 %v139_v12, %v138_v11 }
  0x15   :  { %v171_v19 = vld [vmem:[%s2137_s1 + $0x168] sm:$0xff]  ;;  %346 = vmatprep.mubr.f32.mxu0 %v15_v16  ;;  %v189_v23 = vld [vmem:[%s2137_s1 + $0x1f8] sm:$0xff]  ;;  %v1236_v26 = vpack.c.bf16 %v157_v21, %v156_v20  ;;  %v140_v27 = vld [vmem:[%s2137_s1 + $0x70] sm:$0xff] }
  0x16   :  { %1227 = vmatpush3.bf16.msra.mxu0 %v1226_v62  ;;  %v1266_v25 = vpack.c.bf16 %v171_v19, %v170_v15  ;;  %v141_v28 = vld [vmem:[%s2137_s1 + $0x78] sm:$0xff]  ;;  %v172_v29 = vld [vmem:[%s2137_s1 + $0x170] sm:$0xff]  ;;  %v1268_v30 = vpack.c.bf16 %v189_v23, %v188_v22  ;;  %v206_v32 = vld [vmem:[%s2137_s1 + $0x280] sm:$0xff] }
  0x17   :  { %1259 = vmatpush3.bf16.msra.mxu1 %v1258_v63  ;;  %1229 = vmatprep.subr.bf16.mxu0 %v1228_v0  ;;  %v173_v31 = vld [vmem:[%s2137_s1 + $0x178] sm:$0xff]  ;;  %v207_v33 = vld [vmem:[%s2137_s1 + $0x288] sm:$0xff]  ;;  %v1238_v34 = vpack.c.bf16 %v141_v28, %v140_v27  ;;  %v190_v37 = vld [vmem:[%s2137_s1 + $0x200] sm:$0xff] }
  0x18   :  { %1261 = vmatprep.subr.bf16.mxu1 %v1260_v4  ;;  %v1270_v35 = vpack.c.bf16 %v173_v31, %v172_v29  ;;  %v1272_v36 = vpack.c.bf16 %v207_v33, %v206_v32  ;;  %v191_v38 = vld [vmem:[%s2137_s1 + $0x208] sm:$0xff]  ;;  %v208_v39 = vld [vmem:[%s2137_s1 + $0x290] sm:$0xff]  ;;  %v209_v40 = vld [vmem:[%s2137_s1 + $0x298] sm:$0xff] }
  0x19   :  { %v14_v41 = vld [vmem:[%s2138_s0] sm:$0xff]  ;;  %v1274_v42 = vpack.c.bf16 %v191_v38, %v190_v37  ;;  %v16_v43 = vld [vmem:[%s2138_s0 + $0x10] sm:$0xff]  ;;  %v1276_v46 = vpack.c.bf16 %v209_v40, %v208_v39  ;;  %v193_v48 = vld [vmem:[%s2137_s1 + $0x218] sm:$0xff] }
  0x1a   :  { %1231 = vmatpush3.bf16.msra.mxu0 %v1230_v10  ;;  %v22_v44 = vld [vmem:[%s2138_s0 + $0x40] sm:$0xff]  ;;  %v24_v45 = vld [vmem:[%s2138_s0 + $0x50] sm:$0xff]  ;;  %v211_v50 = vld [vmem:[%s2137_s1 + $0x2a8] sm:$0xff] }
  0x1b   :  { %1263 = vmatpush3.bf16.msra.mxu1 %v1262_v13  ;;  %1233 = vmatprep.subr.bf16.mxu0 %v1232_v14  ;;  %v192_v47 = vld [vmem:[%s2137_s1 + $0x210] sm:$0xff]  ;;  %v210_v49 = vld [vmem:[%s2137_s1 + $0x2a0] sm:$0xff]  ;;  %v21_v51 = vld [vmem:[%s2138_s0 + $0x38] sm:$0xff] }
  0x1c   :  { %1265 = vmatprep.subr.bf16.mxu1 %v1264_v18  ;;  %v23_v52 = vld [vmem:[%s2138_s0 + $0x48] sm:$0xff]  ;;  %v29_v53 = vld [vmem:[%s2138_s0 + $0x78] sm:$0xff]  ;;  %v1278_v54 = vpack.c.bf16 %v193_v48, %v192_v47  ;;  %v1280_v56 = vpack.c.bf16 %v211_v50, %v210_v49  ;;  %v194_v57 = vld [vmem:[%s2137_s1 + $0x220] sm:$0xff] }
  0x1d   :  { %v31_v55 = vld [vmem:[%s2138_s0 + $0x88] sm:$0xff]  ;;  %v212_v59 = vld [vmem:[%s2137_s1 + $0x2b0] sm:$0xff]  ;;  %v213_v60 = vld [vmem:[%s2137_s1 + $0x2b8] sm:$0xff] }
  0x1e   :  { %1235 = vmatpush3.bf16.msra.mxu0 %v1234_v24  ;;  %v195_v58 = vld [vmem:[%s2137_s1 + $0x228] sm:$0xff]  ;;  %v28_v61 = vld [vmem:[%s2138_s0 + $0x70] sm:$0xff]  ;;  %v30_v62 = vld [vmem:[%s2138_s0 + $0x80] sm:$0xff]  ;;  %v1284_v2 = vpack.c.bf16 %v213_v60, %v212_v59 }
  0x1f   :  { %1267 = vmatpush3.bf16.msra.mxu1 %v1266_v25  ;;  %1237 = vmatprep.subr.bf16.mxu0 %v1236_v26  ;;  %v36_v63 = vld [vmem:[%s2138_s0 + $0xb0] sm:$0xff]  ;;  %v1282_v0 = vpack.c.bf16 %v195_v58, %v194_v57  ;;  %v38_v1 = vld [vmem:[%s2138_s0 + $0xc0] sm:$0xff]  ;;  %v197_v4 = vld [vmem:[%s2137_s1 + $0x238] sm:$0xff] }
  0x20   :  { %1269 = vmatprep.subr.bf16.mxu1 %v1268_v30  ;;  %v196_v3 = vld [vmem:[%s2137_s1 + $0x230] sm:$0xff]  ;;  %v214_v5 = vld [vmem:[%s2137_s1 + $0x2c0] sm:$0xff]  ;;  %v215_v6 = vld [vmem:[%s2137_s1 + $0x2c8] sm:$0xff] }
  0x21   :  { %v35_v7 = vld [vmem:[%s2138_s0 + $0xa8] sm:$0xff]  ;;  %v37_v8 = vld [vmem:[%s2138_s0 + $0xb8] sm:$0xff]  ;;  %v1286_v10 = vpack.c.bf16 %v197_v4, %v196_v3  ;;  %v1288_v12 = vpack.c.bf16 %v215_v6, %v214_v5  ;;  %v198_v13 = vld [vmem:[%s2137_s1 + $0x240] sm:$0xff] }
  0x22   :  { %1239 = vmatpush3.bf16.msra.mxu0 %v1238_v34  ;;  %v43_v9 = vld [vmem:[%s2138_s0 + $0xe8] sm:$0xff]  ;;  %v45_v11 = vld [vmem:[%s2138_s0 + $0xf8] sm:$0xff]  ;;  %v216_v15 = vld [vmem:[%s2137_s1 + $0x2d0] sm:$0xff] }
  0x23   :  { %1271 = vmatpush3.bf16.msra.mxu1 %v1270_v35  ;;  %1273 = vmatprep.subr.bf16.mxu0 %v1272_v36  ;;  %v199_v14 = vld [vmem:[%s2137_s1 + $0x248] sm:$0xff]  ;;  %v217_v16 = vld [vmem:[%s2137_s1 + $0x2d8] sm:$0xff]  ;;  %v42_v17 = vld [vmem:[%s2138_s0 + $0xe0] sm:$0xff] }
  0x24   :  { %1312 = vmatprep.subr.bf16.mxu1 %v1272_v36  ;;  %v44_v18 = vld [vmem:[%s2138_s0 + $0xf0] sm:$0xff]  ;;  %v50_v19 = vld [vmem:[%s2138_s0 + $0x120] sm:$0xff]  ;;  %v1290_v20 = vpack.c.bf16 %v199_v14, %v198_v13  ;;  %v1292_v22 = vpack.c.bf16 %v217_v16, %v216_v15  ;;  %v201_v24 = vld [vmem:[%s2137_s1 + $0x258] sm:$0xff] }
  0x25   :  { %347 = vmatmul.mubr.f32.vlgmr.msra.gmra.mrb[0].mxu0 %v14_v41  ;;  %v52_v21 = vld [vmem:[%s2138_s0 + $0x130] sm:$0xff]  ;;  %v218_v25 = vld [vmem:[%s2137_s1 + $0x2e0] sm:$0xff]  ;;  %v219_v26 = vld [vmem:[%s2137_s1 + $0x2e8] sm:$0xff] }
  0x26   :  { %492 = vmatmul.mubr.f32.vlgmr.msra.gmra.mrb[0].mxu1 %v16_v43  ;;  %1275 = vmatpush3.bf16.msra.mxu0 %v1274_v42  ;;  %v200_v23 = vld [vmem:[%s2137_s1 + $0x250] sm:$0xff]  ;;  %v49_v27 = vld [vmem:[%s2138_s0 + $0x118] sm:$0xff]  ;;  %v51_v28 = vld [vmem:[%s2138_s0 + $0x128] sm:$0xff]  ;;  %v1296_v32 = vpack.c.bf16 %v219_v26, %v218_v25 }
  0x27   :  { %351 = vmatprep.mubr.f32.mxu0 %v22_v44  ;;  %496 = vmatprep.mubr.f32.mxu1 %v24_v45  ;;  %v57_v29 = vld [vmem:[%s2138_s0 + $0x158] sm:$0xff]  ;;  %v1294_v30 = vpack.c.bf16 %v201_v24, %v200_v23  ;;  %v59_v31 = vld [vmem:[%s2138_s0 + $0x168] sm:$0xff]  ;;  %v202_v33 = vld [vmem:[%s2137_s1 + $0x260] sm:$0xff] }
  0x28   :  { %1320 = vmatpush3.bf16.msra.mxu1 %v1274_v42  ;;  %1277 = vmatprep.subr.bf16.mxu0 %v1276_v46  ;;  %v203_v34 = vld [vmem:[%s2137_s1 + $0x268] sm:$0xff]  ;;  %v220_v35 = vld [vmem:[%s2137_s1 + $0x2f0] sm:$0xff]  ;;  %v221_v36 = vld [vmem:[%s2137_s1 + $0x2f8] sm:$0xff] }
  0x29   :  { %352 = vmatmul.mubr.f32.gmra.mrb[2].mxu0 %v21_v51  ;;  %1313 = vmatprep.subr.bf16.mxu1 %v1276_v46  ;;  %v56_v37 = vld [vmem:[%s2138_s0 + $0x150] sm:$0xff]  ;;  %v58_v38 = vld [vmem:[%s2138_s0 + $0x160] sm:$0xff]  ;;  %v1298_v40 = vpack.c.bf16 %v203_v34, %v202_v33  ;;  %v1300_v42 = vpack.c.bf16 %v221_v36, %v220_v35  ;;  %v205_v44 = vld [vmem:[%s2137_s1 + $0x278] sm:$0xff] }
  0x2a   :  { %497 = vmatmul.mubr.f32.gmra.mrb[2].mxu1 %v23_v52  ;;  %356 = vmatprep.mubr.f32.mxu0 %v29_v53  ;;  %v64_v39 = vld [vmem:[%s2138_s0 + $0x190] sm:$0xff]  ;;  %v66_v41 = vld [vmem:[%s2138_s0 + $0x1a0] sm:$0xff]  ;;  %v63_v45 = vld [vmem:[%s2138_s0 + $0x188] sm:$0xff] }
  0x2b   :  { %501 = vmatprep.mubr.f32.mxu1 %v31_v55  ;;  %1279 = vmatpush3.bf16.msra.mxu0 %v1278_v54  ;;  %v204_v43 = vld [vmem:[%s2137_s1 + $0x270] sm:$0xff]  ;;  %v222_v46 = vld [vmem:[%s2137_s1 + $0x300] sm:$0xff]  ;;  %v223_v47 = vld [vmem:[%s2137_s1 + $0x308] sm:$0xff] }
  0x2c   :  { %1321 = vmatpush3.bf16.msra.mxu1 %v1278_v54  ;;  %1281 = vmatprep.subr.bf16.mxu0 %v1280_v56  ;;  %v65_v48 = vld [vmem:[%s2138_s0 + $0x198] sm:$0xff]  ;;  %v71_v49 = vld [vmem:[%s2138_s0 + $0x1c8] sm:$0xff]  ;;  %v1302_v50 = vpack.c.bf16 %v205_v44, %v204_v43  ;;  %v1744_v52 = vpack.c.bf16 %v223_v47, %v222_v46  ;;  %v70_v53 = vld [vmem:[%s2138_s0 + $0x1c0] sm:$0xff] }
  0x2d   :  { %357 = vmatmul.mubr.f32.gmra.mrb[4].mxu0 %v28_v61  ;;  %1314 = vmatprep.subr.bf16.mxu1 %v1280_v56  ;;  %v73_v51 = vld [vmem:[%s2138_s0 + $0x1d8] sm:$0xff]  ;;  %v72_v54 = vld [vmem:[%s2138_s0 + $0x1d0] sm:$0xff]  ;;  %v78_v55 = vld [vmem:[%s2138_s0 + $0x200] sm:$0xff] }
  0x2e   :  { %502 = vmatmul.mubr.f32.gmra.mrb[4].mxu1 %v30_v62  ;;  %361 = vmatprep.mubr.f32.mxu0 %v36_v63  ;;  %v80_v56 = vld [vmem:[%s2138_s0 + $0x210] sm:$0xff]  ;;  %v77_v57 = vld [vmem:[%s2138_s0 + $0x1f8] sm:$0xff]  ;;  %v79_v58 = vld [vmem:[%s2138_s0 + $0x208] sm:$0xff] }
  0x2f   :  { %506 = vmatprep.mubr.f32.mxu1 %v38_v1  ;;  %1283 = vmatpush3.bf16.msra.mxu0 %v1282_v0  ;;  %v85_v59 = vld [vmem:[%s2138_s0 + $0x238] sm:$0xff]  ;;  %v87_v60 = vld [vmem:[%s2138_s0 + $0x248] sm:$0xff]  ;;  %v84_v61 = vld [vmem:[%s2138_s0 + $0x230] sm:$0xff] }
  0x30   :  { %1322 = vmatpush3.bf16.msra.mxu1 %v1282_v0  ;;  %1285 = vmatprep.subr.bf16.mxu0 %v1284_v2  ;;  %v86_v62 = vld [vmem:[%s2138_s0 + $0x240] sm:$0xff]  ;;  %v92_v63 = vld [vmem:[%s2138_s0 + $0x270] sm:$0xff]  ;;  %v91_v1 = vld [vmem:[%s2138_s0 + $0x268] sm:$0xff] }
  0x31   :  { %362 = vmatmul.mubr.f32.gmra.mrb[6].mxu0 %v35_v7  ;;  %1315 = vmatprep.subr.bf16.mxu1 %v1284_v2  ;;  %v94_v0 = vld [vmem:[%s2138_s0 + $0x280] sm:$0xff]  ;;  %v93_v2 = vld [vmem:[%s2138_s0 + $0x278] sm:$0xff]  ;;  %v99_v3 = vld [vmem:[%s2138_s0 + $0x2a8] sm:$0xff] }
  0x32   :  { %507 = vmatmul.mubr.f32.gmra.mrb[6].mxu1 %v37_v8  ;;  %366 = vmatprep.mubr.f32.mxu0 %v43_v9  ;;  %v101_v4 = vld [vmem:[%s2138_s0 + $0x2b8] sm:$0xff]  ;;  %v98_v5 = vld [vmem:[%s2138_s0 + $0x2a0] sm:$0xff]  ;;  %v100_v6 = vld [vmem:[%s2138_s0 + $0x2b0] sm:$0xff] }
  0x33   :  { %511 = vmatprep.mubr.f32.mxu1 %v45_v11  ;;  %1287 = vmatpush3.bf16.msra.mxu0 %v1286_v10  ;;  %v106_v7 = vld [vmem:[%s2138_s0 + $0x2e0] sm:$0xff]  ;;  %v108_v8 = vld [vmem:[%s2138_s0 + $0x2f0] sm:$0xff]  ;;  %v105_v9 = vld [vmem:[%s2138_s0 + $0x2d8] sm:$0xff] }
  0x34   :  { %1323 = vmatpush3.bf16.msra.mxu1 %v1286_v10  ;;  %1289 = vmatprep.subr.bf16.mxu0 %v1288_v12  ;;  %v107_v10 = vld [vmem:[%s2138_s0 + $0x2e8] sm:$0xff]  ;;  %v113_v11 = vld [vmem:[%s2138_s0 + $0x318] sm:$0xff]  ;;  %v112_v13 = vld [vmem:[%s2138_s0 + $0x310] sm:$0xff] }
  0x35   :  { %367 = vmatmul.mubr.f32.gmra.mrb[8].mxu0 %v42_v17  ;;  %1316 = vmatprep.subr.bf16.mxu1 %v1288_v12  ;;  %v115_v12 = vld [vmem:[%s2138_s0 + $0x328] sm:$0xff]  ;;  %v114_v14 = vld [vmem:[%s2138_s0 + $0x320] sm:$0xff]  ;;  %v120_v15 = vld [vmem:[%s2138_s0 + $0x350] sm:$0xff] }
  0x36   :  { %512 = vmatmul.mubr.f32.gmra.mrb[8].mxu1 %v44_v18  ;;  %371 = vmatprep.mubr.f32.mxu0 %v50_v19  ;;  %v122_v16 = vld [vmem:[%s2138_s0 + $0x360] sm:$0xff]  ;;  %v119_v17 = vld [vmem:[%s2138_s0 + $0x348] sm:$0xff]  ;;  %v121_v18 = vld [vmem:[%s2138_s0 + $0x358] sm:$0xff] }
  0x37   :  { %516 = vmatprep.mubr.f32.mxu1 %v52_v21  ;;  %1291 = vmatpush3.bf16.msra.mxu0 %v1290_v20  ;;  %v19_v19 = vld [vmem:[%s2138_s0 + $0x28] sm:$0xff]  ;;  %v224_v21 = vld [vmem:[%s2137_s1 + $0x310] sm:$0xff]  ;;  %v18_v23 = vld [vmem:[%s2138_s0 + $0x20] sm:$0xff] }
  0x38   :  { %1324 = vmatpush3.bf16.msra.mxu1 %v1290_v20  ;;  %1293 = vmatprep.subr.bf16.mxu0 %v1292_v22  ;;  %v103_v20 = vld [vmem:[%s2138_s0 + $0x2c8] sm:$0xff]  ;;  %v102_v24 = vld [vmem:[%s2138_s0 + $0x2c0] sm:$0xff]  ;;  %v116_v33 = vld [vmem:[%s2138_s0 + $0x330] sm:$0xff] }
  0x39   :  { %372 = vmatmul.mubr.f32.gmra.mrb[10].mxu0 %v49_v27  ;;  %1317 = vmatprep.subr.bf16.mxu1 %v1292_v22  ;;  %v225_v22 = vld [vmem:[%s2137_s1 + $0x318] sm:$0xff]  ;;  %v26_v25 = vld [vmem:[%s2138_s0 + $0x60] sm:$0xff]  ;;  %v40_v34 = vld [vmem:[%s2138_s0 + $0xd0] sm:$0xff] }
  0x3a   :  { %517 = vmatmul.mubr.f32.gmra.mrb[10].mxu1 %v51_v28  ;;  %376 = vmatprep.mubr.f32.mxu0 %v57_v29  ;;  %v110_v26 = vld [vmem:[%s2138_s0 + $0x300] sm:$0xff]  ;;  %v1308_v27 = vpack.c.bf16 %v225_v22, %v224_v21  ;;  %v25_v28 = vld [vmem:[%s2138_s0 + $0x58] sm:$0xff]  ;;  %v124_v35 = vld [vmem:[%s2138_s0 + $0x370] sm:$0xff] }
  0x3b   :  { %521 = vmatprep.mubr.f32.mxu1 %v59_v31  ;;  %1295 = vmatpush3.bf16.msra.mxu0 %v1294_v30  ;;  %v109_v29 = vld [vmem:[%s2138_s0 + $0x2f8] sm:$0xff]  ;;  %v39_v36 = vld [vmem:[%s2138_s0 + $0xc8] sm:$0xff]  ;;  %v34_v43 = vld [vmem:[%s2138_s0 + $0xa0] sm:$0xff] }
  0x3c   :  { %1325 = vmatpush3.bf16.msra.mxu1 %v1294_v30  ;;  %1297 = vmatprep.subr.bf16.mxu0 %v1296_v32  ;;  %v33_v30 = vld [vmem:[%s2138_s0 + $0x98] sm:$0xff]  ;;  %v48_v47 = vld [vmem:[%s2138_s0 + $0x110] sm:$0xff] }
  0x3d   :  { %377 = vmatmul.mubr.f32.gmra.mrb[12].mxu0 %v56_v37  ;;  %1318 = vmatprep.subr.bf16.mxu1 %v1296_v32  ;;  %v117_v31 = vld [vmem:[%s2138_s0 + $0x338] sm:$0xff]  ;;  %v32_v32 = vld [vmem:[%s2138_s0 + $0x90] sm:$0xff]  ;;  %v123_v37 = vld [vmem:[%s2138_s0 + $0x368] sm:$0xff] }
  0x3e   :  { %522 = vmatmul.mubr.f32.gmra.mrb[12].mxu1 %v58_v38  ;;  %381 = vmatprep.mubr.f32.mxu0 %v64_v39  ;;  %v47_v38 = vld [vmem:[%s2138_s0 + $0x108] sm:$0xff]  ;;  %v20_v39 = vld [vmem:[%s2138_s0 + $0x30] sm:$0xff]  ;;  %v53_v44 = vld [vmem:[%s2138_s0 + $0x138] sm:$0xff] }
  0x3f   :  { %526 = vmatprep.mubr.f32.mxu1 %v66_v41  ;;  %1299 = vmatpush3.bf16.msra.mxu0 %v1298_v40  ;;  %v27_v41 = vld [vmem:[%s2138_s0 + $0x68] sm:$0xff]  ;;  %v61_v46 = vld [vmem:[%s2138_s0 + $0x178] sm:$0xff] }
  0x40   :  { %1326 = vmatpush3.bf16.msra.mxu1 %v1298_v40  ;;  %1301 = vmatprep.subr.bf16.mxu0 %v1300_v42  ;;  %v46_v40 = vld [vmem:[%s2138_s0 + $0x100] sm:$0xff] }
  0x41   :  { %382 = vmatmul.mubr.f32.gmra.mrb[14].mxu0 %v63_v45  ;;  %1319 = vmatprep.subr.bf16.mxu1 %v1300_v42  ;;  %v54_v42 = vld [vmem:[%s2138_s0 + $0x140] sm:$0xff]  ;;  %v41_v45 = vld [vmem:[%s2138_s0 + $0xd8] sm:$0xff] }
  0x42   :  { %527 = vmatmul.mubr.f32.gmra.mrb[14].mxu1 %v65_v48  ;;  %386 = vmatprep.mubr.f32.mxu0 %v71_v49  ;;  %v60_v48 = vld [vmem:[%s2138_s0 + $0x170] sm:$0xff]  ;;  %v55_v49 = vld [vmem:[%s2138_s0 + $0x148] sm:$0xff] }
  0x43   :  { %531 = vmatprep.mubr.f32.mxu1 %v73_v51  ;;  %1303 = vmatpush3.bf16.msra.mxu0 %v1302_v50  ;;  %v62_v51 = vld [vmem:[%s2138_s0 + $0x180] sm:$0xff] }
  0x44   :  { %1327 = vmatpush3.bf16.msra.mxu1 %v1302_v50  ;;  %v68_v50 = vld [vmem:[%s2138_s0 + $0x1b0] sm:$0xff] }
  0x45   :  { %387 = vmatmul.mubr.f32.gmra.mrb[16].mxu0 %v70_v53  ;;  %1305 = vmatprep.subr.bf16.mxu1 %v1744_v52  ;;  %v69_v53 = vld [vmem:[%s2138_s0 + $0x1b8] sm:$0xff] }
  0x46   :  { %532 = vmatmul.mubr.f32.gmra.mrb[16].mxu1 %v72_v54  ;;  %391 = vmatprep.mubr.f32.mxu0 %v78_v55  ;;  %v75_v54 = vld [vmem:[%s2138_s0 + $0x1e8] sm:$0xff]  ;;  %v76_v55 = vld [vmem:[%s2138_s0 + $0x1f0] sm:$0xff] }
  0x47   :  { %536 = vmatprep.mubr.f32.mxu1 %v80_v56  ;;  %v74_v56 = vld [vmem:[%s2138_s0 + $0x1e0] sm:$0xff] }
  0x49   :  { %392 = vmatmul.mubr.f32.gmra.mrb[18].mxu0 %v77_v57  ;;  %v83_v57 = vld [vmem:[%s2138_s0 + $0x228] sm:$0xff] }
  0x4a   :  { %537 = vmatmul.mubr.f32.gmra.mrb[18].mxu1 %v79_v58  ;;  %396 = vmatprep.mubr.f32.mxu0 %v85_v59  ;;  %v82_v58 = vld [vmem:[%s2138_s0 + $0x220] sm:$0xff] }
  0x4b   :  { %541 = vmatprep.mubr.f32.mxu1 %v87_v60  ;;  %v90_v59 = vld [vmem:[%s2138_s0 + $0x260] sm:$0xff]  ;;  %v81_v60 = vld [vmem:[%s2138_s0 + $0x218] sm:$0xff] }
  0x4d   :  { %397 = vmatmul.mubr.f32.gmra.mrb[20].mxu0 %v84_v61  ;;  %v97_v61 = vld [vmem:[%s2138_s0 + $0x298] sm:$0xff] }
  0x4e   :  { %542 = vmatmul.mubr.f32.gmra.mrb[20].mxu1 %v86_v62  ;;  %401 = vmatprep.mubr.f32.mxu0 %v92_v63  ;;  %v89_v62 = vld [vmem:[%s2138_s0 + $0x258] sm:$0xff]  ;;  %v104_v63 = vld [vmem:[%s2138_s0 + $0x2d0] sm:$0xff] }
  0x4f   :  { %546 = vmatprep.mubr.f32.mxu1 %v94_v0  ;;  %v88_v0 = vld [vmem:[%s2138_s0 + $0x250] sm:$0xff] }
  0x51   :  { %402 = vmatmul.mubr.f32.gmra.mrb[22].mxu0 %v91_v1  ;;  %v111_v1 = vld [vmem:[%s2138_s0 + $0x308] sm:$0xff] }
  0x52   :  { %547 = vmatmul.mubr.f32.gmra.mrb[22].mxu1 %v93_v2  ;;  %406 = vmatprep.mubr.f32.mxu0 %v99_v3  ;;  %v96_v2 = vld [vmem:[%s2138_s0 + $0x290] sm:$0xff]  ;;  %v118_v3 = vld [vmem:[%s2138_s0 + $0x340] sm:$0xff] }
  0x53   :  { %551 = vmatprep.mubr.f32.mxu1 %v101_v4  ;;  %v95_v4 = vld [vmem:[%s2138_s0 + $0x288] sm:$0xff] }
  0x55   :  { %407 = vmatmul.mubr.f32.gmra.mrb[24].mxu0 %v98_v5  ;;  %v125_v5 = vld [vmem:[%s2138_s0 + $0x378] sm:$0xff] }
  0x56   :  { %552 = vmatmul.mubr.f32.gmra.mrb[24].mxu1 %v100_v6  ;;  %411 = vmatprep.mubr.f32.mxu0 %v106_v7  ;;  %v2007_v7 = vld [vmem:[%s2139_s2] ss:$0 sm:$0xff] }
  0x57   :  { %556 = vmatprep.mubr.f32.mxu1 %v108_v8 }
  0x59   :  { %412 = vmatmul.mubr.f32.gmra.mrb[26].mxu0 %v105_v9 }
  0x5a   :  { %557 = vmatmul.mubr.f32.gmra.mrb[26].mxu1 %v107_v10  ;;  %416 = vmatprep.mubr.f32.mxu0 %v113_v11 }
  0x5b   :  { %561 = vmatprep.mubr.f32.mxu1 %v115_v12 }
  0x5d   :  { %417 = vmatmul.mubr.f32.gmra.mrb[28].mxu0 %v112_v13 }
  0x5e   :  { %562 = vmatmul.mubr.f32.gmra.mrb[28].mxu1 %v114_v14  ;;  %421 = vmatprep.mubr.f32.mxu0 %v120_v15 }
  0x5f   :  { %566 = vmatprep.mubr.f32.mxu1 %v122_v16 }
  0x61   :  { %422 = vmatmul.mubr.f32.gmra.mrb[30].mxu0 %v119_v17 }
  0x62   :  { %567 = vmatmul.mubr.f32.gmra.mrb[30].mxu1 %v121_v18  ;;  %636 = vmatprep.mubr.f32.mxu0 %v19_v19 }
  0x63   :  { %696 = vmatprep.mubr.f32.mxu1 %v103_v20 }
  0x65   :  { %637 = vmatmul.mubr.f32.vlgmr.msra.gmra.mrb[32].mxu0 %v18_v23 }
  0x66   :  { %697 = vmatmul.mubr.f32.vlgmr.msra.gmra.mrb[32].mxu1 %v102_v24  ;;  %641 = vmatprep.mubr.f32.mxu0 %v26_v25 }
  0x67   :  { %701 = vmatprep.mubr.f32.mxu1 %v110_v26  ;;  %1307 = vmatpush3.bf16.msra.mxu1 %v1744_v52  ;;  %v67_v52 = vld [vmem:[%s2138_s0 + $0x1a8] sm:$0xff] }
  0x68   :  { %1309 = vmatprep.subr.bf16.mxu1 %v1308_v27 }
  0x69   :  { %642 = vmatmul.mubr.f32.gmra.mrb[34].mxu0 %v25_v28 }
  0x6a   :  { %702 = vmatmul.mubr.f32.gmra.mrb[34].mxu1 %v109_v29  ;;  %646 = vmatprep.mubr.f32.mxu0 %v33_v30 }
  0x6b   :  { %706 = vmatprep.mubr.f32.mxu1 %v117_v31  ;;  %1311 = vmatpush3.bf16.msra.mxu1 %v1308_v27 }
  0x6d   :  { %647 = vmatmul.mubr.f32.gmra.mrb[36].mxu0 %v32_v32 }
  0x6e   :  { %707 = vmatmul.mubr.f32.gmra.mrb[36].mxu1 %v116_v33  ;;  %651 = vmatprep.mubr.f32.mxu0 %v40_v34 }
  0x6f   :  { %711 = vmatprep.mubr.f32.mxu1 %v124_v35 }
  0x71   :  { %652 = vmatmul.mubr.f32.gmra.mrb[38].mxu0 %v39_v36 }
  0x72   :  { %712 = vmatmul.mubr.f32.gmra.mrb[38].mxu1 %v123_v37  ;;  %656 = vmatprep.mubr.f32.mxu0 %v47_v38 }
  0x73   :  { %1184 = vmatprep.mubr.msk.f32.mxu1 %vm233_vm0, %v20_v39 }
  0x75   :  { %657 = vmatmul.mubr.f32.gmra.mrb[40].mxu0 %v46_v40 }
  0x76   :  { %1185 = vmatmul.mubr.msk.f32.vlgmr.msra.gmra.mrb[40].mxu1 %vm233_vm0, %v27_v41  ;;  %661 = vmatprep.mubr.f32.mxu0 %v54_v42 }
  0x77   :  { %1187 = vmatprep.mubr.msk.f32.mxu1 %vm233_vm0, %v34_v43 }
  0x79   :  { %662 = vmatmul.mubr.f32.gmra.mrb[42].mxu0 %v53_v44 }
  0x7a   :  { %1188 = vmatmul.mubr.msk.f32.gmra.mrb[42].mxu1 %vm233_vm0, %v41_v45  ;;  %666 = vmatprep.mubr.f32.mxu0 %v61_v46 }
  0x7b   :  { %1190 = vmatprep.mubr.msk.f32.mxu1 %vm233_vm0, %v48_v47 }
  0x7d   :  { %667 = vmatmul.mubr.f32.gmra.mrb[44].mxu0 %v60_v48 }
  0x7e   :  { %1191 = vmatmul.mubr.msk.f32.gmra.mrb[44].mxu1 %vm233_vm0, %v55_v49  ;;  %671 = vmatprep.mubr.f32.mxu0 %v68_v50 }
  0x7f   :  { %1193 = vmatprep.mubr.msk.f32.mxu1 %vm233_vm0, %v62_v51 }
  0x81   :  { %672 = vmatmul.mubr.f32.gmra.mrb[46].mxu0 %v67_v52 }
  0x82   :  { %1194 = vmatmul.mubr.msk.f32.gmra.mrb[46].mxu1 %vm233_vm0, %v69_v53  ;;  %676 = vmatprep.mubr.f32.mxu0 %v75_v54 }
  0x83   :  { %1196 = vmatprep.mubr.msk.f32.mxu1 %vm233_vm0, %v76_v55 }
  0x85   :  { %677 = vmatmul.mubr.f32.gmra.mrb[48].mxu0 %v74_v56 }
  0x86   :  { %1197 = vmatmul.mubr.msk.f32.gmra.mrb[48].mxu1 %vm233_vm0, %v83_v57  ;;  %681 = vmatprep.mubr.f32.mxu0 %v82_v58 }
  0x87   :  { %1199 = vmatprep.mubr.msk.f32.mxu1 %vm233_vm0, %v90_v59 }
  0x89   :  { %682 = vmatmul.mubr.f32.gmra.mrb[50].mxu0 %v81_v60 }
  0x8a   :  { %1200 = vmatmul.mubr.msk.f32.gmra.mrb[50].mxu1 %vm233_vm0, %v97_v61  ;;  %686 = vmatprep.mubr.f32.mxu0 %v89_v62 }
  0x8b   :  { %1202 = vmatprep.mubr.msk.f32.mxu1 %vm233_vm0, %v104_v63 }
  0x8d   :  { %687 = vmatmul.mubr.f32.gmra.mrb[52].mxu0 %v88_v0 }
  0x8e   :  { %1203 = vmatmul.mubr.msk.f32.gmra.mrb[52].mxu1 %vm233_vm0, %v111_v1  ;;  %691 = vmatprep.mubr.f32.mxu0 %v96_v2 }
  0x8f   :  { %1205 = vmatprep.mubr.msk.f32.mxu1 %vm233_vm0, %v118_v3 }
  0x91   :  { %692 = vmatmul.mubr.f32.gmra.mrb[54].mxu0 %v95_v4 }
  0x92   :  { %1206 = vmatmul.mubr.msk.f32.gmra.mrb[54].mxu1 %vm233_vm0, %v125_v5 }
  0xf8   :  { %v948_v6 = vpop.f32.mrb[0].mxu0 }
  0xf9   :  { %v949_v8 = vpop.f32.mrb[1].mxu0  ;;  %v1028_v9 = vpop.f32.mrb[0].mxu1 }
  0xfa   :  { %v950_v10 = vadd.f32 %v949_v8, %v948_v6  ;;  %v1029_v11 = vpop.f32.mrb[1].mxu1 }
  0xfb   :  { %v1030_v12 = vadd.f32 %v1029_v11, %v1028_v9 }
  0xfc   :  { %v349_v13 = vadd.f32 %v950_v10, %v2007_v7  ;;  %v951_v14 = vpop.f32.mrb[2].mxu0 }
  0xfd   :  { %v952_v15 = vpop.f32.mrb[3].mxu0  ;;  %v1031_v16 = vpop.f32.mrb[2].mxu1 }
  0xfe   :  { %v2010_v17 = vadd.f32 %v1030_v12, %v349_v13  ;;  %v953_v18 = vadd.f32 %v952_v15, %v951_v14  ;;  %v1032_v19 = vpop.f32.mrb[3].mxu1 }
  0xff   :  { %v1033_v20 = vadd.f32 %v1032_v19, %v1031_v16 }
 0x100   :  { %v354_v21 = vadd.f32 %v953_v18, %v2007_v7  ;;  %v954_v22 = vpop.f32.mrb[4].mxu0 }
 0x101   :  { %v955_v23 = vpop.f32.mrb[5].mxu0  ;;  %v1034_v24 = vpop.f32.mrb[4].mxu1 }
 0x102   :  { %v2013_v25 = vadd.f32 %v1033_v20, %v354_v21  ;;  %v956_v26 = vadd.f32 %v955_v23, %v954_v22  ;;  %v1035_v27 = vpop.f32.mrb[5].mxu1 }
 0x103   :  { %v1036_v28 = vadd.f32 %v1035_v27, %v1034_v24 }
 0x104   :  { %v359_v29 = vadd.f32 %v956_v26, %v2007_v7  ;;  %v957_v30 = vpop.f32.mrb[6].mxu0 }
 0x105   :  { %v958_v31 = vpop.f32.mrb[7].mxu0  ;;  %v1037_v32 = vpop.f32.mrb[6].mxu1 }
 0x106   :  { %v2016_v33 = vadd.f32 %v1036_v28, %v359_v29  ;;  %v959_v34 = vadd.f32 %v958_v31, %v957_v30  ;;  %v1038_v35 = vpop.f32.mrb[7].mxu1 }
 0x107   :  { %v1039_v36 = vadd.f32 %v1038_v35, %v1037_v32 }
 0x108   :  { %v364_v37 = vadd.f32 %v959_v34, %v2007_v7  ;;  %v960_v38 = vpop.f32.mrb[8].mxu0 }
 0x109   :  { %v961_v39 = vpop.f32.mrb[9].mxu0  ;;  %v1040_v40 = vpop.f32.mrb[8].mxu1 }
 0x10a   :  { %v2019_v41 = vadd.f32 %v1039_v36, %v364_v37  ;;  %v962_v42 = vadd.f32 %v961_v39, %v960_v38  ;;  %v1041_v43 = vpop.f32.mrb[9].mxu1 }
 0x10b   :  { %v1042_v44 = vadd.f32 %v1041_v43, %v1040_v40 }
 0x10c   :  { %v369_v45 = vadd.f32 %v962_v42, %v2007_v7  ;;  %v963_v46 = vpop.f32.mrb[10].mxu0 }
 0x10d   :  { %v964_v47 = vpop.f32.mrb[11].mxu0  ;;  %v1043_v48 = vpop.f32.mrb[10].mxu1 }
 0x10e   :  { %v2022_v49 = vadd.f32 %v1042_v44, %v369_v45  ;;  %v965_v50 = vadd.f32 %v964_v47, %v963_v46  ;;  %v1044_v51 = vpop.f32.mrb[11].mxu1 }
 0x10f   :  { %v1045_v52 = vadd.f32 %v1044_v51, %v1043_v48 }
 0x110   :  { %v374_v53 = vadd.f32 %v965_v50, %v2007_v7  ;;  %v966_v54 = vpop.f32.mrb[12].mxu0 }
 0x111   :  { %v967_v55 = vpop.f32.mrb[13].mxu0  ;;  %v1046_v56 = vpop.f32.mrb[12].mxu1 }
 0x112   :  { %v2025_v57 = vadd.f32 %v1045_v52, %v374_v53  ;;  %v968_v58 = vadd.f32 %v967_v55, %v966_v54  ;;  %v1047_v59 = vpop.f32.mrb[13].mxu1 }
 0x113   :  { %v1048_v60 = vadd.f32 %v1047_v59, %v1046_v56 }
 0x114   :  { %v379_v61 = vadd.f32 %v968_v58, %v2007_v7  ;;  %v969_v62 = vpop.f32.mrb[14].mxu0 }
 0x115   :  { %v970_v63 = vpop.f32.mrb[15].mxu0  ;;  %v1049_v0 = vpop.f32.mrb[14].mxu1 }
 0x116   :  { %v2028_v1 = vadd.f32 %v1048_v60, %v379_v61  ;;  %v971_v2 = vadd.f32 %v970_v63, %v969_v62  ;;  %v1050_v3 = vpop.f32.mrb[15].mxu1 }
 0x117   :  { %v1051_v4 = vadd.f32 %v1050_v3, %v1049_v0 }
 0x118   :  { %v384_v5 = vadd.f32 %v971_v2, %v2007_v7  ;;  %v972_v6 = vpop.f32.mrb[16].mxu0 }
 0x119   :  { %v973_v8 = vpop.f32.mrb[17].mxu0  ;;  %v1052_v9 = vpop.f32.mrb[16].mxu1 }
 0x11a   :  { %v2031_v10 = vadd.f32 %v1051_v4, %v384_v5  ;;  %v974_v11 = vadd.f32 %v973_v8, %v972_v6  ;;  %v1053_v12 = vpop.f32.mrb[17].mxu1 }
 0x11b   :  { %v1054_v13 = vadd.f32 %v1053_v12, %v1052_v9 }
 0x11c   :  { %v389_v14 = vadd.f32 %v974_v11, %v2007_v7  ;;  %v975_v15 = vpop.f32.mrb[18].mxu0 }
 0x11d   :  { %v976_v16 = vpop.f32.mrb[19].mxu0  ;;  %v1055_v18 = vpop.f32.mrb[18].mxu1 }
 0x11e   :  { %v2034_v19 = vadd.f32 %v1054_v13, %v389_v14  ;;  %v977_v20 = vadd.f32 %v976_v16, %v975_v15  ;;  %v1056_v21 = vpop.f32.mrb[19].mxu1 }
 0x11f   :  { %v1057_v22 = vadd.f32 %v1056_v21, %v1055_v18 }
 0x120   :  { %v394_v23 = vadd.f32 %v977_v20, %v2007_v7  ;;  %v978_v24 = vpop.f32.mrb[20].mxu0 }
 0x121   :  { %v979_v26 = vpop.f32.mrb[21].mxu0  ;;  %v1058_v27 = vpop.f32.mrb[20].mxu1 }
 0x122   :  { %v2037_v28 = vadd.f32 %v1057_v22, %v394_v23  ;;  %v980_v29 = vadd.f32 %v979_v26, %v978_v24  ;;  %v1059_v30 = vpop.f32.mrb[21].mxu1 }
 0x123   :  { %v1060_v31 = vadd.f32 %v1059_v30, %v1058_v27 }
 0x124   :  { %v399_v32 = vadd.f32 %v980_v29, %v2007_v7  ;;  %v981_v34 = vpop.f32.mrb[22].mxu0 }
 0x125   :  { %v982_v35 = vpop.f32.mrb[23].mxu0  ;;  %v1061_v36 = vpop.f32.mrb[22].mxu1 }
 0x126   :  { %v2040_v37 = vadd.f32 %v1060_v31, %v399_v32  ;;  %v983_v38 = vadd.f32 %v982_v35, %v981_v34  ;;  %v1062_v39 = vpop.f32.mrb[23].mxu1 }
 0x127   :  { %v1063_v40 = vadd.f32 %v1062_v39, %v1061_v36 }
 0x128   :  { %v404_v42 = vadd.f32 %v983_v38, %v2007_v7  ;;  %v984_v43 = vpop.f32.mrb[24].mxu0 }
 0x129   :  { %v985_v44 = vpop.f32.mrb[25].mxu0  ;;  %v1064_v45 = vpop.f32.mrb[24].mxu1 }
 0x12a   :  { %v2043_v46 = vadd.f32 %v1063_v40, %v404_v42  ;;  %v986_v47 = vadd.f32 %v985_v44, %v984_v43  ;;  %v1065_v48 = vpop.f32.mrb[25].mxu1 }
 0x12b   :  { %v1066_v50 = vadd.f32 %v1065_v48, %v1064_v45 }
 0x12c   :  { %v409_v51 = vadd.f32 %v986_v47, %v2007_v7  ;;  %v987_v52 = vpop.f32.mrb[26].mxu0 }
 0x12d   :  { %v988_v53 = vpop.f32.mrb[27].mxu0  ;;  %v1067_v54 = vpop.f32.mrb[26].mxu1 }
 0x12e   :  { %v554_v55 = vadd.f32 %v1066_v50, %v409_v51  ;;  %v989_v56 = vadd.f32 %v988_v53, %v987_v52  ;;  %v1068_v58 = vpop.f32.mrb[27].mxu1 }
 0x12f   :  { %v1069_v59 = vadd.f32 %v1068_v58, %v1067_v54 }
 0x130   :  { %v414_v60 = vadd.f32 %v989_v56, %v2007_v7  ;;  %v990_v61 = vpop.f32.mrb[28].mxu0 }
 0x131   :  { %v991_v62 = vpop.f32.mrb[29].mxu0  ;;  %v1070_v63 = vpop.f32.mrb[28].mxu1 }
 0x132   :  { %v559_v0 = vadd.f32 %v1069_v59, %v414_v60  ;;  %v992_v2 = vadd.f32 %v991_v62, %v990_v61  ;;  %v1071_v3 = vpop.f32.mrb[29].mxu1 }
 0x133   :  { %v1072_v4 = vadd.f32 %v1071_v3, %v1070_v63 }
 0x134   :  { %v419_v5 = vadd.f32 %v992_v2, %v2007_v7  ;;  %v993_v6 = vpop.f32.mrb[30].mxu0 }
 0x135   :  { %v994_v8 = vpop.f32.mrb[31].mxu0  ;;  %v1073_v9 = vpop.f32.mrb[30].mxu1 }
 0x136   :  { %v564_v11 = vadd.f32 %v1072_v4, %v419_v5  ;;  %v995_v12 = vadd.f32 %v994_v8, %v993_v6  ;;  %v1074_v13 = vpop.f32.mrb[31].mxu1 }
 0x137   :  { %v1075_v14 = vadd.f32 %v1074_v13, %v1073_v9 }
 0x138   :  { %v424_v15 = vadd.f32 %v995_v12, %v2007_v7  ;;  %v1108_v16 = vpop.f32.mrb[32].mxu0 }
 0x139   :  { %v1144_v18 = vpop.f32.mrb[32].mxu1  ;;  %v1109_v20 = vpop.f32.mrb[33].mxu0 }
 0x13a   :  { %v569_v21 = vadd.f32 %v1075_v14, %v424_v15  ;;  %v1110_v22 = vadd.f32 %v1109_v20, %v1108_v16  ;;  %v1145_v23 = vpop.f32.mrb[33].mxu1 }
 0x13b   :  { %v1146_v24 = vadd.f32 %v1145_v23, %v1144_v18 }
 0x13c   :  { %v1111_v26 = vpop.f32.mrb[34].mxu0  ;;  %v639_v27 = vadd.f32 %v1110_v22, %v2010_v17 }
 0x13d   :  { %v1147_v29 = vpop.f32.mrb[34].mxu1  ;;  %v1112_v30 = vpop.f32.mrb[35].mxu0  ;;  %v2050_v31 = vadd.f32 %v1146_v24, %v554_v55 }
 0x13e   :  { %v1113_v32 = vadd.f32 %v1112_v30, %v1111_v26  ;;  %v1148_v34 = vpop.f32.mrb[35].mxu1 }
 0x13f   :  { %v1149_v35 = vadd.f32 %v1148_v34, %v1147_v29 }
 0x140   :  { %v1114_v36 = vpop.f32.mrb[36].mxu0  ;;  %v644_v7 = vadd.f32 %v1113_v32, %v2013_v25 }
 0x141   :  { %v1150_v38 = vpop.f32.mrb[36].mxu1  ;;  %v1115_v39 = vpop.f32.mrb[37].mxu0  ;;  %v2053_v40 = vadd.f32 %v1149_v35, %v559_v0 }
 0x142   :  { %v1116_v42 = vadd.f32 %v1115_v39, %v1114_v36  ;;  %v1151_v43 = vpop.f32.mrb[37].mxu1 }
 0x143   :  { %v1152_v44 = vadd.f32 %v1151_v43, %v1150_v38 }
 0x144   :  { %v1117_v45 = vpop.f32.mrb[38].mxu0  ;;  %v649_v17 = vadd.f32 %v1116_v42, %v2016_v33 }
 0x145   :  { %v1153_v47 = vpop.f32.mrb[38].mxu1  ;;  %v1118_v48 = vpop.f32.mrb[39].mxu0  ;;  %v2056_v50 = vadd.f32 %v1152_v44, %v564_v11 }
 0x146   :  { %v1119_v51 = vadd.f32 %v1118_v48, %v1117_v45  ;;  %v1154_v52 = vpop.f32.mrb[39].mxu1 }
 0x147   :  { %v1155_v53 = vadd.f32 %v1154_v52, %v1153_v47 }
 0x148   :  { %v1120_v54 = vpop.f32.mrb[40].mxu0  ;;  %v654_v25 = vadd.f32 %v1119_v51, %v2019_v41 }
 0x149   :  { %v1186_v55 = vpop.f32.mrb[40].mxu1  ;;  %v1121_v56 = vpop.f32.mrb[41].mxu0  ;;  %v2059_v58 = vadd.f32 %v1155_v53, %v569_v21 }
 0x14a   :  { %v789_v59 = vadd.f32 %v1186_v55, %v644_v7  ;;  %v1122_v60 = vadd.f32 %v1121_v56, %v1120_v54  ;;  %v783_v61 = vpop.f32.mrb[41].mxu1 }
 0x14b   :  { %v784_v62 = vadd.f32 %v783_v61, %v639_v27 }
 0x14c   :  { %v863_v33 = vmax.f32 %v789_v59, 0.0  ;;  %v1123_v63 = vpop.f32.mrb[42].mxu0  ;;  %v659_v0 = vadd.f32 %v1122_v60, %v2022_v49 }
 0x14d   :  { %v862_v2 = vmax.f32 %v784_v62, 0.0  ;;  %v1189_v3 = vpop.f32.mrb[42].mxu1  ;;  %v1124_v4 = vpop.f32.mrb[43].mxu0 }
 0x14e   :  { %880 = vst.msk [vmem:[%s2140_s3 + $0x8] sm:$0xff] %vm878_vm1, %v863_v33  ;;  %v799_v41 = vadd.f32 %v1189_v3, %v654_v25  ;;  %v1125_v5 = vadd.f32 %v1124_v4, %v1123_v63  ;;  %v793_v6 = vpop.f32.mrb[43].mxu1 }
 0x14f   :  { %879 = vst.msk [vmem:[%s2140_s3] sm:$0xff] %vm878_vm1, %v862_v2  ;;  %v794_v8 = vadd.f32 %v793_v6, %v649_v17 }
 0x150   :  { %v865_v9 = vmax.f32 %v799_v41, 0.0  ;;  %v1126_v11 = vpop.f32.mrb[44].mxu0  ;;  %v664_v49 = vadd.f32 %v1125_v5, %v2025_v57 }
 0x151   :  { %v864_v12 = vmax.f32 %v794_v8, 0.0  ;;  %v1192_v13 = vpop.f32.mrb[44].mxu1  ;;  %v1127_v14 = vpop.f32.mrb[45].mxu0 }
 0x152   :  { %882 = vst.msk [vmem:[%s2140_s3 + $0x18] sm:$0xff] %vm878_vm1, %v865_v9  ;;  %v809_v15 = vadd.f32 %v1192_v13, %v664_v49  ;;  %v1128_v16 = vadd.f32 %v1127_v14, %v1126_v11  ;;  %v803_v18 = vpop.f32.mrb[45].mxu1 }
 0x153   :  { %881 = vst.msk [vmem:[%s2140_s3 + $0x10] sm:$0xff] %vm878_vm1, %v864_v12  ;;  %v804_v20 = vadd.f32 %v803_v18, %v659_v0 }
 0x154   :  { %v867_v21 = vmax.f32 %v809_v15, 0.0  ;;  %v1129_v22 = vpop.f32.mrb[46].mxu0  ;;  %v669_v57 = vadd.f32 %v1128_v16, %v2028_v1 }
 0x155   :  { %v866_v23 = vmax.f32 %v804_v20, 0.0  ;;  %v1195_v24 = vpop.f32.mrb[46].mxu1  ;;  %v1130_v26 = vpop.f32.mrb[47].mxu0 }
 0x156   :  { %884 = vst.msk [vmem:[%s2140_s3 + $0x28] sm:$0xff] %vm878_vm1, %v867_v21  ;;  %v1131_v27 = vadd.f32 %v1130_v26, %v1129_v22  ;;  %v813_v29 = vpop.f32.mrb[47].mxu1 }
 0x157   :  { %883 = vst.msk [vmem:[%s2140_s3 + $0x20] sm:$0xff] %vm878_vm1, %v866_v23  ;;  %v814_v30 = vadd.f32 %v813_v29, %v669_v57 }
 0x158   :  { %v674_v32 = vadd.f32 %v1131_v27, %v2031_v10  ;;  %v1132_v34 = vpop.f32.mrb[48].mxu0 }
 0x159   :  { %v868_v1 = vmax.f32 %v814_v30, 0.0  ;;  %v1133_v35 = vpop.f32.mrb[49].mxu0  ;;  %v1198_v36 = vpop.f32.mrb[48].mxu1 }
 0x15a   :  { %v819_v7 = vadd.f32 %v1195_v24, %v674_v32  ;;  %v1134_v38 = vadd.f32 %v1133_v35, %v1132_v34  ;;  %v823_v39 = vpop.f32.mrb[49].mxu1 }
 0x15b   :  { %885 = vst.msk [vmem:[%s2140_s3 + $0x30] sm:$0xff] %vm878_vm1, %v868_v1 }
 0x15c   :  { %v869_v42 = vmax.f32 %v819_v7, 0.0  ;;  %v1135_v43 = vpop.f32.mrb[50].mxu0  ;;  %v679_v44 = vadd.f32 %v1134_v38, %v2034_v19 }
 0x15d   :  { %v1136_v45 = vpop.f32.mrb[51].mxu0  ;;  %v1201_v17 = vpop.f32.mrb[50].mxu1 }
 0x15e   :  { %886 = vst.msk [vmem:[%s2140_s3 + $0x38] sm:$0xff] %vm878_vm1, %v869_v42  ;;  %v1137_v10 = vadd.f32 %v1136_v45, %v1135_v43  ;;  %v824_v47 = vadd.f32 %v823_v39, %v679_v44  ;;  %v833_v48 = vpop.f32.mrb[51].mxu1 }
 0x160   :  { %v684_v51 = vadd.f32 %v1137_v10, %v2037_v28  ;;  %v870_v52 = vmax.f32 %v824_v47, 0.0  ;;  %v1138_v53 = vpop.f32.mrb[52].mxu0 }
 0x161   :  { %v1204_v54 = vpop.f32.mrb[52].mxu1  ;;  %v1139_v25 = vpop.f32.mrb[53].mxu0 }
 0x162   :  { %v829_v55 = vadd.f32 %v1198_v36, %v684_v51  ;;  %887 = vst.msk [vmem:[%s2140_s3 + $0x40] sm:$0xff] %vm878_vm1, %v870_v52  ;;  %v849_v19 = vadd.f32 %v1204_v54, %v2053_v40  ;;  %v1140_v56 = vadd.f32 %v1139_v25, %v1138_v53  ;;  %v843_v59 = vpop.f32.mrb[53].mxu1 }
 0x163   :  { %v844_v60 = vadd.f32 %v843_v59, %v2050_v31 }
 0x164   :  { %v871_v61 = vmax.f32 %v829_v55, 0.0  ;;  %v875_v62 = vmax.f32 %v849_v19, 0.0  ;;  %v689_v28 = vadd.f32 %v1140_v56, %v2040_v37  ;;  %v1141_v33 = vpop.f32.mrb[54].mxu0 }
 0x165   :  { %v874_v63 = vmax.f32 %v844_v60, 0.0  ;;  %v1207_v0 = vpop.f32.mrb[54].mxu1  ;;  %v1142_v2 = vpop.f32.mrb[55].mxu0 }
 0x166   :  { %888 = vst.msk [vmem:[%s2140_s3 + $0x48] sm:$0xff] %vm878_vm1, %v871_v61  ;;  %892 = vst.msk [vmem:[%s2140_s3 + $0x68] sm:$0xff] %vm878_vm1, %v875_v62  ;;  %v834_v40 = vadd.f32 %v833_v48, %v689_v28  ;;  %v859_v31 = vadd.f32 %v1207_v0, %v2059_v58  ;;  %v1143_v3 = vadd.f32 %v1142_v2, %v1141_v33  ;;  %v853_v4 = vpop.f32.mrb[55].mxu1 }
 0x167   :  { %891 = vst.msk [vmem:[%s2140_s3 + $0x60] sm:$0xff] %vm878_vm1, %v874_v63  ;;  %v854_v37 = vadd.f32 %v853_v4, %v2056_v50 }
 0x168   :  { %v872_v41 = vmax.f32 %v834_v40, 0.0  ;;  %v877_v5 = vmax.f32 %v859_v31, 0.0  ;;  %v694_v6 = vadd.f32 %v1143_v3, %v2043_v46 }
 0x169   :  { %v876_v8 = vmax.f32 %v854_v37, 0.0 }
 0x16a   :  { %889 = vst.msk [vmem:[%s2140_s3 + $0x50] sm:$0xff] %vm878_vm1, %v872_v41  ;;  %894 = vst.msk [vmem:[%s2140_s3 + $0x78] sm:$0xff] %vm878_vm1, %v877_v5  ;;  %v839_v58 = vadd.f32 %v1201_v17, %v694_v6 }
 0x16b   :  { %893 = vst.msk [vmem:[%s2140_s3 + $0x70] sm:$0xff] %vm878_vm1, %v876_v8 }
 0x16c   :  { %v873_v50 = vmax.f32 %v839_v58, 0.0 }
 0x16e   :  { %890 = vst.msk [vmem:[%s2140_s3 + $0x58] sm:$0xff] %vm878_vm1, %v873_v50 }

// kernel: net_forward.9
= control target key start
LH: loop header
LB: loop body
LE: loop exit
PB: predicated region body
PF: predicated region fallthrough
CT: control target
= control target key end

     0   :  { %s3941_s0 = inlined_call_operand.vmem [shape: f32[2,1024], index: 0, kind: input, shape index: {}]   ;;  %s3942_s1 = inlined_call_operand.vmem [shape: f32[1024,512], index: 1, kind: input, shape index: {}]   ;;  %s3943_s2 = inlined_call_operand.vmem [shape: f32[1,512], index: 2, kind: input, shape index: {}]   ;;  %s3944_s3 = inlined_call_operand.vmem [shape: f32[512,10], index: 3, kind: input, shape index: {}]   ;;  %s3945_s4 = inlined_call_operand.vmem [shape: f32[1,10], index: 4, kind: input, shape index: {}]   ;;  %s3946_s5 = inlined_call_operand.hbm [shape: f32[2,10], index: 5, kind: output, shape index: {}]  }
   0x1   :  { %v24_v0 = vld [vmem:[%s3942_s1 + $0x8] sm:$0xff]  ;;  %v26_v2 = vld [vmem:[%s3942_s1 + $0x18] sm:$0xff]  ;;  %v23_v5 = vld [vmem:[%s3942_s1] sm:$0xff] }
   0x2   :  { %v28_v1 = vld [vmem:[%s3942_s1 + $0x28] sm:$0xff]  ;;  %v30_v4 = vld [vmem:[%s3942_s1 + $0x38] sm:$0xff]  ;;  %v27_v6 = vld [vmem:[%s3942_s1 + $0x20] sm:$0xff] }
   0x3   :  { %v1483_v3 = vpack.c.bf16 %v28_v1, %v24_v0  ;;  %v1739_v7 = vpack.c.bf16 %v30_v4, %v26_v2  ;;  %v1485_v8 = vpack.c.bf16 %v27_v6, %v23_v5  ;;  %v25_v9 = vld [vmem:[%s3942_s1 + $0x10] sm:$0xff]  ;;  %v32_v11 = vld [vmem:[%s3942_s1 + $0x48] sm:$0xff]  ;;  %v34_v14 = vld [vmem:[%s3942_s1 + $0x58] sm:$0xff] }
   0x4   :  { %v29_v10 = vld [vmem:[%s3942_s1 + $0x30] sm:$0xff]  ;;  %v36_v13 = vld [vmem:[%s3942_s1 + $0x68] sm:$0xff]  ;;  %v38_v15 = vld [vmem:[%s3942_s1 + $0x78] sm:$0xff] }
   0x5   :  { %1484 = vmatprep.subr.bf16.mxu0 %v1483_v3  ;;  %v1741_v12 = vpack.c.bf16 %v29_v10, %v25_v9  ;;  %1740 = vmatprep.subr.bf16.mxu1 %v1739_v7  ;;  %v1487_v16 = vpack.c.bf16 %v36_v13, %v32_v11  ;;  %v1743_v17 = vpack.c.bf16 %v38_v15, %v34_v14  ;;  %v31_v18 = vld [vmem:[%s3942_s1 + $0x40] sm:$0xff]  ;;  %v33_v20 = vld [vmem:[%s3942_s1 + $0x50] sm:$0xff]  ;;  %v40_v23 = vld [vmem:[%s3942_s1 + $0x88] sm:$0xff] }
   0x6   :  { %1486 = vmatpush1.bf16.msra.mxu0 %v1485_v8  ;;  %v35_v19 = vld [vmem:[%s3942_s1 + $0x60] sm:$0xff]  ;;  %v37_v22 = vld [vmem:[%s3942_s1 + $0x70] sm:$0xff]  ;;  %v44_v24 = vld [vmem:[%s3942_s1 + $0xa8] sm:$0xff] }
   0x7   :  { %1742 = vmatpush1.bf16.msra.mxu1 %v1741_v12  ;;  %v1489_v21 = vpack.c.bf16 %v35_v19, %v31_v18  ;;  %1488 = vmatprep.subr.bf16.mxu0 %v1487_v16  ;;  %v1745_v25 = vpack.c.bf16 %v37_v22, %v33_v20  ;;  %v1491_v26 = vpack.c.bf16 %v44_v24, %v40_v23  ;;  %v42_v27 = vld [vmem:[%s3942_s1 + $0x98] sm:$0xff]  ;;  %v39_v29 = vld [vmem:[%s3942_s1 + $0x80] sm:$0xff]  ;;  %v41_v32 = vld [vmem:[%s3942_s1 + $0x90] sm:$0xff] }
   0x8   :  { %1744 = vmatprep.subr.bf16.mxu1 %v1743_v17  ;;  %v46_v28 = vld [vmem:[%s3942_s1 + $0xb8] sm:$0xff]  ;;  %v43_v31 = vld [vmem:[%s3942_s1 + $0xa0] sm:$0xff]  ;;  %v45_v33 = vld [vmem:[%s3942_s1 + $0xb0] sm:$0xff] }
   0x9   :  { %v1747_v30 = vpack.c.bf16 %v46_v28, %v42_v27  ;;  %v1493_v34 = vpack.c.bf16 %v43_v31, %v39_v29  ;;  %v48_v35 = vld [vmem:[%s3942_s1 + $0xc8] sm:$0xff]  ;;  %v50_v37 = vld [vmem:[%s3942_s1 + $0xd8] sm:$0xff]  ;;  %v1749_v38 = vpack.c.bf16 %v45_v33, %v41_v32  ;;  %v47_v41 = vld [vmem:[%s3942_s1 + $0xc0] sm:$0xff] }
   0xa   :  { %1490 = vmatpush1.bf16.msra.mxu0 %v1489_v21  ;;  %v52_v36 = vld [vmem:[%s3942_s1 + $0xe8] sm:$0xff]  ;;  %v54_v40 = vld [vmem:[%s3942_s1 + $0xf8] sm:$0xff]  ;;  %v51_v42 = vld [vmem:[%s3942_s1 + $0xe0] sm:$0xff] }
   0xb   :  { %1746 = vmatpush1.bf16.msra.mxu1 %v1745_v25  ;;  %1492 = vmatprep.subr.bf16.mxu0 %v1491_v26  ;;  %v1495_v39 = vpack.c.bf16 %v52_v36, %v48_v35  ;;  %v1751_v43 = vpack.c.bf16 %v54_v40, %v50_v37  ;;  %v49_v44 = vld [vmem:[%s3942_s1 + $0xd0] sm:$0xff]  ;;  %v56_v46 = vld [vmem:[%s3942_s1 + $0x108] sm:$0xff]  ;;  %v58_v48 = vld [vmem:[%s3942_s1 + $0x118] sm:$0xff]  ;;  %v1497_v50 = vpack.c.bf16 %v51_v42, %v47_v41 }
   0xc   :  { %1748 = vmatprep.subr.bf16.mxu1 %v1747_v30  ;;  %v53_v45 = vld [vmem:[%s3942_s1 + $0xf0] sm:$0xff]  ;;  %v60_v47 = vld [vmem:[%s3942_s1 + $0x128] sm:$0xff]  ;;  %v62_v49 = vld [vmem:[%s3942_s1 + $0x138] sm:$0xff] }
   0xd   :  { %v1753_v51 = vpack.c.bf16 %v53_v45, %v49_v44  ;;  %v1499_v52 = vpack.c.bf16 %v60_v47, %v56_v46  ;;  %v55_v53 = vld [vmem:[%s3942_s1 + $0x100] sm:$0xff]  ;;  %v57_v55 = vld [vmem:[%s3942_s1 + $0x110] sm:$0xff]  ;;  %v1755_v56 = vpack.c.bf16 %v62_v49, %v58_v48  ;;  %v64_v58 = vld [vmem:[%s3942_s1 + $0x148] sm:$0xff]  ;;  %v537_v46 = vlaneseq }
   0xe   :  { %1494 = vmatpush1.bf16.msra.mxu0 %v1493_v34  ;;  %v59_v54 = vld [vmem:[%s3942_s1 + $0x120] sm:$0xff]  ;;  %v61_v57 = vld [vmem:[%s3942_s1 + $0x130] sm:$0xff]  ;;  %v68_v59 = vld [vmem:[%s3942_s1 + $0x168] sm:$0xff]  ;;  %v2107_v47 = vmov 1983009808  }
   0xf   :  { %1750 = vmatpush1.bf16.msra.mxu1 %v1749_v38  ;;  %1496 = vmatprep.subr.bf16.mxu0 %v1495_v39  ;;  %v66_v60 = vld [vmem:[%s3942_s1 + $0x158] sm:$0xff]  ;;  %v1501_v62 = vpack.c.bf16 %v59_v54, %v55_v53  ;;  %v1757_v63 = vpack.c.bf16 %v61_v57, %v57_v55  ;;  %v1503_v0 = vpack.c.bf16 %v68_v59, %v64_v58  ;;  %v63_v1 = vld [vmem:[%s3942_s1 + $0x140] sm:$0xff]  ;;  %v65_v3 = vld [vmem:[%s3942_s1 + $0x150] sm:$0xff]  ;;  %v561_v48 = vunpack.c.l.s4 %v2107_v47 }
  0x10   :  { %1752 = vmatprep.subr.bf16.mxu1 %v1751_v43  ;;  %v70_v61 = vld [vmem:[%s3942_s1 + $0x178] sm:$0xff]  ;;  %v67_v2 = vld [vmem:[%s3942_s1 + $0x160] sm:$0xff]  ;;  %v69_v5 = vld [vmem:[%s3942_s1 + $0x170] sm:$0xff] }
  0x11   :  { %v1759_v4 = vpack.c.bf16 %v70_v61, %v66_v60  ;;  %v72_v6 = vld [vmem:[%s3942_s1 + $0x188] sm:$0xff]  ;;  %v74_v8 = vld [vmem:[%s3942_s1 + $0x198] sm:$0xff]  ;;  %v1505_v10 = vpack.c.bf16 %v67_v2, %v63_v1  ;;  %v1761_v11 = vpack.c.bf16 %v69_v5, %v65_v3  ;;  %v71_v13 = vld [vmem:[%s3942_s1 + $0x180] sm:$0xff]  ;;  %v2391_v61 = vshrl.u32 %v537_v46, 7 }
  0x12   :  { %1498 = vmatpush1.bf16.msra.mxu0 %v1497_v50  ;;  %v76_v7 = vld [vmem:[%s3942_s1 + $0x1a8] sm:$0xff]  ;;  %v78_v9 = vld [vmem:[%s3942_s1 + $0x1b8] sm:$0xff]  ;;  %v75_v14 = vld [vmem:[%s3942_s1 + $0x1a0] sm:$0xff] }
  0x13   :  { %1754 = vmatpush1.bf16.msra.mxu1 %v1753_v51  ;;  %1500 = vmatprep.subr.bf16.mxu0 %v1499_v52  ;;  %v1507_v12 = vpack.c.bf16 %v76_v7, %v72_v6  ;;  %v73_v15 = vld [vmem:[%s3942_s1 + $0x190] sm:$0xff]  ;;  %v1763_v16 = vpack.c.bf16 %v78_v9, %v74_v8  ;;  %v80_v18 = vld [vmem:[%s3942_s1 + $0x1c8] sm:$0xff]  ;;  %v82_v20 = vld [vmem:[%s3942_s1 + $0x1d8] sm:$0xff]  ;;  %v1509_v22 = vpack.c.bf16 %v75_v14, %v71_v13 }
  0x14   :  { %1756 = vmatprep.subr.bf16.mxu1 %v1755_v56  ;;  %v77_v17 = vld [vmem:[%s3942_s1 + $0x1b0] sm:$0xff]  ;;  %v84_v19 = vld [vmem:[%s3942_s1 + $0x1e8] sm:$0xff]  ;;  %v86_v21 = vld [vmem:[%s3942_s1 + $0x1f8] sm:$0xff] }
  0x15   :  { %v1765_v23 = vpack.c.bf16 %v77_v17, %v73_v15  ;;  %v1511_v24 = vpack.c.bf16 %v84_v19, %v80_v18  ;;  %v79_v25 = vld [vmem:[%s3942_s1 + $0x1c0] sm:$0xff]  ;;  %v81_v27 = vld [vmem:[%s3942_s1 + $0x1d0] sm:$0xff]  ;;  %v1767_v28 = vpack.c.bf16 %v86_v21, %v82_v20  ;;  %v88_v30 = vld [vmem:[%s3942_s1 + $0x208] sm:$0xff] }
  0x16   :  { %1502 = vmatpush1.bf16.msra.mxu0 %v1501_v62  ;;  %v83_v26 = vld [vmem:[%s3942_s1 + $0x1e0] sm:$0xff]  ;;  %v85_v29 = vld [vmem:[%s3942_s1 + $0x1f0] sm:$0xff]  ;;  %v92_v31 = vld [vmem:[%s3942_s1 + $0x228] sm:$0xff]  ;;  %v562_v62 = vunpack.c.0.s8 %v561_v48 }
  0x17   :  { %1758 = vmatpush1.bf16.msra.mxu1 %v1757_v63  ;;  %1504 = vmatprep.subr.bf16.mxu0 %v1503_v0  ;;  %v90_v32 = vld [vmem:[%s3942_s1 + $0x218] sm:$0xff]  ;;  %v1513_v34 = vpack.c.bf16 %v83_v26, %v79_v25  ;;  %v1769_v35 = vpack.c.bf16 %v85_v29, %v81_v27  ;;  %v1515_v36 = vpack.c.bf16 %v92_v31, %v88_v30  ;;  %v87_v37 = vld [vmem:[%s3942_s1 + $0x200] sm:$0xff]  ;;  %v89_v39 = vld [vmem:[%s3942_s1 + $0x210] sm:$0xff] }
  0x18   :  { %1760 = vmatprep.subr.bf16.mxu1 %v1759_v4  ;;  %v94_v33 = vld [vmem:[%s3942_s1 + $0x238] sm:$0xff]  ;;  %v91_v38 = vld [vmem:[%s3942_s1 + $0x220] sm:$0xff]  ;;  %v93_v41 = vld [vmem:[%s3942_s1 + $0x230] sm:$0xff] }
  0x19   :  { %v1771_v40 = vpack.c.bf16 %v94_v33, %v90_v32  ;;  %v96_v42 = vld [vmem:[%s3942_s1 + $0x248] sm:$0xff]  ;;  %v98_v44 = vld [vmem:[%s3942_s1 + $0x258] sm:$0xff]  ;;  %v1517_v49 = vpack.c.bf16 %v91_v38, %v87_v37  ;;  %v1773_v50 = vpack.c.bf16 %v93_v41, %v89_v39  ;;  %v95_v52 = vld [vmem:[%s3942_s1 + $0x240] sm:$0xff] }
  0x1a   :  { %1506 = vmatpush1.bf16.msra.mxu0 %v1505_v10  ;;  %v100_v43 = vld [vmem:[%s3942_s1 + $0x268] sm:$0xff]  ;;  %v102_v45 = vld [vmem:[%s3942_s1 + $0x278] sm:$0xff]  ;;  %v99_v53 = vld [vmem:[%s3942_s1 + $0x260] sm:$0xff] }
  0x1b   :  { %1762 = vmatpush1.bf16.msra.mxu1 %v1761_v11  ;;  %1508 = vmatprep.subr.bf16.mxu0 %v1507_v12  ;;  %v1519_v51 = vpack.c.bf16 %v100_v43, %v96_v42  ;;  %v97_v54 = vld [vmem:[%s3942_s1 + $0x250] sm:$0xff]  ;;  %v1775_v55 = vpack.c.bf16 %v102_v45, %v98_v44  ;;  %v104_v57 = vld [vmem:[%s3942_s1 + $0x288] sm:$0xff]  ;;  %v106_v59 = vld [vmem:[%s3942_s1 + $0x298] sm:$0xff]  ;;  %v1521_v63 = vpack.c.bf16 %v99_v53, %v95_v52 }
  0x1c   :  { %1764 = vmatprep.subr.bf16.mxu1 %v1763_v16  ;;  %v101_v56 = vld [vmem:[%s3942_s1 + $0x270] sm:$0xff]  ;;  %v108_v58 = vld [vmem:[%s3942_s1 + $0x2a8] sm:$0xff]  ;;  %v110_v60 = vld [vmem:[%s3942_s1 + $0x2b8] sm:$0xff]  ;;  %v2418_v11 = vsub.s32 %v562_v62, %v2391_v61 }
  0x1d   :  { %v1777_v0 = vpack.c.bf16 %v101_v56, %v97_v54  ;;  %v1523_v1 = vpack.c.bf16 %v108_v58, %v104_v57  ;;  %v103_v2 = vld [vmem:[%s3942_s1 + $0x280] sm:$0xff]  ;;  %v105_v4 = vld [vmem:[%s3942_s1 + $0x290] sm:$0xff]  ;;  %v1779_v5 = vpack.c.bf16 %v110_v60, %v106_v59  ;;  %v112_v7 = vld [vmem:[%s3942_s1 + $0x2c8] sm:$0xff] }
  0x1e   :  { %1510 = vmatpush1.bf16.msra.mxu0 %v1509_v22  ;;  %v107_v3 = vld [vmem:[%s3942_s1 + $0x2a0] sm:$0xff]  ;;  %v109_v6 = vld [vmem:[%s3942_s1 + $0x2b0] sm:$0xff]  ;;  %v116_v8 = vld [vmem:[%s3942_s1 + $0x2e8] sm:$0xff] }
  0x1f   :  { %1766 = vmatpush1.bf16.msra.mxu1 %v1765_v23  ;;  %1512 = vmatprep.subr.bf16.mxu0 %v1511_v24  ;;  %v114_v9 = vld [vmem:[%s3942_s1 + $0x2d8] sm:$0xff]  ;;  %v1525_v12 = vpack.c.bf16 %v107_v3, %v103_v2  ;;  %v111_v13 = vld [vmem:[%s3942_s1 + $0x2c0] sm:$0xff]  ;;  %v1781_v14 = vpack.c.bf16 %v109_v6, %v105_v4  ;;  %v1527_v15 = vpack.c.bf16 %v116_v8, %v112_v7  ;;  %v113_v17 = vld [vmem:[%s3942_s1 + $0x2d0] sm:$0xff] }
  0x20   :  { %1768 = vmatprep.subr.bf16.mxu1 %v1767_v28  ;;  %v118_v10 = vld [vmem:[%s3942_s1 + $0x2f8] sm:$0xff]  ;;  %v115_v16 = vld [vmem:[%s3942_s1 + $0x2e0] sm:$0xff]  ;;  %v117_v18 = vld [vmem:[%s3942_s1 + $0x2f0] sm:$0xff] }
  0x21   :  { %v1783_v19 = vpack.c.bf16 %v118_v10, %v114_v9  ;;  %v120_v20 = vld [vmem:[%s3942_s1 + $0x308] sm:$0xff]  ;;  %v2441_v22 = vld [vmem:[%s3941_s0] sm:$0xff]  ;;  %v122_v23 = vld [vmem:[%s3942_s1 + $0x318] sm:$0xff]  ;;  %v1529_v26 = vpack.c.bf16 %v115_v16, %v111_v13  ;;  %v1785_v27 = vpack.c.bf16 %v117_v18, %v113_v17 }
  0x22   :  { %1514 = vmatpush1.bf16.msra.mxu0 %v1513_v34  ;;  %v124_v21 = vld [vmem:[%s3942_s1 + $0x328] sm:$0xff]  ;;  %v126_v24 = vld [vmem:[%s3942_s1 + $0x338] sm:$0xff]  ;;  %v2451_v25 = vrot.slane %v2441_v22, %v2418_v11  ;;  %v119_v29 = vld [vmem:[%s3942_s1 + $0x300] sm:$0xff]  ;;  %v559_v8 = vcombine.high %v2441_v22, %v2441_v22 }
  0x23   :  { %1770 = vmatpush1.bf16.msra.mxu1 %v1769_v35  ;;  %1516 = vmatprep.subr.bf16.mxu0 %v1515_v36  ;;  %v1531_v28 = vpack.c.bf16 %v124_v21, %v120_v20  ;;  %v123_v30 = vld [vmem:[%s3942_s1 + $0x320] sm:$0xff]  ;;  %v121_v31 = vld [vmem:[%s3942_s1 + $0x310] sm:$0xff]  ;;  %v1787_v33 = vpack.c.bf16 %v126_v24, %v122_v23  ;;  %v128_v35 = vld [vmem:[%s3942_s1 + $0x348] sm:$0xff] }
  0x24   :  { %1772 = vmatprep.subr.bf16.mxu1 %v1771_v40  ;;  %v574_v32 = vcombine.high %v2451_v25, %v2451_v25  ;;  %v125_v34 = vld [vmem:[%s3942_s1 + $0x330] sm:$0xff]  ;;  %v132_v36 = vld [vmem:[%s3942_s1 + $0x368] sm:$0xff]  ;;  %v130_v37 = vld [vmem:[%s3942_s1 + $0x358] sm:$0xff]  ;;  %v1533_v39 = vpack.c.bf16 %v123_v30, %v119_v29  ;;  %v2572_v24 = vrot.slane %v559_v8, %v2418_v11 }
  0x25   :  { %v134_v38 = vld [vmem:[%s3942_s1 + $0x378] sm:$0xff]  ;;  %v1789_v40 = vpack.c.bf16 %v125_v34, %v121_v31  ;;  %v1535_v41 = vpack.c.bf16 %v132_v36, %v128_v35  ;;  %v127_v42 = vld [vmem:[%s3942_s1 + $0x340] sm:$0xff]  ;;  %v129_v44 = vld [vmem:[%s3942_s1 + $0x350] sm:$0xff] }
  0x26   :  { %1518 = vmatpush1.bf16.msra.mxu0 %v1517_v49  ;;  %665 = vmatprep.mubr.f32.mxu0 %v574_v32  ;;  %v131_v43 = vld [vmem:[%s3942_s1 + $0x360] sm:$0xff]  ;;  %v1791_v45 = vpack.c.bf16 %v134_v38, %v130_v37  ;;  %v133_v46 = vld [vmem:[%s3942_s1 + $0x370] sm:$0xff]  ;;  %v136_v47 = vld [vmem:[%s3942_s1 + $0x388] sm:$0xff]  ;;  %v575_v38 = vcombine.high %v2572_v24, %v2572_v24 }
  0x27   :  { %1774 = vmatpush1.bf16.msra.mxu1 %v1773_v50  ;;  %1520 = vmatprep.subr.bf16.mxu0 %v1519_v51  ;;  %v140_v48 = vld [vmem:[%s3942_s1 + $0x3a8] sm:$0xff]  ;;  %v138_v49 = vld [vmem:[%s3942_s1 + $0x398] sm:$0xff]  ;;  %v1537_v51 = vpack.c.bf16 %v131_v43, %v127_v42  ;;  %v1793_v52 = vpack.c.bf16 %v133_v46, %v129_v44  ;;  %v135_v54 = vld [vmem:[%s3942_s1 + $0x380] sm:$0xff] }
  0x28   :  { %1776 = vmatprep.subr.bf16.mxu1 %v1775_v55  ;;  %949 = vmatprep.mubr.f32.mxu1 %v574_v32  ;;  %v142_v50 = vld [vmem:[%s3942_s1 + $0x3b8] sm:$0xff]  ;;  %v1539_v53 = vpack.c.bf16 %v140_v48, %v136_v47  ;;  %v139_v55 = vld [vmem:[%s3942_s1 + $0x3a0] sm:$0xff]  ;;  %v137_v56 = vld [vmem:[%s3942_s1 + $0x390] sm:$0xff] }
  0x29   :  { %v1795_v57 = vpack.c.bf16 %v142_v50, %v138_v49  ;;  %v141_v58 = vld [vmem:[%s3942_s1 + $0x3b0] sm:$0xff]  ;;  %v144_v59 = vld [vmem:[%s3942_s1 + $0x3c8] sm:$0xff]  ;;  %v146_v62 = vld [vmem:[%s3942_s1 + $0x3d8] sm:$0xff] }
  0x2a   :  { %1522 = vmatpush1.bf16.msra.mxu0 %v1521_v63  ;;  %v148_v60 = vld [vmem:[%s3942_s1 + $0x3e8] sm:$0xff]  ;;  %v150_v63 = vld [vmem:[%s3942_s1 + $0x3f8] sm:$0xff]  ;;  %v143_v3 = vld [vmem:[%s3942_s1 + $0x3c0] sm:$0xff] }
  0x2b   :  { %1778 = vmatpush1.bf16.msra.mxu1 %v1777_v0  ;;  %1524 = vmatprep.subr.bf16.mxu0 %v1523_v1  ;;  %v1541_v0 = vpack.c.bf16 %v139_v55, %v135_v54  ;;  %v1797_v1 = vpack.c.bf16 %v141_v58, %v137_v56  ;;  %v1543_v2 = vpack.c.bf16 %v148_v60, %v144_v59  ;;  %v147_v4 = vld [vmem:[%s3942_s1 + $0x3e0] sm:$0xff]  ;;  %v149_v7 = vld [vmem:[%s3942_s1 + $0x3f0] sm:$0xff]  ;;  %v152_v9 = vld [vmem:[%s3942_s1 + $0x408] sm:$0xff] }
  0x2c   :  { %1780 = vmatprep.subr.bf16.mxu1 %v1779_v5  ;;  %v145_v5 = vld [vmem:[%s3942_s1 + $0x3d0] sm:$0xff]  ;;  %v1799_v6 = vpack.c.bf16 %v150_v63, %v146_v62  ;;  %v156_v10 = vld [vmem:[%s3942_s1 + $0x428] sm:$0xff]  ;;  %v158_v13 = vld [vmem:[%s3942_s1 + $0x438] sm:$0xff] }
  0x2d   :  { %v1547_v16 = vpack.c.bf16 %v156_v10, %v152_v9  ;;  %v151_v17 = vld [vmem:[%s3942_s1 + $0x400] sm:$0xff]  ;;  %v157_v21 = vld [vmem:[%s3942_s1 + $0x430] sm:$0xff]  ;;  %v160_v22 = vld [vmem:[%s3942_s1 + $0x448] sm:$0xff] }
  0x2e   :  { %1526 = vmatpush1.bf16.msra.mxu0 %v1525_v12  ;;  %v154_v12 = vld [vmem:[%s3942_s1 + $0x418] sm:$0xff]  ;;  %v155_v18 = vld [vmem:[%s3942_s1 + $0x420] sm:$0xff]  ;;  %v164_v23 = vld [vmem:[%s3942_s1 + $0x468] sm:$0xff] }
  0x2f   :  { %1782 = vmatpush1.bf16.msra.mxu1 %v1781_v14  ;;  %1528 = vmatprep.subr.bf16.mxu0 %v1527_v15  ;;  %v1545_v14 = vpack.c.bf16 %v147_v4, %v143_v3  ;;  %v1801_v15 = vpack.c.bf16 %v149_v7, %v145_v5  ;;  %v1803_v20 = vpack.c.bf16 %v158_v13, %v154_v12  ;;  %v159_v31 = vld [vmem:[%s3942_s1 + $0x440] sm:$0xff]  ;;  %v165_v35 = vld [vmem:[%s3942_s1 + $0x470] sm:$0xff]  ;;  %v168_v36 = vld [vmem:[%s3942_s1 + $0x488] sm:$0xff] }
  0x30   :  { %1784 = vmatprep.subr.bf16.mxu1 %v1783_v19  ;;  %v153_v19 = vld [vmem:[%s3942_s1 + $0x410] sm:$0xff]  ;;  %v1551_v30 = vpack.c.bf16 %v164_v23, %v160_v22  ;;  %v163_v32 = vld [vmem:[%s3942_s1 + $0x460] sm:$0xff]  ;;  %v172_v37 = vld [vmem:[%s3942_s1 + $0x4a8] sm:$0xff] }
  0x31   :  { %v1805_v29 = vpack.c.bf16 %v157_v21, %v153_v19  ;;  %v1555_v43 = vpack.c.bf16 %v172_v37, %v168_v36  ;;  %v167_v44 = vld [vmem:[%s3942_s1 + $0x480] sm:$0xff]  ;;  %v169_v46 = vld [vmem:[%s3942_s1 + $0x490] sm:$0xff]  ;;  %v176_v48 = vld [vmem:[%s3942_s1 + $0x4c8] sm:$0xff] }
  0x32   :  { %1530 = vmatpush1.bf16.msra.mxu0 %v1529_v26  ;;  %v162_v26 = vld [vmem:[%s3942_s1 + $0x458] sm:$0xff]  ;;  %v180_v49 = vld [vmem:[%s3942_s1 + $0x4e8] sm:$0xff]  ;;  %v175_v55 = vld [vmem:[%s3942_s1 + $0x4c0] sm:$0xff] }
  0x33   :  { %1786 = vmatpush1.bf16.msra.mxu1 %v1785_v27  ;;  %1532 = vmatprep.subr.bf16.mxu0 %v1531_v28  ;;  %v166_v27 = vld [vmem:[%s3942_s1 + $0x478] sm:$0xff]  ;;  %v1549_v28 = vpack.c.bf16 %v155_v18, %v151_v17  ;;  %v1559_v54 = vpack.c.bf16 %v180_v49, %v176_v48  ;;  %v179_v56 = vld [vmem:[%s3942_s1 + $0x4e0] sm:$0xff]  ;;  %v181_v59 = vld [vmem:[%s3942_s1 + $0x4f0] sm:$0xff] }
  0x34   :  { %1788 = vmatprep.subr.bf16.mxu1 %v1787_v33  ;;  %v161_v33 = vld [vmem:[%s3942_s1 + $0x450] sm:$0xff]  ;;  %v1807_v34 = vpack.c.bf16 %v166_v27, %v162_v26  ;;  %v178_v50 = vld [vmem:[%s3942_s1 + $0x4d8] sm:$0xff]  ;;  %v184_v60 = vld [vmem:[%s3942_s1 + $0x508] sm:$0xff] }
  0x35   :  { %v1809_v42 = vpack.c.bf16 %v165_v35, %v161_v33  ;;  %v188_v62 = vld [vmem:[%s3942_s1 + $0x528] sm:$0xff]  ;;  %v186_v63 = vld [vmem:[%s3942_s1 + $0x518] sm:$0xff]  ;;  %v183_v4 = vld [vmem:[%s3942_s1 + $0x500] sm:$0xff] }
  0x36   :  { %1534 = vmatpush1.bf16.msra.mxu0 %v1533_v39  ;;  %v170_v39 = vld [vmem:[%s3942_s1 + $0x498] sm:$0xff]  ;;  %v1563_v3 = vpack.c.bf16 %v188_v62, %v184_v60  ;;  %v187_v5 = vld [vmem:[%s3942_s1 + $0x520] sm:$0xff]  ;;  %v189_v8 = vld [vmem:[%s3942_s1 + $0x530] sm:$0xff] }
  0x37   :  { %1790 = vmatpush1.bf16.msra.mxu1 %v1789_v40  ;;  %1536 = vmatprep.subr.bf16.mxu0 %v1535_v41  ;;  %v174_v40 = vld [vmem:[%s3942_s1 + $0x4b8] sm:$0xff]  ;;  %v1553_v41 = vpack.c.bf16 %v163_v32, %v159_v31  ;;  %v192_v9 = vld [vmem:[%s3942_s1 + $0x548] sm:$0xff]  ;;  %v191_v17 = vld [vmem:[%s3942_s1 + $0x540] sm:$0xff] }
  0x38   :  { %1792 = vmatprep.subr.bf16.mxu1 %v1791_v45  ;;  %v171_v45 = vld [vmem:[%s3942_s1 + $0x4a0] sm:$0xff]  ;;  %v1811_v47 = vpack.c.bf16 %v174_v40, %v170_v39  ;;  %v196_v10 = vld [vmem:[%s3942_s1 + $0x568] sm:$0xff]  ;;  %v194_v12 = vld [vmem:[%s3942_s1 + $0x558] sm:$0xff] }
  0x39   :  { %v198_v13 = vld [vmem:[%s3942_s1 + $0x578] sm:$0xff]  ;;  %v195_v18 = vld [vmem:[%s3942_s1 + $0x560] sm:$0xff]  ;;  %v193_v19 = vld [vmem:[%s3942_s1 + $0x550] sm:$0xff] }
  0x3a   :  { %1538 = vmatpush1.bf16.msra.mxu0 %v1537_v51  ;;  %v182_v51 = vld [vmem:[%s3942_s1 + $0x4f8] sm:$0xff]  ;;  %v197_v21 = vld [vmem:[%s3942_s1 + $0x570] sm:$0xff]  ;;  %v200_v22 = vld [vmem:[%s3942_s1 + $0x588] sm:$0xff] }
  0x3b   :  { %1794 = vmatpush1.bf16.msra.mxu1 %v1793_v52  ;;  %1540 = vmatprep.subr.bf16.mxu0 %v1539_v53  ;;  %v1557_v52 = vpack.c.bf16 %v171_v45, %v167_v44  ;;  %v1815_v58 = vpack.c.bf16 %v182_v51, %v178_v50  ;;  %v204_v23 = vld [vmem:[%s3942_s1 + $0x5a8] sm:$0xff]  ;;  %v202_v26 = vld [vmem:[%s3942_s1 + $0x598] sm:$0xff]  ;;  %v199_v31 = vld [vmem:[%s3942_s1 + $0x580] sm:$0xff] }
  0x3c   :  { %1796 = vmatprep.subr.bf16.mxu1 %v1795_v57  ;;  %v177_v57 = vld [vmem:[%s3942_s1 + $0x4d0] sm:$0xff]  ;;  %v206_v27 = vld [vmem:[%s3942_s1 + $0x5b8] sm:$0xff]  ;;  %v203_v32 = vld [vmem:[%s3942_s1 + $0x5a0] sm:$0xff] }
  0x3d   :  { %v201_v33 = vld [vmem:[%s3942_s1 + $0x590] sm:$0xff]  ;;  %v208_v36 = vld [vmem:[%s3942_s1 + $0x5c8] sm:$0xff]  ;;  %v214_v39 = vld [vmem:[%s3942_s1 + $0x5f8] sm:$0xff]  ;;  %v1573_v40 = vpack.c.bf16 %v203_v32, %v199_v31 }
  0x3e   :  { %1542 = vmatpush1.bf16.msra.mxu0 %v1541_v0  ;;  %v190_v0 = vld [vmem:[%s3942_s1 + $0x538] sm:$0xff]  ;;  %v205_v35 = vld [vmem:[%s3942_s1 + $0x5b0] sm:$0xff]  ;;  %v212_v37 = vld [vmem:[%s3942_s1 + $0x5e8] sm:$0xff] }
  0x3f   :  { %1798 = vmatpush1.bf16.msra.mxu1 %v1797_v1  ;;  %1544 = vmatprep.subr.bf16.mxu0 %v1543_v2  ;;  %v1561_v1 = vpack.c.bf16 %v179_v56, %v175_v55  ;;  %v1817_v2 = vpack.c.bf16 %v181_v59, %v177_v57  ;;  %v1819_v7 = vpack.c.bf16 %v190_v0, %v186_v63  ;;  %v211_v44 = vld [vmem:[%s3942_s1 + $0x5e0] sm:$0xff]  ;;  %v209_v45 = vld [vmem:[%s3942_s1 + $0x5d0] sm:$0xff]  ;;  %v220_v48 = vld [vmem:[%s3942_s1 + $0x628] sm:$0xff] }
  0x40   :  { %1800 = vmatprep.subr.bf16.mxu1 %v1799_v6  ;;  %v185_v6 = vld [vmem:[%s3942_s1 + $0x510] sm:$0xff]  ;;  %v218_v49 = vld [vmem:[%s3942_s1 + $0x618] sm:$0xff]  ;;  %v219_v55 = vld [vmem:[%s3942_s1 + $0x620] sm:$0xff] }
  0x41   :  { %v222_v50 = vld [vmem:[%s3942_s1 + $0x638] sm:$0xff]  ;;  %v217_v56 = vld [vmem:[%s3942_s1 + $0x610] sm:$0xff]  ;;  %v224_v59 = vld [vmem:[%s3942_s1 + $0x648] sm:$0xff] }
  0x42   :  { %1546 = vmatpush1.bf16.msra.mxu0 %v1545_v14  ;;  %v1565_v14 = vpack.c.bf16 %v187_v5, %v183_v4  ;;  %v1835_v57 = vpack.c.bf16 %v222_v50, %v218_v49  ;;  %v228_v60 = vld [vmem:[%s3942_s1 + $0x668] sm:$0xff]  ;;  %v226_v62 = vld [vmem:[%s3942_s1 + $0x658] sm:$0xff]  ;;  %v227_v4 = vld [vmem:[%s3942_s1 + $0x660] sm:$0xff] }
  0x43   :  { %1802 = vmatpush1.bf16.msra.mxu1 %v1801_v15  ;;  %1548 = vmatprep.subr.bf16.mxu0 %v1547_v16  ;;  %v1821_v15 = vpack.c.bf16 %v189_v8, %v185_v6  ;;  %v1567_v16 = vpack.c.bf16 %v196_v10, %v192_v9  ;;  %v230_v63 = vld [vmem:[%s3942_s1 + $0x678] sm:$0xff]  ;;  %v225_v5 = vld [vmem:[%s3942_s1 + $0x650] sm:$0xff]  ;;  %v232_v8 = vld [vmem:[%s3942_s1 + $0x688] sm:$0xff] }
  0x44   :  { %1804 = vmatprep.subr.bf16.mxu1 %v1803_v20  ;;  %v1823_v20 = vpack.c.bf16 %v198_v13, %v194_v12  ;;  %v1839_v6 = vpack.c.bf16 %v230_v63, %v226_v62  ;;  %v236_v9 = vld [vmem:[%s3942_s1 + $0x6a8] sm:$0xff]  ;;  %v234_v10 = vld [vmem:[%s3942_s1 + $0x698] sm:$0xff]  ;;  %v243_v31 = vld [vmem:[%s3942_s1 + $0x6e0] sm:$0xff] }
  0x45   :  { %666 = vmatmul.mubr.f32.vlgmr.msra.gmra.mrb[0].mxu0 %v2451_v25  ;;  %v238_v12 = vld [vmem:[%s3942_s1 + $0x6b8] sm:$0xff]  ;;  %v241_v32 = vld [vmem:[%s3942_s1 + $0x6d0] sm:$0xff] }
  0x46   :  { %1550 = vmatpush1.bf16.msra.mxu0 %v1549_v28  ;;  %950 = vmatmul.mubr.f32.vlgmr.msra.gmra.mrb[0].mxu1 %v2451_v25  ;;  %v173_v25 = vld [vmem:[%s3942_s1 + $0x4b0] sm:$0xff]  ;;  %v1569_v28 = vpack.c.bf16 %v195_v18, %v191_v17  ;;  %v235_v17 = vld [vmem:[%s3942_s1 + $0x6a0] sm:$0xff]  ;;  %v262_v49 = vld [vmem:[%s3942_s1 + $0x778] sm:$0xff] }
  0x47   :  { %1806 = vmatpush1.bf16.msra.mxu1 %v1805_v29  ;;  %1552 = vmatprep.subr.bf16.mxu0 %v1551_v30  ;;  %v1813_v53 = vpack.c.bf16 %v173_v25, %v169_v46  ;;  %v1825_v29 = vpack.c.bf16 %v197_v21, %v193_v19  ;;  %v1571_v30 = vpack.c.bf16 %v204_v23, %v200_v22  ;;  %v216_v25 = vld [vmem:[%s3942_s1 + $0x608] sm:$0xff]  ;;  %v233_v18 = vld [vmem:[%s3942_s1 + $0x690] sm:$0xff]  ;;  %v242_v23 = vld [vmem:[%s3942_s1 + $0x6d8] sm:$0xff] }
  0x48   :  { %1808 = vmatprep.subr.bf16.mxu1 %v1807_v34  ;;  %736 = vmatprep.mubr.f32.mxu0 %v575_v38  ;;  %v1827_v34 = vpack.c.bf16 %v206_v27, %v202_v26  ;;  %v1843_v19 = vpack.c.bf16 %v238_v12, %v234_v10  ;;  %v240_v21 = vld [vmem:[%s3942_s1 + $0x6c8] sm:$0xff]  ;;  %v246_v26 = vld [vmem:[%s3942_s1 + $0x6f8] sm:$0xff] }
  0x49   :  { %1020 = vmatprep.mubr.f32.mxu1 %v575_v38  ;;  %v210_v38 = vld [vmem:[%s3942_s1 + $0x5d8] sm:$0xff]  ;;  %v244_v22 = vld [vmem:[%s3942_s1 + $0x6e8] sm:$0xff] }
  0x4a   :  { %1554 = vmatpush1.bf16.msra.mxu0 %v1553_v41  ;;  %v1829_v41 = vpack.c.bf16 %v205_v35, %v201_v33  ;;  %v1831_v46 = vpack.c.bf16 %v214_v39, %v210_v38  ;;  %v1847_v33 = vpack.c.bf16 %v246_v26, %v242_v23  ;;  %v248_v35 = vld [vmem:[%s3942_s1 + $0x708] sm:$0xff]  ;;  %v254_v38 = vld [vmem:[%s3942_s1 + $0x738] sm:$0xff] }
  0x4b   :  { %1810 = vmatpush1.bf16.msra.mxu1 %v1809_v42  ;;  %1556 = vmatprep.subr.bf16.mxu0 %v1555_v43  ;;  %v1575_v42 = vpack.c.bf16 %v212_v37, %v208_v36  ;;  %v207_v43 = vld [vmem:[%s3942_s1 + $0x5c0] sm:$0xff]  ;;  %v252_v36 = vld [vmem:[%s3942_s1 + $0x728] sm:$0xff]  ;;  %v250_v37 = vld [vmem:[%s3942_s1 + $0x718] sm:$0xff] }
  0x4c   :  { %1812 = vmatprep.subr.bf16.mxu1 %v1811_v47  ;;  %v213_v47 = vld [vmem:[%s3942_s1 + $0x5f0] sm:$0xff]  ;;  %v1577_v51 = vpack.c.bf16 %v211_v44, %v207_v43  ;;  %v251_v43 = vld [vmem:[%s3942_s1 + $0x720] sm:$0xff]  ;;  %v270_v62 = vld [vmem:[%s3942_s1 + $0x7b8] sm:$0xff] }
  0x4d   :  { %v249_v44 = vld [vmem:[%s3942_s1 + $0x710] sm:$0xff]  ;;  %v278_v10 = vld [vmem:[%s3942_s1 + $0x7f8] sm:$0xff] }
  0x4e   :  { %1558 = vmatpush1.bf16.msra.mxu0 %v1557_v52  ;;  %v1833_v52 = vpack.c.bf16 %v213_v47, %v209_v45  ;;  %v1851_v45 = vpack.c.bf16 %v254_v38, %v250_v37  ;;  %v256_v47 = vld [vmem:[%s3942_s1 + $0x748] sm:$0xff]  ;;  %v286_v23 = vld [vmem:[%s3942_s1 + $0x838] sm:$0xff] }
  0x4f   :  { %1814 = vmatpush1.bf16.msra.mxu1 %v1813_v53  ;;  %1560 = vmatprep.subr.bf16.mxu0 %v1559_v54  ;;  %v1579_v53 = vpack.c.bf16 %v220_v48, %v216_v25  ;;  %v215_v54 = vld [vmem:[%s3942_s1 + $0x600] sm:$0xff]  ;;  %v260_v25 = vld [vmem:[%s3942_s1 + $0x768] sm:$0xff]  ;;  %v258_v48 = vld [vmem:[%s3942_s1 + $0x758] sm:$0xff] }
  0x50   :  { %1816 = vmatprep.subr.bf16.mxu1 %v1815_v58  ;;  %v221_v58 = vld [vmem:[%s3942_s1 + $0x630] sm:$0xff]  ;;  %v1581_v0 = vpack.c.bf16 %v219_v55, %v215_v54  ;;  %v259_v54 = vld [vmem:[%s3942_s1 + $0x760] sm:$0xff]  ;;  %v294_v37 = vld [vmem:[%s3942_s1 + $0x878] sm:$0xff] }
  0x51   :  { %v257_v55 = vld [vmem:[%s3942_s1 + $0x750] sm:$0xff] }
  0x52   :  { %1562 = vmatpush1.bf16.msra.mxu0 %v1561_v1  ;;  %v1837_v1 = vpack.c.bf16 %v221_v58, %v217_v56  ;;  %v1855_v56 = vpack.c.bf16 %v262_v49, %v258_v48  ;;  %v264_v58 = vld [vmem:[%s3942_s1 + $0x788] sm:$0xff]  ;;  %v298_v49 = vld [vmem:[%s3942_s1 + $0x898] sm:$0xff] }
  0x53   :  { %1818 = vmatpush1.bf16.msra.mxu1 %v1817_v2  ;;  %1564 = vmatprep.subr.bf16.mxu0 %v1563_v3  ;;  %v1583_v2 = vpack.c.bf16 %v228_v60, %v224_v59  ;;  %v223_v3 = vld [vmem:[%s3942_s1 + $0x640] sm:$0xff]  ;;  %v268_v59 = vld [vmem:[%s3942_s1 + $0x7a8] sm:$0xff]  ;;  %v266_v60 = vld [vmem:[%s3942_s1 + $0x798] sm:$0xff] }
  0x54   :  { %1820 = vmatprep.subr.bf16.mxu1 %v1819_v7  ;;  %v229_v7 = vld [vmem:[%s3942_s1 + $0x670] sm:$0xff]  ;;  %v1585_v13 = vpack.c.bf16 %v227_v4, %v223_v3  ;;  %v267_v3 = vld [vmem:[%s3942_s1 + $0x7a0] sm:$0xff]  ;;  %v300_v48 = vld [vmem:[%s3942_s1 + $0x8a8] sm:$0xff] }
  0x55   :  { %v265_v4 = vld [vmem:[%s3942_s1 + $0x790] sm:$0xff] }
  0x56   :  { %1566 = vmatpush1.bf16.msra.mxu0 %v1565_v14  ;;  %v1841_v14 = vpack.c.bf16 %v229_v7, %v225_v5  ;;  %v1859_v5 = vpack.c.bf16 %v270_v62, %v266_v60  ;;  %v272_v7 = vld [vmem:[%s3942_s1 + $0x7c8] sm:$0xff]  ;;  %v306_v62 = vld [vmem:[%s3942_s1 + $0x8d8] sm:$0xff] }
  0x57   :  { %1822 = vmatpush1.bf16.msra.mxu1 %v1821_v15  ;;  %1568 = vmatprep.subr.bf16.mxu0 %v1567_v16  ;;  %v1587_v15 = vpack.c.bf16 %v236_v9, %v232_v8  ;;  %v231_v16 = vld [vmem:[%s3942_s1 + $0x680] sm:$0xff]  ;;  %v276_v8 = vld [vmem:[%s3942_s1 + $0x7e8] sm:$0xff]  ;;  %v274_v9 = vld [vmem:[%s3942_s1 + $0x7d8] sm:$0xff] }
  0x58   :  { %1824 = vmatprep.subr.bf16.mxu1 %v1823_v20  ;;  %v237_v20 = vld [vmem:[%s3942_s1 + $0x6b0] sm:$0xff]  ;;  %v1589_v27 = vpack.c.bf16 %v235_v17, %v231_v16  ;;  %v275_v16 = vld [vmem:[%s3942_s1 + $0x7e0] sm:$0xff]  ;;  %v308_v60 = vld [vmem:[%s3942_s1 + $0x8e8] sm:$0xff] }
  0x59   :  { %v273_v17 = vld [vmem:[%s3942_s1 + $0x7d0] sm:$0xff] }
  0x5a   :  { %1570 = vmatpush1.bf16.msra.mxu0 %v1569_v28  ;;  %v1845_v28 = vpack.c.bf16 %v237_v20, %v233_v18  ;;  %v1863_v18 = vpack.c.bf16 %v278_v10, %v274_v9  ;;  %v280_v20 = vld [vmem:[%s3942_s1 + $0x808] sm:$0xff]  ;;  %v314_v10 = vld [vmem:[%s3942_s1 + $0x918] sm:$0xff] }
  0x5b   :  { %1826 = vmatpush1.bf16.msra.mxu1 %v1825_v29  ;;  %1572 = vmatprep.subr.bf16.mxu0 %v1571_v30  ;;  %v1591_v29 = vpack.c.bf16 %v244_v22, %v240_v21  ;;  %v239_v30 = vld [vmem:[%s3942_s1 + $0x6c0] sm:$0xff]  ;;  %v284_v21 = vld [vmem:[%s3942_s1 + $0x828] sm:$0xff]  ;;  %v282_v22 = vld [vmem:[%s3942_s1 + $0x818] sm:$0xff] }
  0x5c   :  { %1828 = vmatprep.subr.bf16.mxu1 %v1827_v34  ;;  %v245_v34 = vld [vmem:[%s3942_s1 + $0x6f0] sm:$0xff]  ;;  %v1593_v39 = vpack.c.bf16 %v243_v31, %v239_v30  ;;  %v283_v30 = vld [vmem:[%s3942_s1 + $0x820] sm:$0xff]  ;;  %v316_v9 = vld [vmem:[%s3942_s1 + $0x928] sm:$0xff] }
  0x5d   :  { %v281_v31 = vld [vmem:[%s3942_s1 + $0x810] sm:$0xff] }
  0x5e   :  { %1574 = vmatpush1.bf16.msra.mxu0 %v1573_v40  ;;  %v1849_v40 = vpack.c.bf16 %v245_v34, %v241_v32  ;;  %v1867_v32 = vpack.c.bf16 %v286_v23, %v282_v22  ;;  %v288_v34 = vld [vmem:[%s3942_s1 + $0x848] sm:$0xff]  ;;  %v322_v23 = vld [vmem:[%s3942_s1 + $0x958] sm:$0xff] }
  0x5f   :  { %1830 = vmatpush1.bf16.msra.mxu1 %v1829_v41  ;;  %1576 = vmatprep.subr.bf16.mxu0 %v1575_v42  ;;  %v1595_v41 = vpack.c.bf16 %v252_v36, %v248_v35  ;;  %v247_v42 = vld [vmem:[%s3942_s1 + $0x700] sm:$0xff]  ;;  %v292_v35 = vld [vmem:[%s3942_s1 + $0x868] sm:$0xff]  ;;  %v290_v36 = vld [vmem:[%s3942_s1 + $0x858] sm:$0xff] }
  0x60   :  { %1832 = vmatprep.subr.bf16.mxu1 %v1831_v46  ;;  %v253_v46 = vld [vmem:[%s3942_s1 + $0x730] sm:$0xff]  ;;  %v1597_v50 = vpack.c.bf16 %v251_v43, %v247_v42  ;;  %v287_v42 = vld [vmem:[%s3942_s1 + $0x840] sm:$0xff]  ;;  %v324_v22 = vld [vmem:[%s3942_s1 + $0x968] sm:$0xff] }
  0x61   :  { %v291_v43 = vld [vmem:[%s3942_s1 + $0x860] sm:$0xff] }
  0x62   :  { %1578 = vmatpush1.bf16.msra.mxu0 %v1577_v51  ;;  %v1853_v51 = vpack.c.bf16 %v253_v46, %v249_v44  ;;  %v289_v44 = vld [vmem:[%s3942_s1 + $0x850] sm:$0xff]  ;;  %v1871_v46 = vpack.c.bf16 %v294_v37, %v290_v36  ;;  %v332_v36 = vld [vmem:[%s3942_s1 + $0x9a8] sm:$0xff]  ;;  %v330_v37 = vld [vmem:[%s3942_s1 + $0x998] sm:$0xff] }
  0x63   :  { %1834 = vmatpush1.bf16.msra.mxu1 %v1833_v52  ;;  %1580 = vmatprep.subr.bf16.mxu0 %v1579_v53  ;;  %v1599_v52 = vpack.c.bf16 %v260_v25, %v256_v47  ;;  %v255_v53 = vld [vmem:[%s3942_s1 + $0x740] sm:$0xff]  ;;  %v293_v47 = vld [vmem:[%s3942_s1 + $0x870] sm:$0xff]  ;;  %v296_v25 = vld [vmem:[%s3942_s1 + $0x888] sm:$0xff] }
  0x64   :  { %1836 = vmatprep.subr.bf16.mxu1 %v1835_v57  ;;  %v261_v57 = vld [vmem:[%s3942_s1 + $0x770] sm:$0xff]  ;;  %v1601_v63 = vpack.c.bf16 %v259_v54, %v255_v53  ;;  %v1873_v53 = vpack.c.bf16 %v293_v47, %v289_v44  ;;  %v1619_v54 = vpack.c.bf16 %v300_v48, %v296_v25  ;;  %v331_v44 = vld [vmem:[%s3942_s1 + $0x9a0] sm:$0xff]  ;;  %v336_v48 = vld [vmem:[%s3942_s1 + $0x9c8] sm:$0xff] }
  0x65   :  { %v333_v25 = vld [vmem:[%s3942_s1 + $0x9b0] sm:$0xff] }
  0x66   :  { %1582 = vmatpush1.bf16.msra.mxu0 %v1581_v0  ;;  %v1857_v0 = vpack.c.bf16 %v261_v57, %v257_v55  ;;  %v295_v55 = vld [vmem:[%s3942_s1 + $0x880] sm:$0xff]  ;;  %v297_v57 = vld [vmem:[%s3942_s1 + $0x890] sm:$0xff] }
  0x67   :  { %1838 = vmatpush1.bf16.msra.mxu1 %v1837_v1  ;;  %1584 = vmatprep.subr.bf16.mxu0 %v1583_v2  ;;  %v1603_v1 = vpack.c.bf16 %v268_v59, %v264_v58  ;;  %v263_v2 = vld [vmem:[%s3942_s1 + $0x780] sm:$0xff]  ;;  %v304_v59 = vld [vmem:[%s3942_s1 + $0x8c8] sm:$0xff] }
  0x68   :  { %1840 = vmatprep.subr.bf16.mxu1 %v1839_v6  ;;  %v269_v6 = vld [vmem:[%s3942_s1 + $0x7b0] sm:$0xff]  ;;  %v1605_v12 = vpack.c.bf16 %v267_v3, %v263_v2  ;;  %v1623_v2 = vpack.c.bf16 %v308_v60, %v304_v59  ;;  %v303_v3 = vld [vmem:[%s3942_s1 + $0x8c0] sm:$0xff]  ;;  %v344_v59 = vld [vmem:[%s3942_s1 + $0xa08] sm:$0xff] }
  0x69   :  { %v348_v60 = vld [vmem:[%s3942_s1 + $0xa28] sm:$0xff] }
  0x6a   :  { %1586 = vmatpush1.bf16.msra.mxu0 %v1585_v13  ;;  %v1861_v13 = vpack.c.bf16 %v269_v6, %v265_v4  ;;  %v307_v4 = vld [vmem:[%s3942_s1 + $0x8e0] sm:$0xff] }
  0x6b   :  { %1842 = vmatpush1.bf16.msra.mxu1 %v1841_v14  ;;  %1588 = vmatprep.subr.bf16.mxu0 %v1587_v15  ;;  %v1607_v14 = vpack.c.bf16 %v276_v8, %v272_v7  ;;  %v271_v15 = vld [vmem:[%s3942_s1 + $0x7c0] sm:$0xff]  ;;  %v309_v7 = vld [vmem:[%s3942_s1 + $0x8f0] sm:$0xff]  ;;  %v312_v8 = vld [vmem:[%s3942_s1 + $0x908] sm:$0xff] }
  0x6c   :  { %1844 = vmatprep.subr.bf16.mxu1 %v1843_v19  ;;  %v277_v19 = vld [vmem:[%s3942_s1 + $0x7f0] sm:$0xff]  ;;  %v1609_v26 = vpack.c.bf16 %v275_v16, %v271_v15  ;;  %v1627_v15 = vpack.c.bf16 %v316_v9, %v312_v8  ;;  %v311_v16 = vld [vmem:[%s3942_s1 + $0x900] sm:$0xff]  ;;  %v352_v8 = vld [vmem:[%s3942_s1 + $0xa48] sm:$0xff] }
  0x6d   :  { %v356_v9 = vld [vmem:[%s3942_s1 + $0xa68] sm:$0xff] }
  0x6e   :  { %1590 = vmatpush1.bf16.msra.mxu0 %v1589_v27  ;;  %v1865_v27 = vpack.c.bf16 %v277_v19, %v273_v17  ;;  %v315_v17 = vld [vmem:[%s3942_s1 + $0x920] sm:$0xff] }
  0x6f   :  { %1846 = vmatpush1.bf16.msra.mxu1 %v1845_v28  ;;  %1592 = vmatprep.subr.bf16.mxu0 %v1591_v29  ;;  %v1611_v28 = vpack.c.bf16 %v284_v21, %v280_v20  ;;  %v279_v29 = vld [vmem:[%s3942_s1 + $0x800] sm:$0xff]  ;;  %v317_v20 = vld [vmem:[%s3942_s1 + $0x930] sm:$0xff]  ;;  %v320_v21 = vld [vmem:[%s3942_s1 + $0x948] sm:$0xff] }
  0x70   :  { %1848 = vmatprep.subr.bf16.mxu1 %v1847_v33  ;;  %v285_v33 = vld [vmem:[%s3942_s1 + $0x830] sm:$0xff]  ;;  %v1613_v38 = vpack.c.bf16 %v283_v30, %v279_v29  ;;  %v1631_v29 = vpack.c.bf16 %v324_v22, %v320_v21  ;;  %v319_v30 = vld [vmem:[%s3942_s1 + $0x940] sm:$0xff]  ;;  %v360_v21 = vld [vmem:[%s3942_s1 + $0xa88] sm:$0xff] }
  0x71   :  { %v364_v22 = vld [vmem:[%s3942_s1 + $0xaa8] sm:$0xff] }
  0x72   :  { %1594 = vmatpush1.bf16.msra.mxu0 %v1593_v39  ;;  %v2971_v39 = vld [vmem:[%s3941_s0 + $0x8] sm:$0xff] }
  0x73   :  { %1850 = vmatpush1.bf16.msra.mxu1 %v1849_v40  ;;  %1596 = vmatprep.subr.bf16.mxu0 %v1595_v41  ;;  %v1869_v40 = vpack.c.bf16 %v285_v33, %v281_v31  ;;  %v1615_v41 = vpack.c.bf16 %v292_v35, %v288_v34  ;;  %v323_v31 = vld [vmem:[%s3942_s1 + $0x960] sm:$0xff]  ;;  %v325_v34 = vld [vmem:[%s3942_s1 + $0x970] sm:$0xff]  ;;  %v328_v35 = vld [vmem:[%s3942_s1 + $0x988] sm:$0xff] }
  0x74   :  { %1852 = vmatprep.subr.bf16.mxu1 %v1851_v45  ;;  %v2984_v45 = vrot.slane %v2971_v39, %v2418_v11 }
  0x76   :  { %1598 = vmatpush1.bf16.msra.mxu0 %v1597_v50  ;;  %v302_v50 = vld [vmem:[%s3942_s1 + $0x8b8] sm:$0xff] }
  0x77   :  { %1854 = vmatpush1.bf16.msra.mxu1 %v1853_v51  ;;  %1600 = vmatprep.subr.bf16.mxu0 %v1599_v52  ;;  %v591_v51 = vcombine.high %v2984_v45, %v2984_v45  ;;  %v1617_v52 = vpack.c.bf16 %v291_v43, %v287_v42  ;;  %v1875_v58 = vpack.c.bf16 %v302_v50, %v298_v49  ;;  %v327_v43 = vld [vmem:[%s3942_s1 + $0x980] sm:$0xff]  ;;  %v340_v49 = vld [vmem:[%s3942_s1 + $0x9e8] sm:$0xff]  ;;  %v338_v50 = vld [vmem:[%s3942_s1 + $0x9d8] sm:$0xff] }
  0x78   :  { %1856 = vmatprep.subr.bf16.mxu1 %v1855_v56  ;;  %v299_v56 = vld [vmem:[%s3942_s1 + $0x8a0] sm:$0xff]  ;;  %v1635_v42 = vpack.c.bf16 %v332_v36, %v328_v35  ;;  %v368_v35 = vld [vmem:[%s3942_s1 + $0xac8] sm:$0xff] }
  0x79   :  { %v372_v36 = vld [vmem:[%s3942_s1 + $0xae8] sm:$0xff] }
  0x7a   :  { %1602 = vmatpush1.bf16.msra.mxu0 %v1601_v63  ;;  %v310_v63 = vld [vmem:[%s3942_s1 + $0x8f8] sm:$0xff] }
  0x7b   :  { %1858 = vmatpush1.bf16.msra.mxu1 %v1857_v0  ;;  %1604 = vmatprep.subr.bf16.mxu0 %v1603_v1  ;;  %v1621_v0 = vpack.c.bf16 %v299_v56, %v295_v55  ;;  %v1879_v6 = vpack.c.bf16 %v310_v63, %v306_v62  ;;  %v335_v55 = vld [vmem:[%s3942_s1 + $0x9c0] sm:$0xff]  ;;  %v346_v62 = vld [vmem:[%s3942_s1 + $0xa18] sm:$0xff] }
  0x7c   :  { %1860 = vmatprep.subr.bf16.mxu1 %v1859_v5  ;;  %v305_v5 = vld [vmem:[%s3942_s1 + $0x8d0] sm:$0xff]  ;;  %v339_v56 = vld [vmem:[%s3942_s1 + $0x9e0] sm:$0xff]  ;;  %v350_v63 = vld [vmem:[%s3942_s1 + $0xa38] sm:$0xff] }
  0x7e   :  { %1606 = vmatpush1.bf16.msra.mxu0 %v1605_v12  ;;  %v318_v12 = vld [vmem:[%s3942_s1 + $0x938] sm:$0xff] }
  0x7f   :  { %1862 = vmatpush1.bf16.msra.mxu1 %v1861_v13  ;;  %1608 = vmatprep.subr.bf16.mxu0 %v1607_v14  ;;  %v1625_v13 = vpack.c.bf16 %v307_v4, %v303_v3  ;;  %v1881_v14 = vpack.c.bf16 %v309_v7, %v305_v5  ;;  %v1883_v19 = vpack.c.bf16 %v318_v12, %v314_v10  ;;  %v343_v3 = vld [vmem:[%s3942_s1 + $0xa00] sm:$0xff]  ;;  %v345_v5 = vld [vmem:[%s3942_s1 + $0xa10] sm:$0xff]  ;;  %v354_v10 = vld [vmem:[%s3942_s1 + $0xa58] sm:$0xff] }
  0x80   :  { %1864 = vmatprep.subr.bf16.mxu1 %v1863_v18  ;;  %v313_v18 = vld [vmem:[%s3942_s1 + $0x910] sm:$0xff]  ;;  %v347_v4 = vld [vmem:[%s3942_s1 + $0xa20] sm:$0xff]  ;;  %v358_v12 = vld [vmem:[%s3942_s1 + $0xa78] sm:$0xff] }
  0x81   :  { %v349_v7 = vld [vmem:[%s3942_s1 + $0xa30] sm:$0xff] }
  0x82   :  { %1610 = vmatpush1.bf16.msra.mxu0 %v1609_v26  ;;  %v326_v26 = vld [vmem:[%s3942_s1 + $0x978] sm:$0xff] }
  0x83   :  { %1866 = vmatpush1.bf16.msra.mxu1 %v1865_v27  ;;  %1612 = vmatprep.subr.bf16.mxu0 %v1611_v28  ;;  %v1629_v27 = vpack.c.bf16 %v315_v17, %v311_v16  ;;  %v1885_v28 = vpack.c.bf16 %v317_v20, %v313_v18  ;;  %v1887_v33 = vpack.c.bf16 %v326_v26, %v322_v23  ;;  %v351_v16 = vld [vmem:[%s3942_s1 + $0xa40] sm:$0xff]  ;;  %v353_v18 = vld [vmem:[%s3942_s1 + $0xa50] sm:$0xff]  ;;  %v362_v23 = vld [vmem:[%s3942_s1 + $0xa98] sm:$0xff] }
  0x84   :  { %1868 = vmatprep.subr.bf16.mxu1 %v1867_v32  ;;  %v321_v32 = vld [vmem:[%s3942_s1 + $0x950] sm:$0xff]  ;;  %v355_v17 = vld [vmem:[%s3942_s1 + $0xa60] sm:$0xff]  ;;  %v366_v26 = vld [vmem:[%s3942_s1 + $0xab8] sm:$0xff] }
  0x85   :  { %737 = vmatmul.mubr.f32.vlgmr.msra.gmra.mrb[0].mxu0 %v2572_v24  ;;  %v357_v20 = vld [vmem:[%s3942_s1 + $0xa70] sm:$0xff] }
  0x86   :  { %1614 = vmatpush1.bf16.msra.mxu0 %v1613_v38  ;;  %1021 = vmatmul.mubr.f32.vlgmr.msra.gmra.mrb[0].mxu1 %v2572_v24  ;;  %v301_v24 = vld [vmem:[%s3942_s1 + $0x8b0] sm:$0xff]  ;;  %v334_v38 = vld [vmem:[%s3942_s1 + $0x9b8] sm:$0xff] }
  0x87   :  { %1870 = vmatpush1.bf16.msra.mxu1 %v1869_v40  ;;  %1616 = vmatprep.subr.bf16.mxu0 %v1615_v41  ;;  %v1877_v1 = vpack.c.bf16 %v301_v24, %v297_v57  ;;  %v1633_v40 = vpack.c.bf16 %v323_v31, %v319_v30  ;;  %v1889_v41 = vpack.c.bf16 %v325_v34, %v321_v32  ;;  %v337_v57 = vld [vmem:[%s3942_s1 + $0x9d0] sm:$0xff]  ;;  %v359_v30 = vld [vmem:[%s3942_s1 + $0xa80] sm:$0xff] }
  0x88   :  { %1872 = vmatprep.subr.bf16.mxu1 %v1871_v46  ;;  %807 = vmatprep.mubr.f32.mxu0 %v591_v51  ;;  %v329_v46 = vld [vmem:[%s3942_s1 + $0x990] sm:$0xff]  ;;  %v1891_v47 = vpack.c.bf16 %v334_v38, %v330_v37  ;;  %v363_v31 = vld [vmem:[%s3942_s1 + $0xaa0] sm:$0xff]  ;;  %v370_v37 = vld [vmem:[%s3942_s1 + $0xad8] sm:$0xff] }
  0x89   :  { %1091 = vmatprep.mubr.f32.mxu1 %v591_v51  ;;  %v342_v51 = vld [vmem:[%s3942_s1 + $0x9f8] sm:$0xff]  ;;  %v341_v24 = vld [vmem:[%s3942_s1 + $0x9f0] sm:$0xff] }
  0x8a   :  { %1618 = vmatpush1.bf16.msra.mxu0 %v1617_v52  ;;  %v1637_v52 = vpack.c.bf16 %v331_v44, %v327_v43  ;;  %v361_v32 = vld [vmem:[%s3942_s1 + $0xa90] sm:$0xff]  ;;  %v374_v38 = vld [vmem:[%s3942_s1 + $0xaf8] sm:$0xff]  ;;  %v367_v43 = vld [vmem:[%s3942_s1 + $0xac0] sm:$0xff] }
  0x8b   :  { %1874 = vmatpush1.bf16.msra.mxu1 %v1873_v53  ;;  %1620 = vmatprep.subr.bf16.mxu0 %v1619_v54  ;;  %v1893_v53 = vpack.c.bf16 %v333_v25, %v329_v46  ;;  %v1639_v54 = vpack.c.bf16 %v340_v49, %v336_v48  ;;  %v365_v34 = vld [vmem:[%s3942_s1 + $0xab0] sm:$0xff]  ;;  %v371_v44 = vld [vmem:[%s3942_s1 + $0xae0] sm:$0xff]  ;;  %v376_v48 = vld [vmem:[%s3942_s1 + $0xb08] sm:$0xff] }
  0x8c   :  { %1876 = vmatprep.subr.bf16.mxu1 %v1875_v58  ;;  %v1895_v58 = vpack.c.bf16 %v342_v51, %v338_v50  ;;  %v369_v46 = vld [vmem:[%s3942_s1 + $0xad0] sm:$0xff]  ;;  %v380_v49 = vld [vmem:[%s3942_s1 + $0xb28] sm:$0xff]  ;;  %v378_v50 = vld [vmem:[%s3942_s1 + $0xb18] sm:$0xff] }
  0x8d   :  { %v373_v25 = vld [vmem:[%s3942_s1 + $0xaf0] sm:$0xff]  ;;  %v382_v51 = vld [vmem:[%s3942_s1 + $0xb38] sm:$0xff] }
  0x8e   :  { %1622 = vmatpush1.bf16.msra.mxu0 %v1621_v0  ;;  %v1641_v0 = vpack.c.bf16 %v339_v56, %v335_v55  ;;  %v375_v55 = vld [vmem:[%s3942_s1 + $0xb00] sm:$0xff] }
  0x8f   :  { %1878 = vmatpush1.bf16.msra.mxu1 %v1877_v1  ;;  %1624 = vmatprep.subr.bf16.mxu0 %v1623_v2  ;;  %v1897_v1 = vpack.c.bf16 %v341_v24, %v337_v57  ;;  %v1643_v2 = vpack.c.bf16 %v348_v60, %v344_v59  ;;  %v379_v56 = vld [vmem:[%s3942_s1 + $0xb20] sm:$0xff]  ;;  %v377_v57 = vld [vmem:[%s3942_s1 + $0xb10] sm:$0xff]  ;;  %v384_v59 = vld [vmem:[%s3942_s1 + $0xb48] sm:$0xff] }
  0x90   :  { %1880 = vmatprep.subr.bf16.mxu1 %v1879_v6  ;;  %v1899_v6 = vpack.c.bf16 %v350_v63, %v346_v62  ;;  %v381_v24 = vld [vmem:[%s3942_s1 + $0xb30] sm:$0xff]  ;;  %v388_v60 = vld [vmem:[%s3942_s1 + $0xb68] sm:$0xff]  ;;  %v386_v62 = vld [vmem:[%s3942_s1 + $0xb58] sm:$0xff] }
  0x91   :  { %v390_v63 = vld [vmem:[%s3942_s1 + $0xb78] sm:$0xff] }
  0x92   :  { %1626 = vmatpush1.bf16.msra.mxu0 %v1625_v13  ;;  %v1645_v13 = vpack.c.bf16 %v347_v4, %v343_v3  ;;  %v383_v3 = vld [vmem:[%s3942_s1 + $0xb40] sm:$0xff] }
  0x93   :  { %1882 = vmatpush1.bf16.msra.mxu1 %v1881_v14  ;;  %1628 = vmatprep.subr.bf16.mxu0 %v1627_v15  ;;  %v1901_v14 = vpack.c.bf16 %v349_v7, %v345_v5  ;;  %v1647_v15 = vpack.c.bf16 %v356_v9, %v352_v8  ;;  %v387_v4 = vld [vmem:[%s3942_s1 + $0xb60] sm:$0xff]  ;;  %v385_v5 = vld [vmem:[%s3942_s1 + $0xb50] sm:$0xff]  ;;  %v392_v8 = vld [vmem:[%s3942_s1 + $0xb88] sm:$0xff] }
  0x94   :  { %1884 = vmatprep.subr.bf16.mxu1 %v1883_v19  ;;  %v1903_v19 = vpack.c.bf16 %v358_v12, %v354_v10  ;;  %v389_v7 = vld [vmem:[%s3942_s1 + $0xb70] sm:$0xff]  ;;  %v396_v9 = vld [vmem:[%s3942_s1 + $0xba8] sm:$0xff]  ;;  %v394_v10 = vld [vmem:[%s3942_s1 + $0xb98] sm:$0xff] }
  0x95   :  { %v398_v12 = vld [vmem:[%s3942_s1 + $0xbb8] sm:$0xff] }
  0x96   :  { %1630 = vmatpush1.bf16.msra.mxu0 %v1629_v27  ;;  %v1649_v27 = vpack.c.bf16 %v355_v17, %v351_v16  ;;  %v391_v16 = vld [vmem:[%s3942_s1 + $0xb80] sm:$0xff] }
  0x97   :  { %1886 = vmatpush1.bf16.msra.mxu1 %v1885_v28  ;;  %1632 = vmatprep.subr.bf16.mxu0 %v1631_v29  ;;  %v1905_v28 = vpack.c.bf16 %v357_v20, %v353_v18  ;;  %v1651_v29 = vpack.c.bf16 %v364_v22, %v360_v21  ;;  %v395_v17 = vld [vmem:[%s3942_s1 + $0xba0] sm:$0xff]  ;;  %v393_v18 = vld [vmem:[%s3942_s1 + $0xb90] sm:$0xff]  ;;  %v400_v21 = vld [vmem:[%s3942_s1 + $0xbc8] sm:$0xff] }
  0x98   :  { %1888 = vmatprep.subr.bf16.mxu1 %v1887_v33  ;;  %v1907_v33 = vpack.c.bf16 %v366_v26, %v362_v23  ;;  %v397_v20 = vld [vmem:[%s3942_s1 + $0xbb0] sm:$0xff]  ;;  %v404_v22 = vld [vmem:[%s3942_s1 + $0xbe8] sm:$0xff]  ;;  %v402_v23 = vld [vmem:[%s3942_s1 + $0xbd8] sm:$0xff] }
  0x99   :  { %v406_v26 = vld [vmem:[%s3942_s1 + $0xbf8] sm:$0xff] }
  0x9a   :  { %1634 = vmatpush1.bf16.msra.mxu0 %v1633_v40  ;;  %v1653_v40 = vpack.c.bf16 %v363_v31, %v359_v30  ;;  %v399_v30 = vld [vmem:[%s3942_s1 + $0xbc0] sm:$0xff] }
  0x9b   :  { %1890 = vmatpush1.bf16.msra.mxu1 %v1889_v41  ;;  %1636 = vmatprep.subr.bf16.mxu0 %v1635_v42  ;;  %v1909_v41 = vpack.c.bf16 %v365_v34, %v361_v32  ;;  %v1655_v42 = vpack.c.bf16 %v372_v36, %v368_v35  ;;  %v403_v31 = vld [vmem:[%s3942_s1 + $0xbe0] sm:$0xff]  ;;  %v401_v32 = vld [vmem:[%s3942_s1 + $0xbd0] sm:$0xff]  ;;  %v408_v35 = vld [vmem:[%s3942_s1 + $0xc08] sm:$0xff] }
  0x9c   :  { %1892 = vmatprep.subr.bf16.mxu1 %v1891_v47  ;;  %v1911_v47 = vpack.c.bf16 %v374_v38, %v370_v37  ;;  %v405_v34 = vld [vmem:[%s3942_s1 + $0xbf0] sm:$0xff]  ;;  %v412_v36 = vld [vmem:[%s3942_s1 + $0xc28] sm:$0xff]  ;;  %v576_v37 = vcombine.high %v2971_v39, %v2971_v39  ;;  %v410_v38 = vld [vmem:[%s3942_s1 + $0xc18] sm:$0xff] }
  0x9d   :  { %v411_v39 = vld [vmem:[%s3942_s1 + $0xc20] sm:$0xff] }
  0x9e   :  { %1638 = vmatpush1.bf16.msra.mxu0 %v1637_v52  ;;  %v1657_v52 = vpack.c.bf16 %v371_v44, %v367_v43  ;;  %v1929_v43 = vpack.c.bf16 %v405_v34, %v401_v32  ;;  %v1675_v44 = vpack.c.bf16 %v412_v36, %v408_v35 }
  0x9f   :  { %1894 = vmatpush1.bf16.msra.mxu1 %v1893_v53  ;;  %1640 = vmatprep.subr.bf16.mxu0 %v1639_v54  ;;  %v1913_v53 = vpack.c.bf16 %v373_v25, %v369_v46  ;;  %v1659_v54 = vpack.c.bf16 %v380_v49, %v376_v48  ;;  %v409_v46 = vld [vmem:[%s3942_s1 + $0xc10] sm:$0xff] }
  0xa0   :  { %1896 = vmatprep.subr.bf16.mxu1 %v1895_v58  ;;  %v1915_v58 = vpack.c.bf16 %v382_v51, %v378_v50 }
  0xa2   :  { %1642 = vmatpush1.bf16.msra.mxu0 %v1641_v0  ;;  %v1661_v0 = vpack.c.bf16 %v379_v56, %v375_v55 }
  0xa3   :  { %1898 = vmatpush1.bf16.msra.mxu1 %v1897_v1  ;;  %1644 = vmatprep.subr.bf16.mxu0 %v1643_v2  ;;  %v1917_v1 = vpack.c.bf16 %v381_v24, %v377_v57  ;;  %v1663_v2 = vpack.c.bf16 %v388_v60, %v384_v59 }
  0xa4   :  { %1900 = vmatprep.subr.bf16.mxu1 %v1899_v6  ;;  %v1919_v6 = vpack.c.bf16 %v390_v63, %v386_v62 }
  0xa6   :  { %1646 = vmatpush1.bf16.msra.mxu0 %v1645_v13  ;;  %v1665_v13 = vpack.c.bf16 %v387_v4, %v383_v3 }
  0xa7   :  { %1902 = vmatpush1.bf16.msra.mxu1 %v1901_v14  ;;  %1648 = vmatprep.subr.bf16.mxu0 %v1647_v15  ;;  %v1921_v14 = vpack.c.bf16 %v389_v7, %v385_v5  ;;  %v1667_v15 = vpack.c.bf16 %v396_v9, %v392_v8 }
  0xa8   :  { %1904 = vmatprep.subr.bf16.mxu1 %v1903_v19  ;;  %v1923_v19 = vpack.c.bf16 %v398_v12, %v394_v10 }
  0xaa   :  { %1650 = vmatpush1.bf16.msra.mxu0 %v1649_v27  ;;  %v1669_v27 = vpack.c.bf16 %v395_v17, %v391_v16 }
  0xab   :  { %1906 = vmatpush1.bf16.msra.mxu1 %v1905_v28  ;;  %1652 = vmatprep.subr.bf16.mxu0 %v1651_v29  ;;  %v1925_v28 = vpack.c.bf16 %v397_v20, %v393_v18  ;;  %v1671_v29 = vpack.c.bf16 %v404_v22, %v400_v21 }
  0xac   :  { %1908 = vmatprep.subr.bf16.mxu1 %v1907_v33  ;;  %v1927_v33 = vpack.c.bf16 %v406_v26, %v402_v23 }
  0xae   :  { %1654 = vmatpush1.bf16.msra.mxu0 %v1653_v40  ;;  %v414_v40 = vld [vmem:[%s3942_s1 + $0xc38] sm:$0xff] }
  0xaf   :  { %1910 = vmatpush1.bf16.msra.mxu1 %v1909_v41  ;;  %1656 = vmatprep.subr.bf16.mxu0 %v1655_v42  ;;  %v1673_v41 = vpack.c.bf16 %v403_v31, %v399_v30  ;;  %v407_v42 = vld [vmem:[%s3942_s1 + $0xc00] sm:$0xff] }
  0xb0   :  { %1912 = vmatprep.subr.bf16.mxu1 %v1911_v47 }
  0xb2   :  { %1658 = vmatpush1.bf16.msra.mxu0 %v1657_v52 }
  0xb3   :  { %1914 = vmatpush1.bf16.msra.mxu1 %v1913_v53  ;;  %1660 = vmatprep.subr.bf16.mxu0 %v1659_v54 }
  0xb4   :  { %1916 = vmatprep.subr.bf16.mxu1 %v1915_v58 }
  0xb6   :  { %1662 = vmatpush1.bf16.msra.mxu0 %v1661_v0 }
  0xb7   :  { %1918 = vmatpush1.bf16.msra.mxu1 %v1917_v1  ;;  %1664 = vmatprep.subr.bf16.mxu0 %v1663_v2 }
  0xb8   :  { %1920 = vmatprep.subr.bf16.mxu1 %v1919_v6 }
  0xba   :  { %1666 = vmatpush1.bf16.msra.mxu0 %v1665_v13 }
  0xbb   :  { %1922 = vmatpush1.bf16.msra.mxu1 %v1921_v14  ;;  %1668 = vmatprep.subr.bf16.mxu0 %v1667_v15 }
  0xbc   :  { %1924 = vmatprep.subr.bf16.mxu1 %v1923_v19 }
  0xbe   :  { %1670 = vmatpush1.bf16.msra.mxu0 %v1669_v27 }
  0xbf   :  { %1926 = vmatpush1.bf16.msra.mxu1 %v1925_v28  ;;  %1672 = vmatprep.subr.bf16.mxu0 %v1671_v29 }
  0xc0   :  { %10 = vsyncpa [#allocation3], 0  ;;  %1928 = vmatprep.subr.bf16.mxu1 %v1927_v33  ;;  %v1931_v47 = vpack.c.bf16 %v414_v40, %v410_v38  ;;  %v413_v25 = vld [vmem:[%s3942_s1 + $0xc30] sm:$0xff]  ;;  %v416_v48 = vld [vmem:[%s3942_s1 + $0xc48] sm:$0xff]  ;;  %v3362_v50 = vrot.slane %v576_v37, %v2418_v11  ;;  %v1677_v53 = vpack.c.bf16 %v411_v39, %v407_v42  ;;  %vm1384_vm0 = vcmask 74752  }
  0xc1   :  { %v420_v49 = vld [vmem:[%s3942_s1 + $0xc68] sm:$0xff]  ;;  %v418_v51 = vld [vmem:[%s3942_s1 + $0xc58] sm:$0xff]  ;;  %v1933_v54 = vpack.c.bf16 %v413_v25, %v409_v46  ;;  %v415_v56 = vld [vmem:[%s3942_s1 + $0xc40] sm:$0xff] }
  0xc2   :  { %v422_v52 = vld [vmem:[%s3942_s1 + $0xc78] sm:$0xff]  ;;  %1674 = vmatpush1.bf16.msra.mxu0 %v1673_v41  ;;  %v1679_v55 = vpack.c.bf16 %v420_v49, %v416_v48  ;;  %v419_v11 = vld [vmem:[%s3942_s1 + $0xc60] sm:$0xff]  ;;  %v417_v57 = vld [vmem:[%s3942_s1 + $0xc50] sm:$0xff]  ;;  %v592_v62 = vcombine.high %v3362_v50, %v3362_v50 }
  0xc3   :  { %1930 = vmatpush1.bf16.msra.mxu1 %v1929_v43  ;;  %1676 = vmatprep.subr.bf16.mxu0 %v1675_v44  ;;  %v1935_v58 = vpack.c.bf16 %v422_v52, %v418_v51  ;;  %v421_v24 = vld [vmem:[%s3942_s1 + $0xc70] sm:$0xff]  ;;  %v424_v59 = vld [vmem:[%s3942_s1 + $0xc88] sm:$0xff]  ;;  %v426_v63 = vld [vmem:[%s3942_s1 + $0xc98] sm:$0xff]  ;;  %v1681_v1 = vpack.c.bf16 %v419_v11, %v415_v56 }
  0xc4   :  { %1932 = vmatprep.subr.bf16.mxu1 %v1931_v47  ;;  %v428_v60 = vld [vmem:[%s3942_s1 + $0xca8] sm:$0xff]  ;;  %v430_v0 = vld [vmem:[%s3942_s1 + $0xcb8] sm:$0xff]  ;;  %v1937_v2 = vpack.c.bf16 %v421_v24, %v417_v57  ;;  %v423_v4 = vld [vmem:[%s3942_s1 + $0xc80] sm:$0xff] }
  0xc5   :  { %808 = vmatmul.mubr.f32.vlgmr.msra.gmra.mrb[0].mxu0 %v2984_v45  ;;  %v1683_v3 = vpack.c.bf16 %v428_v60, %v424_v59  ;;  %v427_v5 = vld [vmem:[%s3942_s1 + $0xca0] sm:$0xff]  ;;  %v425_v6 = vld [vmem:[%s3942_s1 + $0xc90] sm:$0xff]  ;;  %v1939_v7 = vpack.c.bf16 %v430_v0, %v426_v63  ;;  %v432_v8 = vld [vmem:[%s3942_s1 + $0xcc8] sm:$0xff] }
  0xc6   :  { %1678 = vmatpush1.bf16.msra.mxu0 %v1677_v53  ;;  %1092 = vmatmul.mubr.f32.vlgmr.msra.gmra.mrb[0].mxu1 %v2984_v45  ;;  %v429_v45 = vld [vmem:[%s3942_s1 + $0xcb0] sm:$0xff]  ;;  %v436_v9 = vld [vmem:[%s3942_s1 + $0xce8] sm:$0xff]  ;;  %v434_v10 = vld [vmem:[%s3942_s1 + $0xcd8] sm:$0xff]  ;;  %v1685_v13 = vpack.c.bf16 %v427_v5, %v423_v4 }
  0xc7   :  { %1934 = vmatpush1.bf16.msra.mxu1 %v1933_v54  ;;  %1680 = vmatprep.subr.bf16.mxu0 %v1679_v55  ;;  %v438_v12 = vld [vmem:[%s3942_s1 + $0xcf8] sm:$0xff]  ;;  %v1941_v14 = vpack.c.bf16 %v429_v45, %v425_v6  ;;  %v1687_v15 = vpack.c.bf16 %v436_v9, %v432_v8  ;;  %v431_v16 = vld [vmem:[%s3942_s1 + $0xcc0] sm:$0xff]  ;;  %v433_v18 = vld [vmem:[%s3942_s1 + $0xcd0] sm:$0xff] }
  0xc8   :  { %1936 = vmatprep.subr.bf16.mxu1 %v1935_v58  ;;  %878 = vmatprep.mubr.f32.mxu0 %v592_v62  ;;  %v435_v17 = vld [vmem:[%s3942_s1 + $0xce0] sm:$0xff]  ;;  %v1943_v19 = vpack.c.bf16 %v438_v12, %v434_v10  ;;  %v437_v20 = vld [vmem:[%s3942_s1 + $0xcf0] sm:$0xff]  ;;  %v440_v21 = vld [vmem:[%s3942_s1 + $0xd08] sm:$0xff] }
  0xc9   :  { %1162 = vmatprep.mubr.f32.mxu1 %v592_v62  ;;  %v444_v22 = vld [vmem:[%s3942_s1 + $0xd28] sm:$0xff]  ;;  %v442_v23 = vld [vmem:[%s3942_s1 + $0xd18] sm:$0xff]  ;;  %v1689_v27 = vpack.c.bf16 %v435_v17, %v431_v16  ;;  %v1945_v28 = vpack.c.bf16 %v437_v20, %v433_v18  ;;  %v439_v30 = vld [vmem:[%s3942_s1 + $0xd00] sm:$0xff] }
  0xca   :  { %1682 = vmatpush1.bf16.msra.mxu0 %v1681_v1  ;;  %v446_v26 = vld [vmem:[%s3942_s1 + $0xd38] sm:$0xff]  ;;  %v1691_v29 = vpack.c.bf16 %v444_v22, %v440_v21  ;;  %v443_v31 = vld [vmem:[%s3942_s1 + $0xd20] sm:$0xff]  ;;  %v441_v32 = vld [vmem:[%s3942_s1 + $0xd10] sm:$0xff] }
  0xcb   :  { %1938 = vmatpush1.bf16.msra.mxu1 %v1937_v2  ;;  %1684 = vmatprep.subr.bf16.mxu0 %v1683_v3  ;;  %v1947_v33 = vpack.c.bf16 %v446_v26, %v442_v23  ;;  %v445_v34 = vld [vmem:[%s3942_s1 + $0xd30] sm:$0xff]  ;;  %v448_v35 = vld [vmem:[%s3942_s1 + $0xd48] sm:$0xff]  ;;  %v450_v37 = vld [vmem:[%s3942_s1 + $0xd58] sm:$0xff]  ;;  %v1693_v40 = vpack.c.bf16 %v443_v31, %v439_v30 }
  0xcc   :  { %1940 = vmatprep.subr.bf16.mxu1 %v1939_v7  ;;  %v452_v36 = vld [vmem:[%s3942_s1 + $0xd68] sm:$0xff]  ;;  %v454_v38 = vld [vmem:[%s3942_s1 + $0xd78] sm:$0xff]  ;;  %v1949_v41 = vpack.c.bf16 %v445_v34, %v441_v32  ;;  %v447_v43 = vld [vmem:[%s3942_s1 + $0xd40] sm:$0xff] }
  0xcd   :  { %v1695_v42 = vpack.c.bf16 %v452_v36, %v448_v35  ;;  %v451_v44 = vld [vmem:[%s3942_s1 + $0xd60] sm:$0xff]  ;;  %v449_v39 = vld [vmem:[%s3942_s1 + $0xd50] sm:$0xff]  ;;  %v1951_v46 = vpack.c.bf16 %v454_v38, %v450_v37  ;;  %v456_v25 = vld [vmem:[%s3942_s1 + $0xd88] sm:$0xff] }
  0xce   :  { %1686 = vmatpush1.bf16.msra.mxu0 %v1685_v13  ;;  %v453_v47 = vld [vmem:[%s3942_s1 + $0xd70] sm:$0xff]  ;;  %v460_v48 = vld [vmem:[%s3942_s1 + $0xda8] sm:$0xff]  ;;  %v458_v49 = vld [vmem:[%s3942_s1 + $0xd98] sm:$0xff]  ;;  %v1697_v52 = vpack.c.bf16 %v451_v44, %v447_v43 }
  0xcf   :  { %1942 = vmatpush1.bf16.msra.mxu1 %v1941_v14  ;;  %1688 = vmatprep.subr.bf16.mxu0 %v1687_v15  ;;  %v462_v51 = vld [vmem:[%s3942_s1 + $0xdb8] sm:$0xff]  ;;  %v1953_v53 = vpack.c.bf16 %v453_v47, %v449_v39  ;;  %v1699_v54 = vpack.c.bf16 %v460_v48, %v456_v25  ;;  %v455_v55 = vld [vmem:[%s3942_s1 + $0xd80] sm:$0xff]  ;;  %v457_v11 = vld [vmem:[%s3942_s1 + $0xd90] sm:$0xff] }
  0xd0   :  { %1944 = vmatprep.subr.bf16.mxu1 %v1943_v19  ;;  %v459_v56 = vld [vmem:[%s3942_s1 + $0xda0] sm:$0xff]  ;;  %v1955_v57 = vpack.c.bf16 %v462_v51, %v458_v49  ;;  %v461_v58 = vld [vmem:[%s3942_s1 + $0xdb0] sm:$0xff]  ;;  %v464_v24 = vld [vmem:[%s3942_s1 + $0xdc8] sm:$0xff] }
  0xd1   :  { %v468_v59 = vld [vmem:[%s3942_s1 + $0xde8] sm:$0xff]  ;;  %v466_v60 = vld [vmem:[%s3942_s1 + $0xdd8] sm:$0xff]  ;;  %v1701_v63 = vpack.c.bf16 %v459_v56, %v455_v55  ;;  %v1957_v0 = vpack.c.bf16 %v461_v58, %v457_v11  ;;  %v463_v2 = vld [vmem:[%s3942_s1 + $0xdc0] sm:$0xff] }
  0xd2   :  { %1690 = vmatpush1.bf16.msra.mxu0 %v1689_v27  ;;  %v470_v62 = vld [vmem:[%s3942_s1 + $0xdf8] sm:$0xff]  ;;  %v1703_v1 = vpack.c.bf16 %v468_v59, %v464_v24  ;;  %v467_v3 = vld [vmem:[%s3942_s1 + $0xde0] sm:$0xff]  ;;  %v465_v4 = vld [vmem:[%s3942_s1 + $0xdd0] sm:$0xff] }
  0xd3   :  { %1946 = vmatpush1.bf16.msra.mxu1 %v1945_v28  ;;  %1692 = vmatprep.subr.bf16.mxu0 %v1691_v29  ;;  %v1959_v5 = vpack.c.bf16 %v470_v62, %v466_v60  ;;  %v469_v6 = vld [vmem:[%s3942_s1 + $0xdf0] sm:$0xff]  ;;  %v472_v7 = vld [vmem:[%s3942_s1 + $0xe08] sm:$0xff]  ;;  %v474_v8 = vld [vmem:[%s3942_s1 + $0xe18] sm:$0xff]  ;;  %v1705_v10 = vpack.c.bf16 %v467_v3, %v463_v2 }
  0xd4   :  { %1948 = vmatprep.subr.bf16.mxu1 %v1947_v33  ;;  %v476_v45 = vld [vmem:[%s3942_s1 + $0xe28] sm:$0xff]  ;;  %v478_v9 = vld [vmem:[%s3942_s1 + $0xe38] sm:$0xff]  ;;  %v1961_v12 = vpack.c.bf16 %v469_v6, %v465_v4  ;;  %v471_v14 = vld [vmem:[%s3942_s1 + $0xe00] sm:$0xff] }
  0xd5   :  { %v1707_v13 = vpack.c.bf16 %v476_v45, %v472_v7  ;;  %v475_v15 = vld [vmem:[%s3942_s1 + $0xe20] sm:$0xff]  ;;  %v473_v16 = vld [vmem:[%s3942_s1 + $0xe10] sm:$0xff]  ;;  %v1963_v17 = vpack.c.bf16 %v478_v9, %v474_v8  ;;  %v480_v19 = vld [vmem:[%s3942_s1 + $0xe48] sm:$0xff] }
  0xd6   :  { %1694 = vmatpush1.bf16.msra.mxu0 %v1693_v40  ;;  %v477_v18 = vld [vmem:[%s3942_s1 + $0xe30] sm:$0xff]  ;;  %v484_v20 = vld [vmem:[%s3942_s1 + $0xe68] sm:$0xff]  ;;  %v482_v21 = vld [vmem:[%s3942_s1 + $0xe58] sm:$0xff]  ;;  %v1709_v23 = vpack.c.bf16 %v475_v15, %v471_v14 }
  0xd7   :  { %1950 = vmatpush1.bf16.msra.mxu1 %v1949_v41  ;;  %1696 = vmatprep.subr.bf16.mxu0 %v1695_v42  ;;  %v486_v22 = vld [vmem:[%s3942_s1 + $0xe78] sm:$0xff]  ;;  %v1965_v26 = vpack.c.bf16 %v477_v18, %v473_v16  ;;  %v1711_v27 = vpack.c.bf16 %v484_v20, %v480_v19  ;;  %v479_v28 = vld [vmem:[%s3942_s1 + $0xe40] sm:$0xff]  ;;  %v481_v30 = vld [vmem:[%s3942_s1 + $0xe50] sm:$0xff] }
  0xd8   :  { %1952 = vmatprep.subr.bf16.mxu1 %v1951_v46  ;;  %v483_v29 = vld [vmem:[%s3942_s1 + $0xe60] sm:$0xff]  ;;  %v1967_v31 = vpack.c.bf16 %v486_v22, %v482_v21  ;;  %v485_v32 = vld [vmem:[%s3942_s1 + $0xe70] sm:$0xff]  ;;  %v488_v33 = vld [vmem:[%s3942_s1 + $0xe88] sm:$0xff] }
  0xd9   :  { %v492_v34 = vld [vmem:[%s3942_s1 + $0xea8] sm:$0xff]  ;;  %v490_v35 = vld [vmem:[%s3942_s1 + $0xe98] sm:$0xff]  ;;  %v1713_v37 = vpack.c.bf16 %v483_v29, %v479_v28  ;;  %v1969_v38 = vpack.c.bf16 %v485_v32, %v481_v30  ;;  %v487_v41 = vld [vmem:[%s3942_s1 + $0xe80] sm:$0xff] }
  0xda   :  { %1698 = vmatpush1.bf16.msra.mxu0 %v1697_v52  ;;  %v494_v36 = vld [vmem:[%s3942_s1 + $0xeb8] sm:$0xff]  ;;  %v1715_v40 = vpack.c.bf16 %v492_v34, %v488_v33  ;;  %v491_v42 = vld [vmem:[%s3942_s1 + $0xea0] sm:$0xff]  ;;  %v489_v43 = vld [vmem:[%s3942_s1 + $0xe90] sm:$0xff] }
  0xdb   :  { %1954 = vmatpush1.bf16.msra.mxu1 %v1953_v53  ;;  %1700 = vmatprep.subr.bf16.mxu0 %v1699_v54  ;;  %v1971_v44 = vpack.c.bf16 %v494_v36, %v490_v35  ;;  %v493_v39 = vld [vmem:[%s3942_s1 + $0xeb0] sm:$0xff]  ;;  %v496_v46 = vld [vmem:[%s3942_s1 + $0xec8] sm:$0xff]  ;;  %v498_v25 = vld [vmem:[%s3942_s1 + $0xed8] sm:$0xff]  ;;  %v1717_v49 = vpack.c.bf16 %v491_v42, %v487_v41 }
  0xdc   :  { %1956 = vmatprep.subr.bf16.mxu1 %v1955_v57  ;;  %v500_v47 = vld [vmem:[%s3942_s1 + $0xee8] sm:$0xff]  ;;  %v502_v48 = vld [vmem:[%s3942_s1 + $0xef8] sm:$0xff]  ;;  %v1973_v51 = vpack.c.bf16 %v493_v39, %v489_v43  ;;  %v495_v53 = vld [vmem:[%s3942_s1 + $0xec0] sm:$0xff] }
  0xdd   :  { %v1719_v52 = vpack.c.bf16 %v500_v47, %v496_v46  ;;  %v499_v54 = vld [vmem:[%s3942_s1 + $0xee0] sm:$0xff]  ;;  %v497_v55 = vld [vmem:[%s3942_s1 + $0xed0] sm:$0xff]  ;;  %v1975_v56 = vpack.c.bf16 %v502_v48, %v498_v25  ;;  %v504_v57 = vld [vmem:[%s3942_s1 + $0xf08] sm:$0xff] }
  0xde   :  { %1702 = vmatpush1.bf16.msra.mxu0 %v1701_v63  ;;  %v501_v11 = vld [vmem:[%s3942_s1 + $0xef0] sm:$0xff]  ;;  %v508_v58 = vld [vmem:[%s3942_s1 + $0xf28] sm:$0xff]  ;;  %v506_v24 = vld [vmem:[%s3942_s1 + $0xf18] sm:$0xff]  ;;  %v1721_v60 = vpack.c.bf16 %v499_v54, %v495_v53 }
  0xdf   :  { %1958 = vmatpush1.bf16.msra.mxu1 %v1957_v0  ;;  %1704 = vmatprep.subr.bf16.mxu0 %v1703_v1  ;;  %v510_v59 = vld [vmem:[%s3942_s1 + $0xf38] sm:$0xff]  ;;  %v1977_v62 = vpack.c.bf16 %v501_v11, %v497_v55  ;;  %v1723_v63 = vpack.c.bf16 %v508_v58, %v504_v57  ;;  %v503_v0 = vld [vmem:[%s3942_s1 + $0xf00] sm:$0xff]  ;;  %v505_v2 = vld [vmem:[%s3942_s1 + $0xf10] sm:$0xff] }
  0xe0   :  { %1960 = vmatprep.subr.bf16.mxu1 %v1959_v5  ;;  %v507_v1 = vld [vmem:[%s3942_s1 + $0xf20] sm:$0xff]  ;;  %v1979_v3 = vpack.c.bf16 %v510_v59, %v506_v24  ;;  %v509_v4 = vld [vmem:[%s3942_s1 + $0xf30] sm:$0xff]  ;;  %v512_v5 = vld [vmem:[%s3942_s1 + $0xf48] sm:$0xff] }
  0xe1   :  { %v516_v6 = vld [vmem:[%s3942_s1 + $0xf68] sm:$0xff]  ;;  %v514_v7 = vld [vmem:[%s3942_s1 + $0xf58] sm:$0xff]  ;;  %v1725_v8 = vpack.c.bf16 %v507_v1, %v503_v0  ;;  %v1981_v9 = vpack.c.bf16 %v509_v4, %v505_v2  ;;  %v513_v14 = vld [vmem:[%s3942_s1 + $0xf50] sm:$0xff] }
  0xe2   :  { %1706 = vmatpush1.bf16.msra.mxu0 %v1705_v10  ;;  %v518_v45 = vld [vmem:[%s3942_s1 + $0xf78] sm:$0xff]  ;;  %v1727_v10 = vpack.c.bf16 %v516_v6, %v512_v5  ;;  %v517_v16 = vld [vmem:[%s3942_s1 + $0xf70] sm:$0xff]  ;;  %v524_v18 = vld [vmem:[%s3942_s1 + $0xfa8] sm:$0xff] }
  0xe3   :  { %1962 = vmatpush1.bf16.msra.mxu1 %v1961_v12  ;;  %1708 = vmatprep.subr.bf16.mxu0 %v1707_v13  ;;  %v511_v12 = vld [vmem:[%s3942_s1 + $0xf40] sm:$0xff]  ;;  %v1983_v15 = vpack.c.bf16 %v518_v45, %v514_v7  ;;  %v522_v19 = vld [vmem:[%s3942_s1 + $0xf98] sm:$0xff]  ;;  %v1985_v22 = vpack.c.bf16 %v517_v16, %v513_v14  ;;  %v521_v28 = vld [vmem:[%s3942_s1 + $0xf90] sm:$0xff] }
  0xe4   :  { %1964 = vmatprep.subr.bf16.mxu1 %v1963_v17  ;;  %v515_v13 = vld [vmem:[%s3942_s1 + $0xf60] sm:$0xff]  ;;  %v520_v17 = vld [vmem:[%s3942_s1 + $0xf88] sm:$0xff]  ;;  %v526_v20 = vld [vmem:[%s3942_s1 + $0xfb8] sm:$0xff] }
  0xe5   :  { %v1729_v21 = vpack.c.bf16 %v515_v13, %v511_v12  ;;  %v1987_v29 = vpack.c.bf16 %v526_v20, %v522_v19  ;;  %v525_v30 = vld [vmem:[%s3942_s1 + $0xfb0] sm:$0xff]  ;;  %v532_v32 = vld [vmem:[%s3942_s1 + $0xfe8] sm:$0xff]  ;;  %v530_v33 = vld [vmem:[%s3942_s1 + $0xfd8] sm:$0xff] }
  0xe6   :  { %1710 = vmatpush1.bf16.msra.mxu0 %v1709_v23  ;;  %v1731_v23 = vpack.c.bf16 %v524_v18, %v520_v17  ;;  %v534_v34 = vld [vmem:[%s3942_s1 + $0xff8] sm:$0xff]  ;;  %v1989_v36 = vpack.c.bf16 %v525_v30, %v521_v28  ;;  %v529_v41 = vld [vmem:[%s3942_s1 + $0xfd0] sm:$0xff]  ;;  %v1190_v39 = vld [vmem:[%s3944_s3 + $0x88] sm:$0xff] }
  0xe7   :  { %1966 = vmatpush1.bf16.msra.mxu1 %v1965_v26  ;;  %1712 = vmatprep.subr.bf16.mxu0 %v1711_v27  ;;  %v519_v26 = vld [vmem:[%s3942_s1 + $0xf80] sm:$0xff]  ;;  %v1991_v42 = vpack.c.bf16 %v534_v34, %v530_v33  ;;  %v533_v43 = vld [vmem:[%s3942_s1 + $0xff0] sm:$0xff]  ;;  %v1222_v47 = vld [vmem:[%s3944_s3 + $0x188] sm:$0xff] }
  0xe8   :  { %1968 = vmatprep.subr.bf16.mxu1 %v1967_v31  ;;  %v523_v27 = vld [vmem:[%s3942_s1 + $0xfa0] sm:$0xff]  ;;  %v528_v31 = vld [vmem:[%s3942_s1 + $0xfc8] sm:$0xff]  ;;  %v1993_v48 = vpack.c.bf16 %v533_v43, %v529_v41  ;;  %v1192_v11 = vld [vmem:[%s3944_s3 + $0x98] sm:$0xff] }
  0xe9   :  { %v1733_v35 = vpack.c.bf16 %v523_v27, %v519_v26  ;;  %v1221_v46 = vld [vmem:[%s3944_s3 + $0x180] sm:$0xff]  ;;  %v1206_v55 = vld [vmem:[%s3944_s3 + $0x108] sm:$0xff]  ;;  %v1223_v57 = vld [vmem:[%s3944_s3 + $0x190] sm:$0xff] }
  0xea   :  { %1714 = vmatpush1.bf16.msra.mxu0 %v1713_v37  ;;  %v1735_v37 = vpack.c.bf16 %v532_v32, %v528_v31  ;;  %v1205_v53 = vld [vmem:[%s3944_s3 + $0x100] sm:$0xff]  ;;  %v2027_v54 = vpack.c.bf16 %v1222_v47, %v1221_v46  ;;  %v1224_v58 = vld [vmem:[%s3944_s3 + $0x198] sm:$0xff]  ;;  %v1207_v0 = vld [vmem:[%s3944_s3 + $0x110] sm:$0xff] }
  0xeb   :  { %1970 = vmatpush1.bf16.msra.mxu1 %v1969_v38  ;;  %1716 = vmatprep.subr.bf16.mxu0 %v1715_v40  ;;  %v527_v38 = vld [vmem:[%s3942_s1 + $0xfc0] sm:$0xff]  ;;  %v2029_v59 = vpack.c.bf16 %v1206_v55, %v1205_v53  ;;  %v2031_v1 = vpack.c.bf16 %v1224_v58, %v1223_v57  ;;  %v1208_v2 = vld [vmem:[%s3944_s3 + $0x118] sm:$0xff]  ;;  %v1194_v4 = vld [vmem:[%s3944_s3 + $0xa8] sm:$0xff] }
  0xec   :  { %1972 = vmatprep.subr.bf16.mxu1 %v1971_v44  ;;  %v531_v40 = vld [vmem:[%s3942_s1 + $0xfe0] sm:$0xff]  ;;  %v1226_v6 = vld [vmem:[%s3944_s3 + $0x1a8] sm:$0xff]  ;;  %v2033_v45 = vpack.c.bf16 %v1208_v2, %v1207_v0  ;;  %v1195_v14 = vld [vmem:[%s3944_s3 + $0xb0] sm:$0xff] }
  0xed   :  { %v1189_v44 = vld [vmem:[%s3944_s3 + $0x80] sm:$0xff]  ;;  %v1737_v25 = vpack.c.bf16 %v531_v40, %v527_v38  ;;  %v1210_v13 = vld [vmem:[%s3944_s3 + $0x128] sm:$0xff]  ;;  %v1227_v16 = vld [vmem:[%s3944_s3 + $0x1b0] sm:$0xff] }
  0xee   :  { %1718 = vmatpush1.bf16.msra.mxu0 %v1717_v49  ;;  %v1995_v49 = vpack.c.bf16 %v1190_v39, %v1189_v44  ;;  %v1225_v5 = vld [vmem:[%s3944_s3 + $0x1a0] sm:$0xff]  ;;  %v1228_v17 = vld [vmem:[%s3944_s3 + $0x1b8] sm:$0xff]  ;;  %v1230_v31 = vld [vmem:[%s3944_s3 + $0x1c8] sm:$0xff] }
  0xef   :  { %1974 = vmatpush1.bf16.msra.mxu1 %v1973_v51  ;;  %1720 = vmatprep.subr.bf16.mxu0 %v1719_v52  ;;  %v1173_v51 = vld [vmem:[%s3944_s3] sm:$0xff]  ;;  %v1174_v52 = vld [vmem:[%s3944_s3 + $0x8] sm:$0xff]  ;;  %v2039_v26 = vpack.c.bf16 %v1228_v17, %v1227_v16  ;;  %v1212_v27 = vld [vmem:[%s3944_s3 + $0x138] sm:$0xff]  ;;  %v543_v16 = vsub.s32 1, %v2391_v61  ;;  %v551_v17 = vsub.s32 3, %v2391_v61 }
  0xf0   :  { %1976 = vmatprep.subr.bf16.mxu1 %v1975_v56  ;;  %v1191_v56 = vld [vmem:[%s3944_s3 + $0x90] sm:$0xff]  ;;  %v1997_v24 = vpack.c.bf16 %v1174_v52, %v1173_v51  ;;  %v1209_v12 = vld [vmem:[%s3944_s3 + $0x120] sm:$0xff]  ;;  %v1214_v40 = vld [vmem:[%s3944_s3 + $0x148] sm:$0xff] }
  0xf1   :  { %v2037_v19 = vpack.c.bf16 %v1210_v13, %v1209_v12  ;;  %v1197_v28 = vld [vmem:[%s3944_s3 + $0xc0] sm:$0xff]  ;;  %v1199_v41 = vld [vmem:[%s3944_s3 + $0xd0] sm:$0xff]  ;;  %v1232_v44 = vld [vmem:[%s3944_s3 + $0x1d8] sm:$0xff]  ;;  %v539_v13 = vsub.s32 0, %v2391_v61 }
  0xf2   :  { %1722 = vmatpush1.bf16.msra.mxu0 %v1721_v60  ;;  %v1999_v60 = vpack.c.bf16 %v1192_v11, %v1191_v56  ;;  %v1229_v30 = vld [vmem:[%s3944_s3 + $0x1c0] sm:$0xff]  ;;  %v1231_v43 = vld [vmem:[%s3944_s3 + $0x1d0] sm:$0xff]  ;;  %v1216_v52 = vld [vmem:[%s3944_s3 + $0x158] sm:$0xff] }
  0xf3   :  { %1978 = vmatpush1.bf16.msra.mxu1 %v1977_v62  ;;  %1724 = vmatprep.subr.bf16.mxu0 %v1723_v63  ;;  %v1175_v62 = vld [vmem:[%s3944_s3 + $0x10] sm:$0xff]  ;;  %v1176_v63 = vld [vmem:[%s3944_s3 + $0x18] sm:$0xff]  ;;  %v2043_v38 = vpack.c.bf16 %v1230_v31, %v1229_v30  ;;  %v2047_v51 = vpack.c.bf16 %v1232_v44, %v1231_v43  ;;  %v1201_v53 = vld [vmem:[%s3944_s3 + $0xe0] sm:$0xff] }
  0xf4   :  { %1980 = vmatprep.subr.bf16.mxu1 %v1979_v3  ;;  %v1193_v3 = vld [vmem:[%s3944_s3 + $0xa0] sm:$0xff]  ;;  %v2001_v7 = vpack.c.bf16 %v1176_v63, %v1175_v62  ;;  %v1234_v56 = vld [vmem:[%s3944_s3 + $0x1e8] sm:$0xff]  ;;  %v1203_v2 = vld [vmem:[%s3944_s3 + $0xf0] sm:$0xff] }
  0xf5   :  { %v1233_v55 = vld [vmem:[%s3944_s3 + $0x1e0] sm:$0xff]  ;;  %v1218_v0 = vld [vmem:[%s3944_s3 + $0x168] sm:$0xff]  ;;  %v1220_v12 = vld [vmem:[%s3944_s3 + $0x178] sm:$0xff] }
  0xf6   :  { %1726 = vmatpush1.bf16.msra.mxu0 %v1725_v8  ;;  %v2003_v8 = vpack.c.bf16 %v1194_v4, %v1193_v3  ;;  %v1217_v62 = vld [vmem:[%s3944_s3 + $0x160] sm:$0xff]  ;;  %v1204_v3 = vld [vmem:[%s3944_s3 + $0xf8] sm:$0xff]  ;;  %v1235_v4 = vld [vmem:[%s3944_s3 + $0x1f0] sm:$0xff] }
  0xf7   :  { %1982 = vmatpush1.bf16.msra.mxu1 %v1981_v9  ;;  %1728 = vmatprep.subr.bf16.mxu0 %v1727_v10  ;;  %v1177_v9 = vld [vmem:[%s3944_s3 + $0x20] sm:$0xff]  ;;  %v1178_v10 = vld [vmem:[%s3944_s3 + $0x28] sm:$0xff] }
  0xf8   :  { %1984 = vmatprep.subr.bf16.mxu1 %v1983_v15  ;;  %v1196_v15 = vld [vmem:[%s3944_s3 + $0xb8] sm:$0xff]  ;;  %v2005_v18 = vpack.c.bf16 %v1178_v10, %v1177_v9  ;;  %v1219_v10 = vld [vmem:[%s3944_s3 + $0x170] sm:$0xff] }
  0xf9   :  { %v2007_v20 = vpack.c.bf16 %v1196_v15, %v1195_v14  ;;  %v535_v14 = vld [vmem:[%s3943_s2] sm:$0xf]  ;;  %v547_v15 = vsub.s32 2, %v2391_v61 }
  0xfa   :  { %1730 = vmatpush1.bf16.msra.mxu0 %v1729_v21  ;;  %v1179_v21 = vld [vmem:[%s3944_s3 + $0x30] sm:$0xff] }
  0xfb   :  { %1986 = vmatpush1.bf16.msra.mxu1 %v1985_v22  ;;  %1732 = vmatprep.subr.bf16.mxu0 %v1731_v23  ;;  %v1180_v22 = vld [vmem:[%s3944_s3 + $0x38] sm:$0xff]  ;;  %v1211_v23 = vld [vmem:[%s3944_s3 + $0x130] sm:$0xff] }
  0xfc   :  { %1988 = vmatprep.subr.bf16.mxu1 %v1987_v29  ;;  %v1198_v29 = vld [vmem:[%s3944_s3 + $0xc8] sm:$0xff]  ;;  %v2009_v32 = vpack.c.bf16 %v1180_v22, %v1179_v21  ;;  %v2041_v33 = vpack.c.bf16 %v1212_v27, %v1211_v23  ;;  %v552_v21 = vrot.slane %v535_v14, %v551_v17 }
  0xfd   :  { %v2011_v34 = vpack.c.bf16 %v1198_v29, %v1197_v28 }
  0xfe   :  { %1734 = vmatpush1.bf16.msra.mxu0 %v1733_v35  ;;  %v1181_v35 = vld [vmem:[%s3944_s3 + $0x40] sm:$0xff] }
  0xff   :  { %1990 = vmatpush1.bf16.msra.mxu1 %v1989_v36  ;;  %1736 = vmatprep.subr.bf16.mxu0 %v1735_v37  ;;  %v1182_v36 = vld [vmem:[%s3944_s3 + $0x48] sm:$0xff]  ;;  %v1213_v37 = vld [vmem:[%s3944_s3 + $0x140] sm:$0xff] }
 0x100   :  { %1992 = vmatprep.subr.bf16.mxu1 %v1991_v42  ;;  %v1200_v42 = vld [vmem:[%s3944_s3 + $0xd8] sm:$0xff]  ;;  %v2013_v39 = vpack.c.bf16 %v1182_v36, %v1181_v35  ;;  %v2045_v46 = vpack.c.bf16 %v1214_v40, %v1213_v37  ;;  %v1412_v37 = vld [vmem:[%s3945_s4] ss:$0 sm:$0xff]  ;;  %s2108_s4 = smov [#allocation2]  }
 0x101   :  { %v2015_v47 = vpack.c.bf16 %v1200_v42, %v1199_v41  ;;  %s1404_s22 = sshll.u32 %s2108_s4, 4  ;;  %s1405_s22 = int_to_ptr.vmem [resolvable:$true] %s1404_s22 }
 0x102   :  { %1738 = vmatpush1.bf16.msra.mxu0 %v1737_v25  ;;  %v1183_v25 = vld [vmem:[%s3944_s3 + $0x50] sm:$0xff]  ;;  %s2083_s23 = scalar_lea.vmem %s1405_s22, 32  ;;  %p2088_p1 = scmp.lt.s32.totalorder %s1405_s22, %s1405_s22 }
 0x103   :  { %1994 = vmatpush1.bf16.msra.mxu1 %v1993_v48  ;;  %1996 = vmatprep.subr.bf16.mxu0 %v1995_v49  ;;  %v1184_v48 = vld [vmem:[%s3944_s3 + $0x58] sm:$0xff]  ;;  %v1215_v49 = vld [vmem:[%s3944_s3 + $0x150] sm:$0xff]  ;;  %p2084_p0 = scmp.ne.s32.totalorder %s1405_s22, %s2083_s23  ;;  %p2089_p2 = scmp.lt.s32.totalorder %s2083_s23, %s2083_s23 }
 0x104   :  { %2028 = vmatprep.subr.bf16.mxu1 %v2027_v54  ;;  %v1202_v54 = vld [vmem:[%s3944_s3 + $0xe8] sm:$0xff]  ;;  %v2017_v11 = vpack.c.bf16 %v1184_v48, %v1183_v25  ;;  %v2049_v57 = vpack.c.bf16 %v1216_v52, %v1215_v49 }
 0x105   :  { %879 = vmatmul.mubr.f32.vlgmr.msra.gmra.mrb[0].mxu0 %v3362_v50  ;;  %v2019_v58 = vpack.c.bf16 %v1202_v54, %v1201_v53  ;;  %p2090_p3 = por %p2089_p2, %p2088_p1 }
 0x106   :  { %1163 = vmatmul.mubr.f32.vlgmr.msra.gmra.mrb[0].mxu1 %v3362_v50  ;;  %1998 = vmatpush3.bf16.msra.mxu0 %v1997_v24  ;;  %v2035_v50 = vpack.c.bf16 %v1226_v6, %v1225_v5  ;;  %v2051_v24 = vpack.c.bf16 %v1234_v56, %v1233_v55  ;;  %v2023_v5 = vpack.c.bf16 %v1204_v3, %v1203_v2  ;;  %v1236_v6 = vld [vmem:[%s3944_s3 + $0x1f8] sm:$0xff] }
 0x107   :  { %2030 = vmatpush3.bf16.msra.mxu1 %v2029_v59  ;;  %2000 = vmatprep.subr.bf16.mxu0 %v1999_v60  ;;  %v1185_v59 = vld [vmem:[%s3944_s3 + $0x60] sm:$0xff]  ;;  %v1186_v60 = vld [vmem:[%s3944_s3 + $0x68] sm:$0xff]  ;;  %p2091_p4 = pnand %p2090_p3, %p2084_p0 }
 0x108   :  { %2032 = vmatprep.subr.bf16.mxu1 %v2031_v1  ;;  %v2021_v63 = vpack.c.bf16 %v1186_v60, %v1185_v59  ;;  %v2053_v1 = vpack.c.bf16 %v1218_v0, %v1217_v62 }
 0x10a   :  { %2002 = vmatpush3.bf16.msra.mxu0 %v2001_v7  ;;  %v1187_v7 = vld [vmem:[%s3944_s3 + $0x70] sm:$0xff] }
 0x10b   :  { %2034 = vmatpush3.bf16.msra.mxu1 %v2033_v45  ;;  %2004 = vmatprep.subr.bf16.mxu0 %v2003_v8  ;;  %v1188_v45 = vld [vmem:[%s3944_s3 + $0x78] sm:$0xff]  ;;  %v2055_v8 = vpack.c.bf16 %v1236_v6, %v1235_v4 }
 0x10c   :  { %2036 = vmatprep.subr.bf16.mxu1 %v2035_v50  ;;  %v2025_v9 = vpack.c.bf16 %v1188_v45, %v1187_v7  ;;  %v2057_v50 = vpack.c.bf16 %v1220_v12, %v1219_v10 }
 0x10e   :  { %2006 = vmatpush3.bf16.msra.mxu0 %v2005_v18  ;;  %v540_v18 = vrot.slane %v535_v14, %v539_v13 }
 0x10f   :  { %2038 = vmatpush3.bf16.msra.mxu1 %v2037_v19  ;;  %2008 = vmatprep.subr.bf16.mxu0 %v2007_v20  ;;  %v548_v19 = vrot.slane %v535_v14, %v547_v15  ;;  %v544_v20 = vrot.slane %v535_v14, %v543_v16 }
 0x110   :  { %2040 = vmatprep.subr.bf16.mxu1 %v2039_v26 }
 0x112   :  { %2010 = vmatpush3.bf16.msra.mxu0 %v2009_v32 }
 0x113   :  { %2042 = vmatpush3.bf16.msra.mxu1 %v2041_v33  ;;  %2012 = vmatprep.subr.bf16.mxu0 %v2011_v34 }
 0x114   :  { %2044 = vmatprep.subr.bf16.mxu1 %v2043_v38 }
 0x116   :  { %2014 = vmatpush3.bf16.msra.mxu0 %v2013_v39 }
 0x117   :  { %2046 = vmatpush3.bf16.msra.mxu1 %v2045_v46  ;;  %2016 = vmatprep.subr.bf16.mxu0 %v2015_v47 }
 0x118   :  { %2048 = vmatprep.subr.bf16.mxu1 %v2047_v51 }
 0x11a   :  { %2018 = vmatpush3.bf16.msra.mxu0 %v2017_v11 }
 0x11b   :  { %2050 = vmatpush3.bf16.msra.mxu1 %v2049_v57  ;;  %2020 = vmatprep.subr.bf16.mxu0 %v2019_v58 }
 0x11c   :  { %2052 = vmatprep.subr.bf16.mxu1 %v2051_v24 }
 0x11e   :  { %2022 = vmatpush3.bf16.msra.mxu0 %v2021_v63 }
 0x11f   :  { %2054 = vmatpush3.bf16.msra.mxu1 %v2053_v1  ;;  %2024 = vmatprep.subr.bf16.mxu0 %v2023_v5 }
 0x120   :  { %2056 = vmatprep.subr.bf16.mxu1 %v2055_v8 }
 0x122   :  { %2026 = vmatpush3.bf16.msra.mxu0 %v2025_v9 }
 0x123   :  { %2058 = vmatpush3.bf16.msra.mxu1 %v2057_v50 }
 0x1d8   :  { %v880_v22 = vpop.f32.mrb[0].mxu0 }
 0x1d9   :  { %v2059_v23 = vadd.f32 %v880_v22, %v540_v18  ;;  %v1164_v26 = vpop.f32.mrb[0].mxu1  ;;  %v882_v27 = vpop.f32.mrb[1].mxu0 }
 0x1da   :  { %v2061_v28 = vadd.f32 %v1164_v26, %v548_v19  ;;  %v2060_v29 = vadd.f32 %v882_v27, %v544_v20  ;;  %v1166_v30 = vpop.f32.mrb[1].mxu1 }
 0x1db   :  { %v2062_v31 = vadd.f32 %v1166_v30, %v552_v21  ;;  %v1169_v33 = vmax.f32 %v2059_v23, 0.0 }
 0x1dc   :  { %v1170_v32 = vmax.f32 %v2060_v29, 0.0  ;;  %v1171_v35 = vmax.f32 %v2061_v28, 0.0 }
 0x1dd   :  { %v1172_v34 = vmax.f32 %v2062_v31, 0.0 }
 0x1de   :  { %1308 = vmatprep.mubr.f32.mxu0 %v1170_v32 }
 0x1df   :  { %1378 = vmatprep.mubr.f32.mxu1 %v1172_v34  ;;  %1309 = vmatmul.mubr.f32.vlgmr.msra.gmra.mrb[2].mxu0 %v1169_v33 }
 0x1e0   :  { %1379 = vmatmul.mubr.f32.vlgmr.msra.gmra.mrb[2].mxu1 %v1171_v35 }
 0x2b2   :  { %v1445_v61 = vpop.f32.mrb[2].mxu0 }
 0x2b3   :  { %v1480_v36 = vpop.f32.mrb[2].mxu1  ;;  %v1446_v38 = vpop.f32.mrb[3].mxu0 }
 0x2b4   :  { %v1447_v40 = vadd.f32 %v1446_v38, %v1445_v61  ;;  %v1481_v41 = vpop.f32.mrb[3].mxu1 }
 0x2b5   :  { %v1482_v42 = vadd.f32 %v1481_v41, %v1480_v36 }
 0x2b6   :  { %v1311_v43 = vadd.f32 %v1447_v40, %v1412_v37 }
 0x2b8   :  { %v1381_v44 = vadd.f32 %v1482_v42, %v1311_v43 }
 0x2ba   :  { %v1385_v39 = vsel %vm1384_vm0, %v1381_v44, -inf }
 0x2bb   :  { %1386 = vmax.xlane.f32.xlu0 %v1385_v39 }
 0x348   :  { %v1387_v46 = vpop.xlane.xlu0 %1386 }
 0x349   :  { %v1388_v47 = vsub.f32 %v1381_v44, %v1387_v46 }
 0x34b   :  { %v1389_v25 = vmul.f32 1.442695, %v1388_v47 }
 0x34d   :  { %2079 = vpow2.f32 %v1389_v25 }
 0x357   :  { %v2080_v48 = vpop.eup %2079 }
 0x358   :  { %v1391_v49 = vsel %vm1384_vm0, %v2080_v48, 0.0 }
 0x359   :  { %1392 = vadd.xlane.f32.xlu0 %v1391_v49 }
 0x3e6   :  { %v1393_v51 = vpop.xlane.xlu0 %1392 }
 0x3e7   :  { %2081 = vlog2.f32 %v1393_v51 }
 0x3f1   :  { %v2082_v52 = vpop.eup %2081 }
 0x3f2   :  { %v1395_v53 = vmul.f32 0.6931472, %v2082_v52 }
 0x3f4   :  { %v1396_v54 = vsub.f32 %v1388_v47, %v1395_v53 }
 0x3f6   :  { %1397 = vst.msk [vmem:[#allocation2] sm:$0x3] %vm1384_vm0, %v1396_v54 }
 0x3f7   :  { %2094 = shalt.err (!%p2091_p4)
}
 0x3f8   :  { %s2095_s26 = scalar_lea.hbm %s3946_s5, 32 }
 0x3f9   :  { %p2096_p5 = scmp.ne.s32.totalorder %s3946_s5, %s2095_s26  ;;  %p2099_p6 = scmp.lt.u32.totalorder %s2095_s26, %s3946_s5 }
 0x3fb   :  { %p2101_p7 = pnand %p2099_p6, %p2096_p5 }
 0x3fd   :  { %2104 = shalt.err (!%p2101_p7)
}
 0x3fe   :  { %1407 = dma.vmem_to_hbm [thread:$0]  %s1405_s22, 32, %s3946_s5, [#allocation3]  }
 0x3ff   :  { %2105 = dma.done.wait [#allocation3], 32  }
 0x400   :  { %2106 = vsyncadd [#allocation3], 4294967264 }
 0x401   :  { %1411 = vsyncpa [#allocation3], 1 }

</bundles_post_ra>
